<compile_context>
chip_gen: v7x
topology: tpu7x:2x2x1
jax: 0.10.0
libtpu: 0.0.40
codegen_flags: <defaults>
</compile_context>

<pallas_src>
import functools

import jax
import jax.numpy as jnp
from jax import lax
from jax.experimental import pallas as pl
from jax.experimental.pallas import tpu as pltpu

LEAKY_SLOPE = 0.01  # TODO(synk): Act('leaky') source not given; assuming torch default slope 0.01.


# ---------------------------------------------------------------------------
# In-kernel helpers.  Activations are flat row-major (channels, H*W): spatial on lanes.
# ---------------------------------------------------------------------------
def _roll_src(x, s, m):
    """out[c, f] = x[c, (f + s) mod m]  (static circular shift along the lane axis, XLU)."""
    s = s % m
    if s == 0:
        return x
    return pltpu.roll(x, m - s, axis=1)


def _col_shift(x, dxe, w, masks):
    """Circular shift by dxe (0 <= dxe < w) within each row of width w of a flat image."""
    if dxe == 0:
        return x
    m = x.shape[-1]
    # Non-wrapping columns come from the plain flat roll; wrapping columns from the
    # roll corrected by one row.  Mask is precomputed (hoisted) -- depends only on dxe.
    return jnp.where(masks[dxe], _roll_src(x, dxe, m), _roll_src(x, dxe - w, m))


def _dilated_conv(x, w_ref, b_ref, dil, hh, ww, k, slope, masks):
    """Periodic KxK conv, stride 1, dilation `dil`, over a flat (Cin, hh*ww) activation,
    fused into ONE GEMM: (Cout, K*K*Cin) @ (K*K*Cin, hh*ww) with f32 accumulation."""
    p = (k - 1) // 2
    m = hh * ww
    # K column-shifted copies (lane wrap within each image row handled via hoisted masks).
    cols = [_col_shift(x, ((kx - p) * dil) % ww, ww, masks) for kx in range(k)]
    # Row shifts are pure flat rolls (row wrap == whole-image lane wrap), mask-free.
    parts = []
    for ky in range(k):
        dy_flat = (((ky - p) * dil) % hh) * ww
        for kx in range(k):
            parts.append(_roll_src(cols[kx], dy_flat, m))
    # Stacked tap slab lives in VMEM/vregs (compiler managed); cast once to the matmul
    # dtype (bf16 fast path; f32 for the validation path).
    slab = jnp.concatenate(parts, axis=0).astype(w_ref.dtype)          # (K*K*Cin, m)
    y = jnp.dot(w_ref[...], slab, preferred_element_type=jnp.float32)  # (Cout, m), MXU
    y = y + b_ref[...]                                                 # bias once, post-GEMM
    return jnp.maximum(y, slope * y)                                   # LeakyReLU (f32)


# ---------------------------------------------------------------------------
# Fused encoder kernel: whole forward pass for one image per grid step.
# ---------------------------------------------------------------------------
def _encoder_kernel(*refs, depth, hh, ww, k, slope):
    x_ref = refs[0]
    w_refs = refs[1:-1]
    o_ref = refs[-1]
    m = hh * ww
    p = (k - 1) // 2

    # Hoisted once per grid step: column index per lane and the wrap masks for every
    # distinct dilated column offset used by any conv in the network.
    colq = lax.broadcasted_iota(jnp.int32, (1, m), 1) % ww
    masks = {}
    for d in range(depth):
        for dil in (1 << d, 1 << (d + 1)):
            for kx in range(k):
                dxe = ((kx - p) * dil) % ww
                if dxe and dxe not in masks:
                    masks[dxe] = colq < (ww - dxe)

    x = x_ref[0]                                   # (Cin, H*W) f32, row-major spatial
    for d in range(depth):
        w1, b1, w2, b2 = w_refs[4 * d:4 * d + 4]
        # "A trous" pipeline: block d's stride-2 conv == dilation-2^d stride-1 conv at
        # full resolution; its stride-1 conv uses dilation 2^(d+1).  The true coarse-grid
        # activation sits at lane positions that are multiples of 2^(d+1).
        x = _dilated_conv(x, w1, b1, 1 << d, hh, ww, k, slope, masks)        # conv1 + act1
        x = _dilated_conv(x, w2, b2, 1 << (d + 1), hh, ww, k, slope, masks)  # conv2 + act2
    o_ref[...] = x.reshape((1,) + x.shape).astype(o_ref.dtype)   # lane-dense (c_lat, H*W)


# ---------------------------------------------------------------------------
# Host-side parameter prep (hoisted out of the forward hot path) and wrapper.
# ---------------------------------------------------------------------------
def init_encoder_params(key, in_channels, hidden_channels=16, latent_channels=8,
                        kernel_size=5, depth=3):
    """Raw (PyTorch-layout) parameters: w (Cout, Cin, K, K), b (Cout,), float32."""
    block_in = [in_channels] + [hidden_channels] * (depth - 1)
    block_out = [hidden_channels] * (depth - 1) + [latent_channels]
    params = []
    for d in range(depth):
        cin, cout = block_in[d], block_out[d]
        key, k1, k2, k3, k4 = jax.random.split(key, 5)
        fan = kernel_size * kernel_size * cin
        w1 = jax.random.normal(k1, (cin, cin, kernel_size, kernel_size), jnp.float32) * fan ** -0.5
        b1 = jax.random.normal(k2, (cin,), jnp.float32) * 0.01
        w2 = jax.random.normal(k3, (cout, cin, kernel_size, kernel_size), jnp.float32) * fan ** -0.5
        b2 = jax.random.normal(k4, (cout,), jnp.float32) * 0.01
        params.append((w1, b1, w2, b2))
    return params


def prepare_encoder_params(raw_params, mm_dtype=jnp.bfloat16):
    """Repack weights once into the kernel's GEMM layout: w (Cout, K*K*Cin) in mm_dtype
    (tap order ky, kx, ci) and b (Cout, 1) f32.  Default bf16 = MXU fast path."""
    def prep_w(w):
        co, ci, k, _ = w.shape
        return jnp.transpose(w, (0, 2, 3, 1)).reshape(co, k * k * ci).astype(mm_dtype)
    return [(prep_w(w1), b1.reshape(-1, 1).astype(jnp.float32),
             prep_w(w2), b2.reshape(-1, 1).astype(jnp.float32))
            for (w1, b1, w2, b2) in raw_params]


def cnn_encoder_forward(x_nchw, kernel_params, *, slope=LEAKY_SLOPE):
    """x_nchw: (N, C, H, W) like the PyTorch module.  One fused pallas_call; the final
    coarse-grid readout is a trivial host-side strided slice of the lane-dense output."""
    n, c, hh, ww = x_nchw.shape
    depth = len(kernel_params)
    assert hh % (2 ** depth) == 0 and ww % (2 ** depth) == 0
    kk_cin = kernel_params[0][0].shape[1]
    k = int(round((kk_cin // c) ** 0.5))
    assert k * k * c == kk_cin, "could not infer kernel size from packed weights"
    c_lat = kernel_params[-1][2].shape[0]
    m = hh * ww

    flat_params = [a for blk in kernel_params for a in blk]
    x_flat = x_nchw.reshape(n, c, m)   # NCHW is already row-major in (H, W)

    kernel = functools.partial(_encoder_kernel, depth=depth, hh=hh, ww=ww, k=k, slope=slope)

    in_specs = [pl.BlockSpec((1, c, m), lambda b: (b, 0, 0))]
    in_specs += [pl.BlockSpec(a.shape, lambda b: (0, 0)) for a in flat_params]

    out_full = pl.pallas_call(
        kernel,
        out_shape=jax.ShapeDtypeStruct((n, c_lat, m), jnp.float32),
        grid=(n,),                         # batch>=2 -> both v7x TensorCores busy
        in_specs=in_specs,
        out_specs=pl.BlockSpec((1, c_lat, m), lambda b: (b, 0, 0)),
        compiler_params=pltpu.CompilerParams(dimension_semantics=("parallel",)),
    )(x_flat, *flat_params)

    s = 2 ** depth
    return out_full.reshape(n, c_lat, hh, ww)[:, :, ::s, ::s]


# ---------------------------------------------------------------------------
# Pure-JAX reference (circular pad + valid conv + leaky) for validation
# ---------------------------------------------------------------------------
def _reference_forward(x_nchw, raw_params, slope=LEAKY_SLOPE):
    x = x_nchw
    for (w1, b1, w2, b2) in raw_params:
        for wgt, bias, stride in ((w1, b1, 2), (w2, b2, 1)):
            pad = (wgt.shape[-1] - 1) // 2
            xp = jnp.pad(x, ((0, 0), (0, 0), (pad, pad), (pad, pad)), mode="wrap")
            y = lax.conv_general_dilated(
                xp, wgt, window_strides=(stride, stride), padding="VALID",
                dimension_numbers=("NCHW", "OIHW", "NCHW"),
                precision=lax.Precision.HIGHEST)
            y = y + bias.reshape(1, -1, 1, 1)
            x = jnp.where(y >= 0.0, y, slope * y)
    return x


if __name__ == "__main__":
    key = jax.random.PRNGKey(0)
    key, xkey = jax.random.split(key)

    in_channels, hidden_channels, latent_channels = 4, 16, 8
    kernel_size, depth = 5, 3
    batch, height, width = 2, 16, 16

    x = jax.random.normal(xkey, (batch, in_channels, height, width), jnp.float32)
    raw = init_encoder_params(key, in_channels, hidden_channels, latent_channels,
                              kernel_size, depth)
    ref = _reference_forward(x, raw)
    expected = (batch, latent_channels, height // 2 ** depth, width // 2 ** depth)

    fwd = jax.jit(cnn_encoder_forward)

    # (a) f32 matmul operands: validates the dilated-shift / fused-GEMM decomposition
    #     exactly against the circular-pad conv reference.
    out_f32 = jax.block_until_ready(fwd(x, prepare_encoder_params(raw, jnp.float32)))
    assert out_f32.shape == expected, (out_f32.shape, expected)
    assert out_f32.dtype == jnp.float32
    assert bool(jnp.all(jnp.isfinite(out_f32)))
    err32 = float(jnp.max(jnp.abs(out_f32 - ref)))
    assert err32 < 1e-3, f"f32 mismatch vs reference: {err32}"

    # (b) production path: bf16 matmul operands (f32 accumulate) -- relaxed tolerance
    #     through the 6 stacked convs, per the review's correctness note.
    out_bf16 = jax.block_until_ready(fwd(x, prepare_encoder_params(raw, jnp.bfloat16)))
    assert out_bf16.shape == expected and out_bf16.dtype == jnp.float32
    assert bool(jnp.all(jnp.isfinite(out_bf16)))
    err16 = float(jnp.max(jnp.abs(out_bf16 - ref)))
    assert err16 < 5e-2, f"bf16 mismatch vs reference: {err16}"

    print("KERNEL_OK")
</pallas_src>

<mosaic_0001>
module attributes {stable_mosaic.version = 11 : i64} {
  func.func @_encoder_kernel(%arg0: i32, %arg1: memref<1x4x256xf32, #tpu.memory_space<vmem>>, %arg2: memref<4x100xf32, #tpu.memory_space<vmem>>, %arg3: memref<4x1xf32, #tpu.memory_space<vmem>>, %arg4: memref<16x100xf32, #tpu.memory_space<vmem>>, %arg5: memref<16x1xf32, #tpu.memory_space<vmem>>, %arg6: memref<16x400xf32, #tpu.memory_space<vmem>>, %arg7: memref<16x1xf32, #tpu.memory_space<vmem>>, %arg8: memref<16x400xf32, #tpu.memory_space<vmem>>, %arg9: memref<16x1xf32, #tpu.memory_space<vmem>>, %arg10: memref<16x400xf32, #tpu.memory_space<vmem>>, %arg11: memref<16x1xf32, #tpu.memory_space<vmem>>, %arg12: memref<8x400xf32, #tpu.memory_space<vmem>>, %arg13: memref<8x1xf32, #tpu.memory_space<vmem>>, %arg14: memref<1x8x256xf32, #tpu.memory_space<vmem>>) attributes {dimension_semantics = [#tpu.dimension_semantics<parallel>], iteration_bounds = array<i64: 2>, scalar_prefetch = 0 : i64, scratch_operands = 0 : i64, tpu.core_type = #tpu.core_type<tc>, window_params = [{transform_indices = @transform_0, window_bounds = array<i64: 1, 4, 256>}, {pipeline_mode = #tpu.pipeline_mode<synchronous>, transform_indices = @transform_1, window_bounds = array<i64: 4, 100>}, {pipeline_mode = #tpu.pipeline_mode<synchronous>, transform_indices = @transform_2, window_bounds = array<i64: 4, 1>}, {pipeline_mode = #tpu.pipeline_mode<synchronous>, transform_indices = @transform_3, window_bounds = array<i64: 16, 100>}, {pipeline_mode = #tpu.pipeline_mode<synchronous>, transform_indices = @transform_4, window_bounds = array<i64: 16, 1>}, {pipeline_mode = #tpu.pipeline_mode<synchronous>, transform_indices = @transform_5, window_bounds = array<i64: 16, 400>}, {pipeline_mode = #tpu.pipeline_mode<synchronous>, transform_indices = @transform_6, window_bounds = array<i64: 16, 1>}, {pipeline_mode = #tpu.pipeline_mode<synchronous>, transform_indices = @transform_7, window_bounds = array<i64: 16, 400>}, {pipeline_mode = #tpu.pipeline_mode<synchronous>, transform_indices = @transform_8, window_bounds = array<i64: 16, 1>}, {pipeline_mode = #tpu.pipeline_mode<synchronous>, transform_indices = @transform_9, window_bounds = array<i64: 16, 400>}, {pipeline_mode = #tpu.pipeline_mode<synchronous>, transform_indices = @transform_10, window_bounds = array<i64: 16, 1>}, {pipeline_mode = #tpu.pipeline_mode<synchronous>, transform_indices = @transform_11, window_bounds = array<i64: 8, 400>}, {pipeline_mode = #tpu.pipeline_mode<synchronous>, transform_indices = @transform_12, window_bounds = array<i64: 8, 1>}, {transform_indices = @transform_13, window_bounds = array<i64: 1, 8, 256>}]} {
    %0 = tpu.iota {dimensions = array<i32: 1>} : vector<1x256xi32>
    %c16_i32 = arith.constant 16 : i32
    %c0_i32 = arith.constant 0 : i32
    %1 = arith.cmpi eq, %c16_i32, %c0_i32 : i32
    %c1_i32 = arith.constant 1 : i32
    %2 = arith.select %1, %c1_i32, %c16_i32 : i32
    %3 = vector.broadcast %2 : i32 to vector<1x256xi32>
    %4 = arith.remsi %0, %3 : vector<1x256xi32>
    %c0_i32_0 = arith.constant 0 : i32
    %5 = vector.broadcast %c0_i32_0 : i32 to vector<1x256xi32>
    %6 = arith.cmpi ne, %4, %5 : vector<1x256xi32>
    %c0_i32_1 = arith.constant 0 : i32
    %7 = vector.broadcast %c0_i32_1 : i32 to vector<1x256xi32>
    %8 = arith.cmpi slt, %4, %7 : vector<1x256xi32>
    %c0_i32_2 = arith.constant 0 : i32
    %9 = arith.cmpi slt, %2, %c0_i32_2 : i32
    %10 = vector.broadcast %9 : i1 to vector<1x256xi1>
    %11 = vector.broadcast %10 : vector<1x256xi1> to vector<1x256xi1>
    %12 = arith.xori %8, %11 : vector<1x256xi1>
    %13 = arith.andi %12, %6 : vector<1x256xi1>
    %14 = vector.broadcast %2 : i32 to vector<1x256xi32>
    %15 = arith.addi %4, %14 : vector<1x256xi32>
    %16 = arith.select %13, %15, %4 : vector<1x256xi1>, vector<1x256xi32>
    %c2_i32 = arith.constant 2 : i32
    %17 = vector.broadcast %c2_i32 : i32 to vector<1x256xi32>
    %18 = arith.cmpi slt, %16, %17 : vector<1x256xi32>
    %c1_i32_3 = arith.constant 1 : i32
    %19 = vector.broadcast %c1_i32_3 : i32 to vector<1x256xi32>
    %20 = arith.cmpi slt, %16, %19 : vector<1x256xi32>
    %c15_i32 = arith.constant 15 : i32
    %21 = vector.broadcast %c15_i32 : i32 to vector<1x256xi32>
    %22 = arith.cmpi slt, %16, %21 : vector<1x256xi32>
    %c14_i32 = arith.constant 14 : i32
    %23 = vector.broadcast %c14_i32 : i32 to vector<1x256xi32>
    %24 = arith.cmpi slt, %16, %23 : vector<1x256xi32>
    %c4_i32 = arith.constant 4 : i32
    %25 = vector.broadcast %c4_i32 : i32 to vector<1x256xi32>
    %26 = arith.cmpi slt, %16, %25 : vector<1x256xi32>
    %c12_i32 = arith.constant 12 : i32
    %27 = vector.broadcast %c12_i32 : i32 to vector<1x256xi32>
    %28 = arith.cmpi slt, %16, %27 : vector<1x256xi32>
    %c8_i32 = arith.constant 8 : i32
    %29 = vector.broadcast %c8_i32 : i32 to vector<1x256xi32>
    %30 = arith.cmpi slt, %16, %29 : vector<1x256xi32>
    %c0 = arith.constant 0 : index
    %c0_4 = arith.constant 0 : index
    %c0_5 = arith.constant 0 : index
    %31 = vector.load %arg1[%c0, %c0_4, %c0_5] : memref<1x4x256xf32, #tpu.memory_space<vmem>>, vector<1x4x256xf32>
    %32 = vector.shape_cast %31 : vector<1x4x256xf32> to vector<4x256xf32>
    %c242_i32 = arith.constant 242 : i32
    %33 = tpu.dynamic_rotate %32 by %c242_i32 dim 1 : vector<4x256xf32>, i32 -> vector<4x256xf32>
    %c2_i32_6 = arith.constant 2 : i32
    %34 = tpu.dynamic_rotate %32 by %c2_i32_6 dim 1 : vector<4x256xf32>, i32 -> vector<4x256xf32>
    %35 = vector.shape_cast %18 : vector<1x256xi1> to vector<1x256xi1>
    %36 = vector.broadcast %35 : vector<1x256xi1> to vector<4x256xi1>
    %37 = arith.select %36, %33, %34 : vector<4x256xi1>, vector<4x256xf32>
    %c241_i32 = arith.constant 241 : i32
    %38 = tpu.dynamic_rotate %32 by %c241_i32 dim 1 : vector<4x256xf32>, i32 -> vector<4x256xf32>
    %c1_i32_7 = arith.constant 1 : i32
    %39 = tpu.dynamic_rotate %32 by %c1_i32_7 dim 1 : vector<4x256xf32>, i32 -> vector<4x256xf32>
    %40 = vector.shape_cast %20 : vector<1x256xi1> to vector<1x256xi1>
    %41 = vector.broadcast %40 : vector<1x256xi1> to vector<4x256xi1>
    %42 = arith.select %41, %38, %39 : vector<4x256xi1>, vector<4x256xf32>
    %c255_i32 = arith.constant 255 : i32
    %43 = tpu.dynamic_rotate %32 by %c255_i32 dim 1 : vector<4x256xf32>, i32 -> vector<4x256xf32>
    %c15_i32_8 = arith.constant 15 : i32
    %44 = tpu.dynamic_rotate %32 by %c15_i32_8 dim 1 : vector<4x256xf32>, i32 -> vector<4x256xf32>
    %45 = vector.shape_cast %22 : vector<1x256xi1> to vector<1x256xi1>
    %46 = vector.broadcast %45 : vector<1x256xi1> to vector<4x256xi1>
    %47 = arith.select %46, %43, %44 : vector<4x256xi1>, vector<4x256xf32>
    %c254_i32 = arith.constant 254 : i32
    %48 = tpu.dynamic_rotate %32 by %c254_i32 dim 1 : vector<4x256xf32>, i32 -> vector<4x256xf32>
    %c14_i32_9 = arith.constant 14 : i32
    %49 = tpu.dynamic_rotate %32 by %c14_i32_9 dim 1 : vector<4x256xf32>, i32 -> vector<4x256xf32>
    %50 = vector.shape_cast %24 : vector<1x256xi1> to vector<1x256xi1>
    %51 = vector.broadcast %50 : vector<1x256xi1> to vector<4x256xi1>
    %52 = arith.select %51, %48, %49 : vector<4x256xi1>, vector<4x256xf32>
    %c32_i32 = arith.constant 32 : i32
    %53 = tpu.dynamic_rotate %37 by %c32_i32 dim 1 : vector<4x256xf32>, i32 -> vector<4x256xf32>
    %c32_i32_10 = arith.constant 32 : i32
    %54 = tpu.dynamic_rotate %42 by %c32_i32_10 dim 1 : vector<4x256xf32>, i32 -> vector<4x256xf32>
    %c32_i32_11 = arith.constant 32 : i32
    %55 = tpu.dynamic_rotate %32 by %c32_i32_11 dim 1 : vector<4x256xf32>, i32 -> vector<4x256xf32>
    %c32_i32_12 = arith.constant 32 : i32
    %56 = tpu.dynamic_rotate %47 by %c32_i32_12 dim 1 : vector<4x256xf32>, i32 -> vector<4x256xf32>
    %c32_i32_13 = arith.constant 32 : i32
    %57 = tpu.dynamic_rotate %52 by %c32_i32_13 dim 1 : vector<4x256xf32>, i32 -> vector<4x256xf32>
    %c16_i32_14 = arith.constant 16 : i32
    %58 = tpu.dynamic_rotate %37 by %c16_i32_14 dim 1 : vector<4x256xf32>, i32 -> vector<4x256xf32>
    %c16_i32_15 = arith.constant 16 : i32
    %59 = tpu.dynamic_rotate %42 by %c16_i32_15 dim 1 : vector<4x256xf32>, i32 -> vector<4x256xf32>
    %c16_i32_16 = arith.constant 16 : i32
    %60 = tpu.dynamic_rotate %32 by %c16_i32_16 dim 1 : vector<4x256xf32>, i32 -> vector<4x256xf32>
    %c16_i32_17 = arith.constant 16 : i32
    %61 = tpu.dynamic_rotate %47 by %c16_i32_17 dim 1 : vector<4x256xf32>, i32 -> vector<4x256xf32>
    %c16_i32_18 = arith.constant 16 : i32
    %62 = tpu.dynamic_rotate %52 by %c16_i32_18 dim 1 : vector<4x256xf32>, i32 -> vector<4x256xf32>
    %c240_i32 = arith.constant 240 : i32
    %63 = tpu.dynamic_rotate %37 by %c240_i32 dim 1 : vector<4x256xf32>, i32 -> vector<4x256xf32>
    %c240_i32_19 = arith.constant 240 : i32
    %64 = tpu.dynamic_rotate %42 by %c240_i32_19 dim 1 : vector<4x256xf32>, i32 -> vector<4x256xf32>
    %c240_i32_20 = arith.constant 240 : i32
    %65 = tpu.dynamic_rotate %32 by %c240_i32_20 dim 1 : vector<4x256xf32>, i32 -> vector<4x256xf32>
    %c240_i32_21 = arith.constant 240 : i32
    %66 = tpu.dynamic_rotate %47 by %c240_i32_21 dim 1 : vector<4x256xf32>, i32 -> vector<4x256xf32>
    %c240_i32_22 = arith.constant 240 : i32
    %67 = tpu.dynamic_rotate %52 by %c240_i32_22 dim 1 : vector<4x256xf32>, i32 -> vector<4x256xf32>
    %c224_i32 = arith.constant 224 : i32
    %68 = tpu.dynamic_rotate %37 by %c224_i32 dim 1 : vector<4x256xf32>, i32 -> vector<4x256xf32>
    %c224_i32_23 = arith.constant 224 : i32
    %69 = tpu.dynamic_rotate %42 by %c224_i32_23 dim 1 : vector<4x256xf32>, i32 -> vector<4x256xf32>
    %c224_i32_24 = arith.constant 224 : i32
    %70 = tpu.dynamic_rotate %32 by %c224_i32_24 dim 1 : vector<4x256xf32>, i32 -> vector<4x256xf32>
    %c224_i32_25 = arith.constant 224 : i32
    %71 = tpu.dynamic_rotate %47 by %c224_i32_25 dim 1 : vector<4x256xf32>, i32 -> vector<4x256xf32>
    %c224_i32_26 = arith.constant 224 : i32
    %72 = tpu.dynamic_rotate %52 by %c224_i32_26 dim 1 : vector<4x256xf32>, i32 -> vector<4x256xf32>
    %73 = tpu.concatenate %53, %54, %55, %56, %57, %58, %59, %60, %61, %62, %37, %42, %32, %47, %52, %63 in 0 : vector<4x256xf32>, vector<4x256xf32>, vector<4x256xf32>, vector<4x256xf32>, vector<4x256xf32>, vector<4x256xf32>, vector<4x256xf32>, vector<4x256xf32>, vector<4x256xf32>, vector<4x256xf32>, vector<4x256xf32>, vector<4x256xf32>, vector<4x256xf32>, vector<4x256xf32>, vector<4x256xf32>, vector<4x256xf32> -> vector<64x256xf32>
    %74 = tpu.concatenate %64, %65, %66, %67, %68, %69, %70, %71, %72 in 0 : vector<4x256xf32>, vector<4x256xf32>, vector<4x256xf32>, vector<4x256xf32>, vector<4x256xf32>, vector<4x256xf32>, vector<4x256xf32>, vector<4x256xf32>, vector<4x256xf32> -> vector<36x256xf32>
    %75 = tpu.concatenate %73, %74 in 0 : vector<64x256xf32>, vector<36x256xf32> -> vector<100x256xf32>
    %c0_27 = arith.constant 0 : index
    %c0_28 = arith.constant 0 : index
    %76 = vector.load %arg2[%c0_27, %c0_28] : memref<4x100xf32, #tpu.memory_space<vmem>>, vector<4x100xf32>
    %cst = arith.constant dense<0.000000e+00> : vector<4x256xf32>
    %77 = tpu.matmul %76, %75, %cst {dimension_numbers = #tpu.dot_dimension_numbers<[1], [0], [0], [1], [0, 0, 1, 1], [], []>} : vector<4x100xf32>, vector<100x256xf32>, vector<4x256xf32> -> vector<4x256xf32>
    %c0_29 = arith.constant 0 : index
    %c0_30 = arith.constant 0 : index
    %78 = vector.load %arg3[%c0_29, %c0_30] : memref<4x1xf32, #tpu.memory_space<vmem>>, vector<4x1xf32>
    %79 = vector.broadcast %78 : vector<4x1xf32> to vector<4x256xf32>
    %80 = arith.addf %77, %79 : vector<4x256xf32>
    %cst_31 = arith.constant 0.00999999977 : f32
    %81 = vector.broadcast %cst_31 : f32 to vector<4x256xf32>
    %82 = arith.mulf %81, %80 : vector<4x256xf32>
    %83 = arith.maximumf %80, %82 : vector<4x256xf32>
    %c244_i32 = arith.constant 244 : i32
    %84 = tpu.dynamic_rotate %83 by %c244_i32 dim 1 : vector<4x256xf32>, i32 -> vector<4x256xf32>
    %c4_i32_32 = arith.constant 4 : i32
    %85 = tpu.dynamic_rotate %83 by %c4_i32_32 dim 1 : vector<4x256xf32>, i32 -> vector<4x256xf32>
    %86 = vector.shape_cast %26 : vector<1x256xi1> to vector<1x256xi1>
    %87 = vector.broadcast %86 : vector<1x256xi1> to vector<4x256xi1>
    %88 = arith.select %87, %84, %85 : vector<4x256xi1>, vector<4x256xf32>
    %c242_i32_33 = arith.constant 242 : i32
    %89 = tpu.dynamic_rotate %83 by %c242_i32_33 dim 1 : vector<4x256xf32>, i32 -> vector<4x256xf32>
    %c2_i32_34 = arith.constant 2 : i32
    %90 = tpu.dynamic_rotate %83 by %c2_i32_34 dim 1 : vector<4x256xf32>, i32 -> vector<4x256xf32>
    %91 = vector.shape_cast %18 : vector<1x256xi1> to vector<1x256xi1>
    %92 = vector.broadcast %91 : vector<1x256xi1> to vector<4x256xi1>
    %93 = arith.select %92, %89, %90 : vector<4x256xi1>, vector<4x256xf32>
    %c254_i32_35 = arith.constant 254 : i32
    %94 = tpu.dynamic_rotate %83 by %c254_i32_35 dim 1 : vector<4x256xf32>, i32 -> vector<4x256xf32>
    %c14_i32_36 = arith.constant 14 : i32
    %95 = tpu.dynamic_rotate %83 by %c14_i32_36 dim 1 : vector<4x256xf32>, i32 -> vector<4x256xf32>
    %96 = vector.shape_cast %24 : vector<1x256xi1> to vector<1x256xi1>
    %97 = vector.broadcast %96 : vector<1x256xi1> to vector<4x256xi1>
    %98 = arith.select %97, %94, %95 : vector<4x256xi1>, vector<4x256xf32>
    %c252_i32 = arith.constant 252 : i32
    %99 = tpu.dynamic_rotate %83 by %c252_i32 dim 1 : vector<4x256xf32>, i32 -> vector<4x256xf32>
    %c12_i32_37 = arith.constant 12 : i32
    %100 = tpu.dynamic_rotate %83 by %c12_i32_37 dim 1 : vector<4x256xf32>, i32 -> vector<4x256xf32>
    %101 = vector.shape_cast %28 : vector<1x256xi1> to vector<1x256xi1>
    %102 = vector.broadcast %101 : vector<1x256xi1> to vector<4x256xi1>
    %103 = arith.select %102, %99, %100 : vector<4x256xi1>, vector<4x256xf32>
    %c64_i32 = arith.constant 64 : i32
    %104 = tpu.dynamic_rotate %88 by %c64_i32 dim 1 : vector<4x256xf32>, i32 -> vector<4x256xf32>
    %c64_i32_38 = arith.constant 64 : i32
    %105 = tpu.dynamic_rotate %93 by %c64_i32_38 dim 1 : vector<4x256xf32>, i32 -> vector<4x256xf32>
    %c64_i32_39 = arith.constant 64 : i32
    %106 = tpu.dynamic_rotate %83 by %c64_i32_39 dim 1 : vector<4x256xf32>, i32 -> vector<4x256xf32>
    %c64_i32_40 = arith.constant 64 : i32
    %107 = tpu.dynamic_rotate %98 by %c64_i32_40 dim 1 : vector<4x256xf32>, i32 -> vector<4x256xf32>
    %c64_i32_41 = arith.constant 64 : i32
    %108 = tpu.dynamic_rotate %103 by %c64_i32_41 dim 1 : vector<4x256xf32>, i32 -> vector<4x256xf32>
    %c32_i32_42 = arith.constant 32 : i32
    %109 = tpu.dynamic_rotate %88 by %c32_i32_42 dim 1 : vector<4x256xf32>, i32 -> vector<4x256xf32>
    %c32_i32_43 = arith.constant 32 : i32
    %110 = tpu.dynamic_rotate %93 by %c32_i32_43 dim 1 : vector<4x256xf32>, i32 -> vector<4x256xf32>
    %c32_i32_44 = arith.constant 32 : i32
    %111 = tpu.dynamic_rotate %83 by %c32_i32_44 dim 1 : vector<4x256xf32>, i32 -> vector<4x256xf32>
    %c32_i32_45 = arith.constant 32 : i32
    %112 = tpu.dynamic_rotate %98 by %c32_i32_45 dim 1 : vector<4x256xf32>, i32 -> vector<4x256xf32>
    %c32_i32_46 = arith.constant 32 : i32
    %113 = tpu.dynamic_rotate %103 by %c32_i32_46 dim 1 : vector<4x256xf32>, i32 -> vector<4x256xf32>
    %c224_i32_47 = arith.constant 224 : i32
    %114 = tpu.dynamic_rotate %88 by %c224_i32_47 dim 1 : vector<4x256xf32>, i32 -> vector<4x256xf32>
    %c224_i32_48 = arith.constant 224 : i32
    %115 = tpu.dynamic_rotate %93 by %c224_i32_48 dim 1 : vector<4x256xf32>, i32 -> vector<4x256xf32>
    %c224_i32_49 = arith.constant 224 : i32
    %116 = tpu.dynamic_rotate %83 by %c224_i32_49 dim 1 : vector<4x256xf32>, i32 -> vector<4x256xf32>
    %c224_i32_50 = arith.constant 224 : i32
    %117 = tpu.dynamic_rotate %98 by %c224_i32_50 dim 1 : vector<4x256xf32>, i32 -> vector<4x256xf32>
    %c224_i32_51 = arith.constant 224 : i32
    %118 = tpu.dynamic_rotate %103 by %c224_i32_51 dim 1 : vector<4x256xf32>, i32 -> vector<4x256xf32>
    %c192_i32 = arith.constant 192 : i32
    %119 = tpu.dynamic_rotate %88 by %c192_i32 dim 1 : vector<4x256xf32>, i32 -> vector<4x256xf32>
    %c192_i32_52 = arith.constant 192 : i32
    %120 = tpu.dynamic_rotate %93 by %c192_i32_52 dim 1 : vector<4x256xf32>, i32 -> vector<4x256xf32>
    %c192_i32_53 = arith.constant 192 : i32
    %121 = tpu.dynamic_rotate %83 by %c192_i32_53 dim 1 : vector<4x256xf32>, i32 -> vector<4x256xf32>
    %c192_i32_54 = arith.constant 192 : i32
    %122 = tpu.dynamic_rotate %98 by %c192_i32_54 dim 1 : vector<4x256xf32>, i32 -> vector<4x256xf32>
    %c192_i32_55 = arith.constant 192 : i32
    %123 = tpu.dynamic_rotate %103 by %c192_i32_55 dim 1 : vector<4x256xf32>, i32 -> vector<4x256xf32>
    %124 = tpu.concatenate %104, %105, %106, %107, %108, %109, %110, %111, %112, %113, %88, %93, %83, %98, %103, %114 in 0 : vector<4x256xf32>, vector<4x256xf32>, vector<4x256xf32>, vector<4x256xf32>, vector<4x256xf32>, vector<4x256xf32>, vector<4x256xf32>, vector<4x256xf32>, vector<4x256xf32>, vector<4x256xf32>, vector<4x256xf32>, vector<4x256xf32>, vector<4x256xf32>, vector<4x256xf32>, vector<4x256xf32>, vector<4x256xf32> -> vector<64x256xf32>
    %125 = tpu.concatenate %115, %116, %117, %118, %119, %120, %121, %122, %123 in 0 : vector<4x256xf32>, vector<4x256xf32>, vector<4x256xf32>, vector<4x256xf32>, vector<4x256xf32>, vector<4x256xf32>, vector<4x256xf32>, vector<4x256xf32>, vector<4x256xf32> -> vector<36x256xf32>
    %126 = tpu.concatenate %124, %125 in 0 : vector<64x256xf32>, vector<36x256xf32> -> vector<100x256xf32>
    %c0_56 = arith.constant 0 : index
    %c0_57 = arith.constant 0 : index
    %127 = vector.load %arg4[%c0_56, %c0_57] : memref<16x100xf32, #tpu.memory_space<vmem>>, vector<16x100xf32>
    %cst_58 = arith.constant dense<0.000000e+00> : vector<16x256xf32>
    %128 = tpu.matmul %127, %126, %cst_58 {dimension_numbers = #tpu.dot_dimension_numbers<[1], [0], [0], [1], [0, 0, 1, 1], [], []>} : vector<16x100xf32>, vector<100x256xf32>, vector<16x256xf32> -> vector<16x256xf32>
    %c0_59 = arith.constant 0 : index
    %c0_60 = arith.constant 0 : index
    %129 = vector.load %arg5[%c0_59, %c0_60] : memref<16x1xf32, #tpu.memory_space<vmem>>, vector<16x1xf32>
    %130 = vector.broadcast %129 : vector<16x1xf32> to vector<16x256xf32>
    %131 = arith.addf %128, %130 : vector<16x256xf32>
    %cst_61 = arith.constant 0.00999999977 : f32
    %132 = vector.broadcast %cst_61 : f32 to vector<16x256xf32>
    %133 = arith.mulf %132, %131 : vector<16x256xf32>
    %134 = arith.maximumf %131, %133 : vector<16x256xf32>
    %c244_i32_62 = arith.constant 244 : i32
    %135 = tpu.dynamic_rotate %134 by %c244_i32_62 dim 1 : vector<16x256xf32>, i32 -> vector<16x256xf32>
    %c4_i32_63 = arith.constant 4 : i32
    %136 = tpu.dynamic_rotate %134 by %c4_i32_63 dim 1 : vector<16x256xf32>, i32 -> vector<16x256xf32>
    %137 = vector.shape_cast %26 : vector<1x256xi1> to vector<1x256xi1>
    %138 = vector.broadcast %137 : vector<1x256xi1> to vector<16x256xi1>
    %139 = arith.select %138, %135, %136 : vector<16x256xi1>, vector<16x256xf32>
    %c242_i32_64 = arith.constant 242 : i32
    %140 = tpu.dynamic_rotate %134 by %c242_i32_64 dim 1 : vector<16x256xf32>, i32 -> vector<16x256xf32>
    %c2_i32_65 = arith.constant 2 : i32
    %141 = tpu.dynamic_rotate %134 by %c2_i32_65 dim 1 : vector<16x256xf32>, i32 -> vector<16x256xf32>
    %142 = vector.shape_cast %18 : vector<1x256xi1> to vector<1x256xi1>
    %143 = vector.broadcast %142 : vector<1x256xi1> to vector<16x256xi1>
    %144 = arith.select %143, %140, %141 : vector<16x256xi1>, vector<16x256xf32>
    %c254_i32_66 = arith.constant 254 : i32
    %145 = tpu.dynamic_rotate %134 by %c254_i32_66 dim 1 : vector<16x256xf32>, i32 -> vector<16x256xf32>
    %c14_i32_67 = arith.constant 14 : i32
    %146 = tpu.dynamic_rotate %134 by %c14_i32_67 dim 1 : vector<16x256xf32>, i32 -> vector<16x256xf32>
    %147 = vector.shape_cast %24 : vector<1x256xi1> to vector<1x256xi1>
    %148 = vector.broadcast %147 : vector<1x256xi1> to vector<16x256xi1>
    %149 = arith.select %148, %145, %146 : vector<16x256xi1>, vector<16x256xf32>
    %c252_i32_68 = arith.constant 252 : i32
    %150 = tpu.dynamic_rotate %134 by %c252_i32_68 dim 1 : vector<16x256xf32>, i32 -> vector<16x256xf32>
    %c12_i32_69 = arith.constant 12 : i32
    %151 = tpu.dynamic_rotate %134 by %c12_i32_69 dim 1 : vector<16x256xf32>, i32 -> vector<16x256xf32>
    %152 = vector.shape_cast %28 : vector<1x256xi1> to vector<1x256xi1>
    %153 = vector.broadcast %152 : vector<1x256xi1> to vector<16x256xi1>
    %154 = arith.select %153, %150, %151 : vector<16x256xi1>, vector<16x256xf32>
    %c64_i32_70 = arith.constant 64 : i32
    %155 = tpu.dynamic_rotate %139 by %c64_i32_70 dim 1 : vector<16x256xf32>, i32 -> vector<16x256xf32>
    %c64_i32_71 = arith.constant 64 : i32
    %156 = tpu.dynamic_rotate %144 by %c64_i32_71 dim 1 : vector<16x256xf32>, i32 -> vector<16x256xf32>
    %c64_i32_72 = arith.constant 64 : i32
    %157 = tpu.dynamic_rotate %134 by %c64_i32_72 dim 1 : vector<16x256xf32>, i32 -> vector<16x256xf32>
    %c64_i32_73 = arith.constant 64 : i32
    %158 = tpu.dynamic_rotate %149 by %c64_i32_73 dim 1 : vector<16x256xf32>, i32 -> vector<16x256xf32>
    %c64_i32_74 = arith.constant 64 : i32
    %159 = tpu.dynamic_rotate %154 by %c64_i32_74 dim 1 : vector<16x256xf32>, i32 -> vector<16x256xf32>
    %c32_i32_75 = arith.constant 32 : i32
    %160 = tpu.dynamic_rotate %139 by %c32_i32_75 dim 1 : vector<16x256xf32>, i32 -> vector<16x256xf32>
    %c32_i32_76 = arith.constant 32 : i32
    %161 = tpu.dynamic_rotate %144 by %c32_i32_76 dim 1 : vector<16x256xf32>, i32 -> vector<16x256xf32>
    %c32_i32_77 = arith.constant 32 : i32
    %162 = tpu.dynamic_rotate %134 by %c32_i32_77 dim 1 : vector<16x256xf32>, i32 -> vector<16x256xf32>
    %c32_i32_78 = arith.constant 32 : i32
    %163 = tpu.dynamic_rotate %149 by %c32_i32_78 dim 1 : vector<16x256xf32>, i32 -> vector<16x256xf32>
    %c32_i32_79 = arith.constant 32 : i32
    %164 = tpu.dynamic_rotate %154 by %c32_i32_79 dim 1 : vector<16x256xf32>, i32 -> vector<16x256xf32>
    %c224_i32_80 = arith.constant 224 : i32
    %165 = tpu.dynamic_rotate %139 by %c224_i32_80 dim 1 : vector<16x256xf32>, i32 -> vector<16x256xf32>
    %c224_i32_81 = arith.constant 224 : i32
    %166 = tpu.dynamic_rotate %144 by %c224_i32_81 dim 1 : vector<16x256xf32>, i32 -> vector<16x256xf32>
    %c224_i32_82 = arith.constant 224 : i32
    %167 = tpu.dynamic_rotate %134 by %c224_i32_82 dim 1 : vector<16x256xf32>, i32 -> vector<16x256xf32>
    %c224_i32_83 = arith.constant 224 : i32
    %168 = tpu.dynamic_rotate %149 by %c224_i32_83 dim 1 : vector<16x256xf32>, i32 -> vector<16x256xf32>
    %c224_i32_84 = arith.constant 224 : i32
    %169 = tpu.dynamic_rotate %154 by %c224_i32_84 dim 1 : vector<16x256xf32>, i32 -> vector<16x256xf32>
    %c192_i32_85 = arith.constant 192 : i32
    %170 = tpu.dynamic_rotate %139 by %c192_i32_85 dim 1 : vector<16x256xf32>, i32 -> vector<16x256xf32>
    %c192_i32_86 = arith.constant 192 : i32
    %171 = tpu.dynamic_rotate %144 by %c192_i32_86 dim 1 : vector<16x256xf32>, i32 -> vector<16x256xf32>
    %c192_i32_87 = arith.constant 192 : i32
    %172 = tpu.dynamic_rotate %134 by %c192_i32_87 dim 1 : vector<16x256xf32>, i32 -> vector<16x256xf32>
    %c192_i32_88 = arith.constant 192 : i32
    %173 = tpu.dynamic_rotate %149 by %c192_i32_88 dim 1 : vector<16x256xf32>, i32 -> vector<16x256xf32>
    %c192_i32_89 = arith.constant 192 : i32
    %174 = tpu.dynamic_rotate %154 by %c192_i32_89 dim 1 : vector<16x256xf32>, i32 -> vector<16x256xf32>
    %175 = tpu.concatenate %155, %156, %157, %158, %159, %160, %161, %162, %163, %164, %139, %144, %134, %149, %154, %165 in 0 : vector<16x256xf32>, vector<16x256xf32>, vector<16x256xf32>, vector<16x256xf32>, vector<16x256xf32>, vector<16x256xf32>, vector<16x256xf32>, vector<16x256xf32>, vector<16x256xf32>, vector<16x256xf32>, vector<16x256xf32>, vector<16x256xf32>, vector<16x256xf32>, vector<16x256xf32>, vector<16x256xf32>, vector<16x256xf32> -> vector<256x256xf32>
    %176 = tpu.concatenate %166, %167, %168, %169, %170, %171, %172, %173, %174 in 0 : vector<16x256xf32>, vector<16x256xf32>, vector<16x256xf32>, vector<16x256xf32>, vector<16x256xf32>, vector<16x256xf32>, vector<16x256xf32>, vector<16x256xf32>, vector<16x256xf32> -> vector<144x256xf32>
    %177 = tpu.concatenate %175, %176 in 0 : vector<256x256xf32>, vector<144x256xf32> -> vector<400x256xf32>
    %c0_90 = arith.constant 0 : index
    %c0_91 = arith.constant 0 : index
    %178 = vector.load %arg6[%c0_90, %c0_91] : memref<16x400xf32, #tpu.memory_space<vmem>>, vector<16x400xf32>
    %cst_92 = arith.constant dense<0.000000e+00> : vector<16x256xf32>
    %179 = tpu.matmul %178, %177, %cst_92 {dimension_numbers = #tpu.dot_dimension_numbers<[1], [0], [0], [1], [0, 0, 1, 1], [], []>} : vector<16x400xf32>, vector<400x256xf32>, vector<16x256xf32> -> vector<16x256xf32>
    %c0_93 = arith.constant 0 : index
    %c0_94 = arith.constant 0 : index
    %180 = vector.load %arg7[%c0_93, %c0_94] : memref<16x1xf32, #tpu.memory_space<vmem>>, vector<16x1xf32>
    %181 = vector.broadcast %180 : vector<16x1xf32> to vector<16x256xf32>
    %182 = arith.addf %179, %181 : vector<16x256xf32>
    %cst_95 = arith.constant 0.00999999977 : f32
    %183 = vector.broadcast %cst_95 : f32 to vector<16x256xf32>
    %184 = arith.mulf %183, %182 : vector<16x256xf32>
    %185 = arith.maximumf %182, %184 : vector<16x256xf32>
    %c248_i32 = arith.constant 248 : i32
    %186 = tpu.dynamic_rotate %185 by %c248_i32 dim 1 : vector<16x256xf32>, i32 -> vector<16x256xf32>
    %c8_i32_96 = arith.constant 8 : i32
    %187 = tpu.dynamic_rotate %185 by %c8_i32_96 dim 1 : vector<16x256xf32>, i32 -> vector<16x256xf32>
    %188 = vector.shape_cast %30 : vector<1x256xi1> to vector<1x256xi1>
    %189 = vector.broadcast %188 : vector<1x256xi1> to vector<16x256xi1>
    %190 = arith.select %189, %186, %187 : vector<16x256xi1>, vector<16x256xf32>
    %c244_i32_97 = arith.constant 244 : i32
    %191 = tpu.dynamic_rotate %185 by %c244_i32_97 dim 1 : vector<16x256xf32>, i32 -> vector<16x256xf32>
    %c4_i32_98 = arith.constant 4 : i32
    %192 = tpu.dynamic_rotate %185 by %c4_i32_98 dim 1 : vector<16x256xf32>, i32 -> vector<16x256xf32>
    %193 = vector.shape_cast %26 : vector<1x256xi1> to vector<1x256xi1>
    %194 = vector.broadcast %193 : vector<1x256xi1> to vector<16x256xi1>
    %195 = arith.select %194, %191, %192 : vector<16x256xi1>, vector<16x256xf32>
    %c252_i32_99 = arith.constant 252 : i32
    %196 = tpu.dynamic_rotate %185 by %c252_i32_99 dim 1 : vector<16x256xf32>, i32 -> vector<16x256xf32>
    %c12_i32_100 = arith.constant 12 : i32
    %197 = tpu.dynamic_rotate %185 by %c12_i32_100 dim 1 : vector<16x256xf32>, i32 -> vector<16x256xf32>
    %198 = vector.shape_cast %28 : vector<1x256xi1> to vector<1x256xi1>
    %199 = vector.broadcast %198 : vector<1x256xi1> to vector<16x256xi1>
    %200 = arith.select %199, %196, %197 : vector<16x256xi1>, vector<16x256xf32>
    %c248_i32_101 = arith.constant 248 : i32
    %201 = tpu.dynamic_rotate %185 by %c248_i32_101 dim 1 : vector<16x256xf32>, i32 -> vector<16x256xf32>
    %c8_i32_102 = arith.constant 8 : i32
    %202 = tpu.dynamic_rotate %185 by %c8_i32_102 dim 1 : vector<16x256xf32>, i32 -> vector<16x256xf32>
    %203 = vector.shape_cast %30 : vector<1x256xi1> to vector<1x256xi1>
    %204 = vector.broadcast %203 : vector<1x256xi1> to vector<16x256xi1>
    %205 = arith.select %204, %201, %202 : vector<16x256xi1>, vector<16x256xf32>
    %c128_i32 = arith.constant 128 : i32
    %206 = tpu.dynamic_rotate %190 by %c128_i32 dim 1 : vector<16x256xf32>, i32 -> vector<16x256xf32>
    %c128_i32_103 = arith.constant 128 : i32
    %207 = tpu.dynamic_rotate %195 by %c128_i32_103 dim 1 : vector<16x256xf32>, i32 -> vector<16x256xf32>
    %c128_i32_104 = arith.constant 128 : i32
    %208 = tpu.dynamic_rotate %185 by %c128_i32_104 dim 1 : vector<16x256xf32>, i32 -> vector<16x256xf32>
    %c128_i32_105 = arith.constant 128 : i32
    %209 = tpu.dynamic_rotate %200 by %c128_i32_105 dim 1 : vector<16x256xf32>, i32 -> vector<16x256xf32>
    %c128_i32_106 = arith.constant 128 : i32
    %210 = tpu.dynamic_rotate %205 by %c128_i32_106 dim 1 : vector<16x256xf32>, i32 -> vector<16x256xf32>
    %c64_i32_107 = arith.constant 64 : i32
    %211 = tpu.dynamic_rotate %190 by %c64_i32_107 dim 1 : vector<16x256xf32>, i32 -> vector<16x256xf32>
    %c64_i32_108 = arith.constant 64 : i32
    %212 = tpu.dynamic_rotate %195 by %c64_i32_108 dim 1 : vector<16x256xf32>, i32 -> vector<16x256xf32>
    %c64_i32_109 = arith.constant 64 : i32
    %213 = tpu.dynamic_rotate %185 by %c64_i32_109 dim 1 : vector<16x256xf32>, i32 -> vector<16x256xf32>
    %c64_i32_110 = arith.constant 64 : i32
    %214 = tpu.dynamic_rotate %200 by %c64_i32_110 dim 1 : vector<16x256xf32>, i32 -> vector<16x256xf32>
    %c64_i32_111 = arith.constant 64 : i32
    %215 = tpu.dynamic_rotate %205 by %c64_i32_111 dim 1 : vector<16x256xf32>, i32 -> vector<16x256xf32>
    %c192_i32_112 = arith.constant 192 : i32
    %216 = tpu.dynamic_rotate %190 by %c192_i32_112 dim 1 : vector<16x256xf32>, i32 -> vector<16x256xf32>
    %c192_i32_113 = arith.constant 192 : i32
    %217 = tpu.dynamic_rotate %195 by %c192_i32_113 dim 1 : vector<16x256xf32>, i32 -> vector<16x256xf32>
    %c192_i32_114 = arith.constant 192 : i32
    %218 = tpu.dynamic_rotate %185 by %c192_i32_114 dim 1 : vector<16x256xf32>, i32 -> vector<16x256xf32>
    %c192_i32_115 = arith.constant 192 : i32
    %219 = tpu.dynamic_rotate %200 by %c192_i32_115 dim 1 : vector<16x256xf32>, i32 -> vector<16x256xf32>
    %c192_i32_116 = arith.constant 192 : i32
    %220 = tpu.dynamic_rotate %205 by %c192_i32_116 dim 1 : vector<16x256xf32>, i32 -> vector<16x256xf32>
    %c128_i32_117 = arith.constant 128 : i32
    %221 = tpu.dynamic_rotate %190 by %c128_i32_117 dim 1 : vector<16x256xf32>, i32 -> vector<16x256xf32>
    %c128_i32_118 = arith.constant 128 : i32
    %222 = tpu.dynamic_rotate %195 by %c128_i32_118 dim 1 : vector<16x256xf32>, i32 -> vector<16x256xf32>
    %c128_i32_119 = arith.constant 128 : i32
    %223 = tpu.dynamic_rotate %185 by %c128_i32_119 dim 1 : vector<16x256xf32>, i32 -> vector<16x256xf32>
    %c128_i32_120 = arith.constant 128 : i32
    %224 = tpu.dynamic_rotate %200 by %c128_i32_120 dim 1 : vector<16x256xf32>, i32 -> vector<16x256xf32>
    %c128_i32_121 = arith.constant 128 : i32
    %225 = tpu.dynamic_rotate %205 by %c128_i32_121 dim 1 : vector<16x256xf32>, i32 -> vector<16x256xf32>
    %226 = tpu.concatenate %206, %207, %208, %209, %210, %211, %212, %213, %214, %215, %190, %195, %185, %200, %205, %216 in 0 : vector<16x256xf32>, vector<16x256xf32>, vector<16x256xf32>, vector<16x256xf32>, vector<16x256xf32>, vector<16x256xf32>, vector<16x256xf32>, vector<16x256xf32>, vector<16x256xf32>, vector<16x256xf32>, vector<16x256xf32>, vector<16x256xf32>, vector<16x256xf32>, vector<16x256xf32>, vector<16x256xf32>, vector<16x256xf32> -> vector<256x256xf32>
    %227 = tpu.concatenate %217, %218, %219, %220, %221, %222, %223, %224, %225 in 0 : vector<16x256xf32>, vector<16x256xf32>, vector<16x256xf32>, vector<16x256xf32>, vector<16x256xf32>, vector<16x256xf32>, vector<16x256xf32>, vector<16x256xf32>, vector<16x256xf32> -> vector<144x256xf32>
    %228 = tpu.concatenate %226, %227 in 0 : vector<256x256xf32>, vector<144x256xf32> -> vector<400x256xf32>
    %c0_122 = arith.constant 0 : index
    %c0_123 = arith.constant 0 : index
    %229 = vector.load %arg8[%c0_122, %c0_123] : memref<16x400xf32, #tpu.memory_space<vmem>>, vector<16x400xf32>
    %cst_124 = arith.constant dense<0.000000e+00> : vector<16x256xf32>
    %230 = tpu.matmul %229, %228, %cst_124 {dimension_numbers = #tpu.dot_dimension_numbers<[1], [0], [0], [1], [0, 0, 1, 1], [], []>} : vector<16x400xf32>, vector<400x256xf32>, vector<16x256xf32> -> vector<16x256xf32>
    %c0_125 = arith.constant 0 : index
    %c0_126 = arith.constant 0 : index
    %231 = vector.load %arg9[%c0_125, %c0_126] : memref<16x1xf32, #tpu.memory_space<vmem>>, vector<16x1xf32>
    %232 = vector.broadcast %231 : vector<16x1xf32> to vector<16x256xf32>
    %233 = arith.addf %230, %232 : vector<16x256xf32>
    %cst_127 = arith.constant 0.00999999977 : f32
    %234 = vector.broadcast %cst_127 : f32 to vector<16x256xf32>
    %235 = arith.mulf %234, %233 : vector<16x256xf32>
    %236 = arith.maximumf %233, %235 : vector<16x256xf32>
    %c248_i32_128 = arith.constant 248 : i32
    %237 = tpu.dynamic_rotate %236 by %c248_i32_128 dim 1 : vector<16x256xf32>, i32 -> vector<16x256xf32>
    %c8_i32_129 = arith.constant 8 : i32
    %238 = tpu.dynamic_rotate %236 by %c8_i32_129 dim 1 : vector<16x256xf32>, i32 -> vector<16x256xf32>
    %239 = vector.shape_cast %30 : vector<1x256xi1> to vector<1x256xi1>
    %240 = vector.broadcast %239 : vector<1x256xi1> to vector<16x256xi1>
    %241 = arith.select %240, %237, %238 : vector<16x256xi1>, vector<16x256xf32>
    %c244_i32_130 = arith.constant 244 : i32
    %242 = tpu.dynamic_rotate %236 by %c244_i32_130 dim 1 : vector<16x256xf32>, i32 -> vector<16x256xf32>
    %c4_i32_131 = arith.constant 4 : i32
    %243 = tpu.dynamic_rotate %236 by %c4_i32_131 dim 1 : vector<16x256xf32>, i32 -> vector<16x256xf32>
    %244 = vector.shape_cast %26 : vector<1x256xi1> to vector<1x256xi1>
    %245 = vector.broadcast %244 : vector<1x256xi1> to vector<16x256xi1>
    %246 = arith.select %245, %242, %243 : vector<16x256xi1>, vector<16x256xf32>
    %c252_i32_132 = arith.constant 252 : i32
    %247 = tpu.dynamic_rotate %236 by %c252_i32_132 dim 1 : vector<16x256xf32>, i32 -> vector<16x256xf32>
    %c12_i32_133 = arith.constant 12 : i32
    %248 = tpu.dynamic_rotate %236 by %c12_i32_133 dim 1 : vector<16x256xf32>, i32 -> vector<16x256xf32>
    %249 = vector.shape_cast %28 : vector<1x256xi1> to vector<1x256xi1>
    %250 = vector.broadcast %249 : vector<1x256xi1> to vector<16x256xi1>
    %251 = arith.select %250, %247, %248 : vector<16x256xi1>, vector<16x256xf32>
    %c248_i32_134 = arith.constant 248 : i32
    %252 = tpu.dynamic_rotate %236 by %c248_i32_134 dim 1 : vector<16x256xf32>, i32 -> vector<16x256xf32>
    %c8_i32_135 = arith.constant 8 : i32
    %253 = tpu.dynamic_rotate %236 by %c8_i32_135 dim 1 : vector<16x256xf32>, i32 -> vector<16x256xf32>
    %254 = vector.shape_cast %30 : vector<1x256xi1> to vector<1x256xi1>
    %255 = vector.broadcast %254 : vector<1x256xi1> to vector<16x256xi1>
    %256 = arith.select %255, %252, %253 : vector<16x256xi1>, vector<16x256xf32>
    %c128_i32_136 = arith.constant 128 : i32
    %257 = tpu.dynamic_rotate %241 by %c128_i32_136 dim 1 : vector<16x256xf32>, i32 -> vector<16x256xf32>
    %c128_i32_137 = arith.constant 128 : i32
    %258 = tpu.dynamic_rotate %246 by %c128_i32_137 dim 1 : vector<16x256xf32>, i32 -> vector<16x256xf32>
    %c128_i32_138 = arith.constant 128 : i32
    %259 = tpu.dynamic_rotate %236 by %c128_i32_138 dim 1 : vector<16x256xf32>, i32 -> vector<16x256xf32>
    %c128_i32_139 = arith.constant 128 : i32
    %260 = tpu.dynamic_rotate %251 by %c128_i32_139 dim 1 : vector<16x256xf32>, i32 -> vector<16x256xf32>
    %c128_i32_140 = arith.constant 128 : i32
    %261 = tpu.dynamic_rotate %256 by %c128_i32_140 dim 1 : vector<16x256xf32>, i32 -> vector<16x256xf32>
    %c64_i32_141 = arith.constant 64 : i32
    %262 = tpu.dynamic_rotate %241 by %c64_i32_141 dim 1 : vector<16x256xf32>, i32 -> vector<16x256xf32>
    %c64_i32_142 = arith.constant 64 : i32
    %263 = tpu.dynamic_rotate %246 by %c64_i32_142 dim 1 : vector<16x256xf32>, i32 -> vector<16x256xf32>
    %c64_i32_143 = arith.constant 64 : i32
    %264 = tpu.dynamic_rotate %236 by %c64_i32_143 dim 1 : vector<16x256xf32>, i32 -> vector<16x256xf32>
    %c64_i32_144 = arith.constant 64 : i32
    %265 = tpu.dynamic_rotate %251 by %c64_i32_144 dim 1 : vector<16x256xf32>, i32 -> vector<16x256xf32>
    %c64_i32_145 = arith.constant 64 : i32
    %266 = tpu.dynamic_rotate %256 by %c64_i32_145 dim 1 : vector<16x256xf32>, i32 -> vector<16x256xf32>
    %c192_i32_146 = arith.constant 192 : i32
    %267 = tpu.dynamic_rotate %241 by %c192_i32_146 dim 1 : vector<16x256xf32>, i32 -> vector<16x256xf32>
    %c192_i32_147 = arith.constant 192 : i32
    %268 = tpu.dynamic_rotate %246 by %c192_i32_147 dim 1 : vector<16x256xf32>, i32 -> vector<16x256xf32>
    %c192_i32_148 = arith.constant 192 : i32
    %269 = tpu.dynamic_rotate %236 by %c192_i32_148 dim 1 : vector<16x256xf32>, i32 -> vector<16x256xf32>
    %c192_i32_149 = arith.constant 192 : i32
    %270 = tpu.dynamic_rotate %251 by %c192_i32_149 dim 1 : vector<16x256xf32>, i32 -> vector<16x256xf32>
    %c192_i32_150 = arith.constant 192 : i32
    %271 = tpu.dynamic_rotate %256 by %c192_i32_150 dim 1 : vector<16x256xf32>, i32 -> vector<16x256xf32>
    %c128_i32_151 = arith.constant 128 : i32
    %272 = tpu.dynamic_rotate %241 by %c128_i32_151 dim 1 : vector<16x256xf32>, i32 -> vector<16x256xf32>
    %c128_i32_152 = arith.constant 128 : i32
    %273 = tpu.dynamic_rotate %246 by %c128_i32_152 dim 1 : vector<16x256xf32>, i32 -> vector<16x256xf32>
    %c128_i32_153 = arith.constant 128 : i32
    %274 = tpu.dynamic_rotate %236 by %c128_i32_153 dim 1 : vector<16x256xf32>, i32 -> vector<16x256xf32>
    %c128_i32_154 = arith.constant 128 : i32
    %275 = tpu.dynamic_rotate %251 by %c128_i32_154 dim 1 : vector<16x256xf32>, i32 -> vector<16x256xf32>
    %c128_i32_155 = arith.constant 128 : i32
    %276 = tpu.dynamic_rotate %256 by %c128_i32_155 dim 1 : vector<16x256xf32>, i32 -> vector<16x256xf32>
    %277 = tpu.concatenate %257, %258, %259, %260, %261, %262, %263, %264, %265, %266, %241, %246, %236, %251, %256, %267 in 0 : vector<16x256xf32>, vector<16x256xf32>, vector<16x256xf32>, vector<16x256xf32>, vector<16x256xf32>, vector<16x256xf32>, vector<16x256xf32>, vector<16x256xf32>, vector<16x256xf32>, vector<16x256xf32>, vector<16x256xf32>, vector<16x256xf32>, vector<16x256xf32>, vector<16x256xf32>, vector<16x256xf32>, vector<16x256xf32> -> vector<256x256xf32>
    %278 = tpu.concatenate %268, %269, %270, %271, %272, %273, %274, %275, %276 in 0 : vector<16x256xf32>, vector<16x256xf32>, vector<16x256xf32>, vector<16x256xf32>, vector<16x256xf32>, vector<16x256xf32>, vector<16x256xf32>, vector<16x256xf32>, vector<16x256xf32> -> vector<144x256xf32>
    %279 = tpu.concatenate %277, %278 in 0 : vector<256x256xf32>, vector<144x256xf32> -> vector<400x256xf32>
    %c0_156 = arith.constant 0 : index
    %c0_157 = arith.constant 0 : index
    %280 = vector.load %arg10[%c0_156, %c0_157] : memref<16x400xf32, #tpu.memory_space<vmem>>, vector<16x400xf32>
    %cst_158 = arith.constant dense<0.000000e+00> : vector<16x256xf32>
    %281 = tpu.matmul %280, %279, %cst_158 {dimension_numbers = #tpu.dot_dimension_numbers<[1], [0], [0], [1], [0, 0, 1, 1], [], []>} : vector<16x400xf32>, vector<400x256xf32>, vector<16x256xf32> -> vector<16x256xf32>
    %c0_159 = arith.constant 0 : index
    %c0_160 = arith.constant 0 : index
    %282 = vector.load %arg11[%c0_159, %c0_160] : memref<16x1xf32, #tpu.memory_space<vmem>>, vector<16x1xf32>
    %283 = vector.broadcast %282 : vector<16x1xf32> to vector<16x256xf32>
    %284 = arith.addf %281, %283 : vector<16x256xf32>
    %cst_161 = arith.constant 0.00999999977 : f32
    %285 = vector.broadcast %cst_161 : f32 to vector<16x256xf32>
    %286 = arith.mulf %285, %284 : vector<16x256xf32>
    %287 = arith.maximumf %284, %286 : vector<16x256xf32>
    %c248_i32_162 = arith.constant 248 : i32
    %288 = tpu.dynamic_rotate %287 by %c248_i32_162 dim 1 : vector<16x256xf32>, i32 -> vector<16x256xf32>
    %c8_i32_163 = arith.constant 8 : i32
    %289 = tpu.dynamic_rotate %287 by %c8_i32_163 dim 1 : vector<16x256xf32>, i32 -> vector<16x256xf32>
    %290 = vector.shape_cast %30 : vector<1x256xi1> to vector<1x256xi1>
    %291 = vector.broadcast %290 : vector<1x256xi1> to vector<16x256xi1>
    %292 = arith.select %291, %288, %289 : vector<16x256xi1>, vector<16x256xf32>
    %c248_i32_164 = arith.constant 248 : i32
    %293 = tpu.dynamic_rotate %287 by %c248_i32_164 dim 1 : vector<16x256xf32>, i32 -> vector<16x256xf32>
    %c8_i32_165 = arith.constant 8 : i32
    %294 = tpu.dynamic_rotate %287 by %c8_i32_165 dim 1 : vector<16x256xf32>, i32 -> vector<16x256xf32>
    %295 = vector.shape_cast %30 : vector<1x256xi1> to vector<1x256xi1>
    %296 = vector.broadcast %295 : vector<1x256xi1> to vector<16x256xi1>
    %297 = arith.select %296, %293, %294 : vector<16x256xi1>, vector<16x256xf32>
    %c128_i32_166 = arith.constant 128 : i32
    %298 = tpu.dynamic_rotate %287 by %c128_i32_166 dim 1 : vector<16x256xf32>, i32 -> vector<16x256xf32>
    %c128_i32_167 = arith.constant 128 : i32
    %299 = tpu.dynamic_rotate %292 by %c128_i32_167 dim 1 : vector<16x256xf32>, i32 -> vector<16x256xf32>
    %c128_i32_168 = arith.constant 128 : i32
    %300 = tpu.dynamic_rotate %287 by %c128_i32_168 dim 1 : vector<16x256xf32>, i32 -> vector<16x256xf32>
    %c128_i32_169 = arith.constant 128 : i32
    %301 = tpu.dynamic_rotate %297 by %c128_i32_169 dim 1 : vector<16x256xf32>, i32 -> vector<16x256xf32>
    %c128_i32_170 = arith.constant 128 : i32
    %302 = tpu.dynamic_rotate %287 by %c128_i32_170 dim 1 : vector<16x256xf32>, i32 -> vector<16x256xf32>
    %c128_i32_171 = arith.constant 128 : i32
    %303 = tpu.dynamic_rotate %287 by %c128_i32_171 dim 1 : vector<16x256xf32>, i32 -> vector<16x256xf32>
    %c128_i32_172 = arith.constant 128 : i32
    %304 = tpu.dynamic_rotate %292 by %c128_i32_172 dim 1 : vector<16x256xf32>, i32 -> vector<16x256xf32>
    %c128_i32_173 = arith.constant 128 : i32
    %305 = tpu.dynamic_rotate %287 by %c128_i32_173 dim 1 : vector<16x256xf32>, i32 -> vector<16x256xf32>
    %c128_i32_174 = arith.constant 128 : i32
    %306 = tpu.dynamic_rotate %297 by %c128_i32_174 dim 1 : vector<16x256xf32>, i32 -> vector<16x256xf32>
    %c128_i32_175 = arith.constant 128 : i32
    %307 = tpu.dynamic_rotate %287 by %c128_i32_175 dim 1 : vector<16x256xf32>, i32 -> vector<16x256xf32>
    %308 = tpu.concatenate %287, %292, %287, %297, %287, %298, %299, %300, %301, %302, %287, %292, %287, %297, %287, %303 in 0 : vector<16x256xf32>, vector<16x256xf32>, vector<16x256xf32>, vector<16x256xf32>, vector<16x256xf32>, vector<16x256xf32>, vector<16x256xf32>, vector<16x256xf32>, vector<16x256xf32>, vector<16x256xf32>, vector<16x256xf32>, vector<16x256xf32>, vector<16x256xf32>, vector<16x256xf32>, vector<16x256xf32>, vector<16x256xf32> -> vector<256x256xf32>
    %309 = tpu.concatenate %304, %305, %306, %307, %287, %292, %287, %297, %287 in 0 : vector<16x256xf32>, vector<16x256xf32>, vector<16x256xf32>, vector<16x256xf32>, vector<16x256xf32>, vector<16x256xf32>, vector<16x256xf32>, vector<16x256xf32>, vector<16x256xf32> -> vector<144x256xf32>
    %310 = tpu.concatenate %308, %309 in 0 : vector<256x256xf32>, vector<144x256xf32> -> vector<400x256xf32>
    %c0_176 = arith.constant 0 : index
    %c0_177 = arith.constant 0 : index
    %311 = vector.load %arg12[%c0_176, %c0_177] : memref<8x400xf32, #tpu.memory_space<vmem>>, vector<8x400xf32>
    %cst_178 = arith.constant dense<0.000000e+00> : vector<8x256xf32>
    %312 = tpu.matmul %311, %310, %cst_178 {dimension_numbers = #tpu.dot_dimension_numbers<[1], [0], [0], [1], [0, 0, 1, 1], [], []>} : vector<8x400xf32>, vector<400x256xf32>, vector<8x256xf32> -> vector<8x256xf32>
    %c0_179 = arith.constant 0 : index
    %c0_180 = arith.constant 0 : index
    %313 = vector.load %arg13[%c0_179, %c0_180] : memref<8x1xf32, #tpu.memory_space<vmem>>, vector<8x1xf32>
    %314 = vector.broadcast %313 : vector<8x1xf32> to vector<8x256xf32>
    %315 = arith.addf %312, %314 : vector<8x256xf32>
    %cst_181 = arith.constant 0.00999999977 : f32
    %316 = vector.broadcast %cst_181 : f32 to vector<8x256xf32>
    %317 = arith.mulf %316, %315 : vector<8x256xf32>
    %318 = arith.maximumf %315, %317 : vector<8x256xf32>
    %319 = vector.shape_cast %318 : vector<8x256xf32> to vector<1x8x256xf32>
    %c0_182 = arith.constant 0 : index
    %c0_183 = arith.constant 0 : index
    %c0_184 = arith.constant 0 : index
    %320 = vector.load %arg14[%c0_182, %c0_183, %c0_184] : memref<1x8x256xf32, #tpu.memory_space<vmem>>, vector<1x8x256xf32>
    tpu.vector_store %arg14[%c0_182, %c0_183, %c0_184], %319 {strides = array<i32>} : memref<1x8x256xf32, #tpu.memory_space<vmem>>, vector<1x8x256xf32>,
    return
  }
  func.func @transform_0(%arg0: i32) -> (i32, i32, i32) {
    %c0_i32 = arith.constant 0 : i32
    %c0_i32_0 = arith.constant 0 : i32
    %c0_i32_1 = arith.constant 0 : i32
    return %arg0, %c0_i32, %c0_i32_0 : i32, i32, i32
  }
  func.func @transform_1(%arg0: i32) -> (i32, i32) {
    %c0_i32 = arith.constant 0 : i32
    %c0_i32_0 = arith.constant 0 : i32
    %c0_i32_1 = arith.constant 0 : i32
    return %c0_i32, %c0_i32_0 : i32, i32
  }
  func.func @transform_2(%arg0: i32) -> (i32, i32) {
    %c0_i32 = arith.constant 0 : i32
    %c0_i32_0 = arith.constant 0 : i32
    %c0_i32_1 = arith.constant 0 : i32
    return %c0_i32, %c0_i32_0 : i32, i32
  }
  func.func @transform_3(%arg0: i32) -> (i32, i32) {
    %c0_i32 = arith.constant 0 : i32
    %c0_i32_0 = arith.constant 0 : i32
    %c0_i32_1 = arith.constant 0 : i32
    return %c0_i32, %c0_i32_0 : i32, i32
  }
  func.func @transform_4(%arg0: i32) -> (i32, i32) {
    %c0_i32 = arith.constant 0 : i32
    %c0_i32_0 = arith.constant 0 : i32
    %c0_i32_1 = arith.constant 0 : i32
    return %c0_i32, %c0_i32_0 : i32, i32
  }
  func.func @transform_5(%arg0: i32) -> (i32, i32) {
    %c0_i32 = arith.constant 0 : i32
    %c0_i32_0 = arith.constant 0 : i32
    %c0_i32_1 = arith.constant 0 : i32
    return %c0_i32, %c0_i32_0 : i32, i32
  }
  func.func @transform_6(%arg0: i32) -> (i32, i32) {
    %c0_i32 = arith.constant 0 : i32
    %c0_i32_0 = arith.constant 0 : i32
    %c0_i32_1 = arith.constant 0 : i32
    return %c0_i32, %c0_i32_0 : i32, i32
  }
  func.func @transform_7(%arg0: i32) -> (i32, i32) {
    %c0_i32 = arith.constant 0 : i32
    %c0_i32_0 = arith.constant 0 : i32
    %c0_i32_1 = arith.constant 0 : i32
    return %c0_i32, %c0_i32_0 : i32, i32
  }
  func.func @transform_8(%arg0: i32) -> (i32, i32) {
    %c0_i32 = arith.constant 0 : i32
    %c0_i32_0 = arith.constant 0 : i32
    %c0_i32_1 = arith.constant 0 : i32
    return %c0_i32, %c0_i32_0 : i32, i32
  }
  func.func @transform_9(%arg0: i32) -> (i32, i32) {
    %c0_i32 = arith.constant 0 : i32
    %c0_i32_0 = arith.constant 0 : i32
    %c0_i32_1 = arith.constant 0 : i32
    return %c0_i32, %c0_i32_0 : i32, i32
  }
  func.func @transform_10(%arg0: i32) -> (i32, i32) {
    %c0_i32 = arith.constant 0 : i32
    %c0_i32_0 = arith.constant 0 : i32
    %c0_i32_1 = arith.constant 0 : i32
    return %c0_i32, %c0_i32_0 : i32, i32
  }
  func.func @transform_11(%arg0: i32) -> (i32, i32) {
    %c0_i32 = arith.constant 0 : i32
    %c0_i32_0 = arith.constant 0 : i32
    %c0_i32_1 = arith.constant 0 : i32
    return %c0_i32, %c0_i32_0 : i32, i32
  }
  func.func @transform_12(%arg0: i32) -> (i32, i32) {
    %c0_i32 = arith.constant 0 : i32
    %c0_i32_0 = arith.constant 0 : i32
    %c0_i32_1 = arith.constant 0 : i32
    return %c0_i32, %c0_i32_0 : i32, i32
  }
  func.func @transform_13(%arg0: i32) -> (i32, i32, i32) {
    %c0_i32 = arith.constant 0 : i32
    %c0_i32_0 = arith.constant 0 : i32
    %c0_i32_1 = arith.constant 0 : i32
    return %arg0, %c0_i32, %c0_i32_0 : i32, i32, i32
  }
}

</mosaic_0001>

<bundles_post_ra>
// kernel: cnn_encoder_forward.1
= control target key start
LH: loop header
LB: loop body
LE: loop exit
PB: predicated region body
PF: predicated region fallthrough
CT: control target
= control target key end

     0   :  { %18 = vsyncpa [#allocation3], 0  ;;  %s3986_s25 = smov 0   ;;  %s5586_s0 = inlined_call_operand.vmem [shape: f32[2,4,256], index: 0, kind: input, shape index: {}]   ;;  %s5587_s1 = inlined_call_operand.vmem [shape: f32[4,100], index: 1, kind: input, shape index: {}]   ;;  %s5588_s2 = inlined_call_operand.vmem [shape: f32[4,1], index: 2, kind: input, shape index: {}]   ;;  %s5589_s3 = inlined_call_operand.hbm [shape: f32[16,100], index: 3, kind: input, shape index: {}]   ;;  %s5590_s4 = inlined_call_operand.vmem [shape: f32[16,1], index: 4, kind: input, shape index: {}]   ;;  %s5591_s5 = inlined_call_operand.vmem [shape: f32[16,400], index: 5, kind: input, shape index: {}]   ;;  %s5592_s6 = inlined_call_operand.vmem [shape: f32[16,1], index: 6, kind: input, shape index: {}]   ;;  %s5593_s7 = inlined_call_operand.vmem [shape: f32[16,400], index: 7, kind: input, shape index: {}]   ;;  %s5594_s8 = inlined_call_operand.vmem [shape: f32[16,1], index: 8, kind: input, shape index: {}]   ;;  %s5595_s9 = inlined_call_operand.vmem [shape: f32[16,400], index: 9, kind: input, shape index: {}]   ;;  %s5596_s10 = inlined_call_operand.vmem [shape: f32[16,1], index: 10, kind: input, shape index: {}]   ;;  %s5597_s11 = inlined_call_operand.vmem [shape: f32[8,400], index: 11, kind: input, shape index: {}]   ;;  %s5598_s12 = inlined_call_operand.vmem [shape: f32[8,1], index: 12, kind: input, shape index: {}]   ;;  %s5599_s13 = inlined_call_operand.vmem [shape: f32[2,8,256], index: 13, kind: output, shape index: {}]  }
   0x1 LB: > { %s3992_s26 = sadd.s32 4294967295, %s3890_s25   ;;  %p2629_p0 = scmp.ge.s32.totalorder %s3890_s25, 1  ;;  %s3890_s25 = sphi %s3986_s25, %s24_s25  }
   0x2   : > { %p333_p1 = scmp.lt.s32.totalorder %s3890_s25, 3  ;;  %s3892_s27 = smov [#allocation2]  }
   0x3   : > { %s351_s28 = sshll.u32 %s3892_s27, 4  ;;  %p5600_p3 = scmp.eq.s32.totalorder %s3992_s26, 0  ;;  %s352_s28 = int_to_ptr.vmem [resolvable:$true] %s351_s28 }
   0x4   : > { %p3996_p2 = pnand %p2629_p0, %p333_p1  ;;  %s3852_s16 = scalar_lea.hbm %s5589_s3, 256 }
   0x5   : > { %p3853_p6 = scmp.ne.s32.totalorder %s5589_s3, %s3852_s16  ;;  %p3859_p10 = scmp.lt.u32.totalorder %s3852_s16, %s5589_s3 }
   0x6   : > { %s5607_s29 = scalar_select %p3996_p2, 1, 0 }
   0x7   : > { %p3136_p4 = pneg %p3996_p2 }
   0x9   : > { %p4005_p5 = pnand %p5600_p3, %p3136_p4 }
   0xb   : > { %p3854_p7 = pneg %p4005_p5 }
   0xd   : > { %p3855_p8 = pnand %p3854_p7, %p3853_p6 }
   0xf   : > { %p3856_p9 = pneg %p3855_p8 }
  0x11   : > { %p3861_p11 = pnand %p3859_p10, %p3856_p9 }
  0x13   : > { %3864 = shalt.err (!%p3861_p11)
}
  0x14   : > { %s3865_s21 = scalar_lea.vmem %s352_s28, 256  ;;  %p3873_p1 = scmp.lt.s32.totalorder %s352_s28, %s352_s28 }
  0x15   : > { %p3866_p12 = scmp.ne.s32.totalorder %s352_s28, %s3865_s21  ;;  %p3874_p4 = scmp.lt.s32.totalorder %s3865_s21, %s3865_s21 }
  0x17   : > { %p3868_p13 = pnand %p3866_p12, %p3854_p7  ;;  %p3875_p3 = por %p3874_p4, %p3873_p1 }
  0x19   : > { %p3869_p0 = pneg %p3868_p13 }
  0x1b   : > { %p3876_p2 = pnand %p3875_p3, %p3869_p0 }
  0x1d   : > { %3879 = shalt.err (!%p3876_p2)
}
  0x1e   : > { %s3893_s22 = smov 128   ;;  %s3894_s23 = smov 8  }
  0x1f   : > { %3139 = dma.hbm_to_vmem [thread:$0]  (!%p4005_p5), %s5589_s3, 256, %s352_s28, [#allocation3], %s3893_s22, %s3893_s22, %s3894_s23  }
  0x20   : > { %p5609_p6 = scmp.ne.s32.totalorder %s5607_s29, 0 }
  0x21   : > { %p5610_p8 = scmp.eq.s32.totalorder (!%p5609_p6), %s3992_s26, 0 }
  0x22   : > { %402 = sbr.rel (%p5609_p6) target bundleno = 3203 (0xc83), region = 72 }
  0x29   : > { %3885 = dma.done.wait (%p5610_p8), [#allocation3], 256   ;;  %p5611_p7 = pmov %p5610_p8 }
  0x2a   : > { %p446_p2 = scmp.lt.s32.totalorder %s3992_s26, 1  ;;  %s3895_s29 = smov 127   ;;  %v456_v3 = vlaneseq  ;;  %vm753_vm13 = vcmask 1043456   ;;  %v3907_v62 = vmov 0.0   ;;  %v803_v63 = vld [vmem:[%s5588_s2] sm:$0xf] }
  0x2b   : > { %3887 = vsyncadd (%p5611_p7), [#allocation3], 4294967040  ;;  %s3896_s16 = smov 113   ;;  %s3897_s17 = smov 15   ;;  %883 = vmatprep.mubr.f32.mxu0 %v3907_v62  ;;  %1223 = vmatprep.mubr.f32.mxu1 %v3907_v62 }
  0x2c   : > { %s5629_s26 = smov (!%p446_p2, %s3992_s26), 1  ;;  %s3898_s18 = smov 1   ;;  %v4069_v4 = vand.u32 127, %v456_v3  ;;  %v3908_v3 = vmov 0  }
  0x2d   : > { %s2654_s30 = sshll.u32 %s5629_s26, 3  ;;  %s3899_s19 = smov 2   ;;  %3299 = vset.pattern.permute.xlu1 %v3908_v3  ;;  %3400 = vset.pattern.permute.xlu0 %v3908_v3 }
  0x2e   : > { %s450_s28 = scalar_lea.vmem %s5586_s0, %s2654_s30  ;;  %s3900_s20 = smov 114   ;;  %v458_v5 = vadd.s32 128, %v4069_v4  ;;  %v4073_v6 = vand.u32 15, %v4069_v4  ;;  %vm545_vm0 = vcmp.lt.s32.totalorder %v4069_v4, 127  ;;  %vm525_vm1 = vcmp.lt.s32.totalorder %v4069_v4, 113 }
  0x2f   : > { %v4039_v0 = vld [vmem:[%s450_s28] sm:$0xff]  ;;  %s3901_s21 = smov 126   ;;  %s3902_s22 = smov 14   ;;  %vm552_vm2 = vcmp.lt.s32.totalorder %v4069_v4, 15  ;;  %vm532_vm3 = vcmp.lt.s32.totalorder %v4069_v4, 1  ;;  %vm512_vm4 = vcmp.lt.s32.totalorder %v4069_v4, 2 }
  0x30   : > { %v4043_v1 = vcombine.high %v4039_v0, %v4039_v0  ;;  %s3903_s23 = smov 32   ;;  %s3904_s24 = smov 16   ;;  %v4075_v9 = vand.u32 15, %v458_v5  ;;  %vm505_vm5 = vcmp.lt.s32.totalorder %v4069_v4, 114  ;;  %vm487_vm6 = vcmp.lt.s32.totalorder %v4073_v6, 15 }
  0x31   : > { %vm485_vm7 = vcmp.lt.s32.totalorder %v4073_v6, 1  ;;  %vm483_vm10 = vcmp.lt.s32.totalorder %v4073_v6, 2  ;;  %vm5604_vm12 = vcmp.lt.s32.totalorder %v4069_v4, 14  ;;  %vm5605_vm14 = vcmp.lt.s32.totalorder %v4069_v4, 126  ;;  %s3905_s27 = smov 112   ;;  %s3906_s30 = smov 96  }
  0x32   : > { %v4047_v2 = vpack.i.bf16 %v4043_v1, %v4039_v0  ;;  %vm488_vm8 = vcmp.lt.s32.totalorder %v4075_v9, 15  ;;  %vm486_vm9 = vcmp.lt.s32.totalorder %v4075_v9, 1  ;;  %vm484_vm11 = vcmp.lt.s32.totalorder %v4075_v9, 2 }
  0x33   : > { %vm5602_vm15 = vcmp.lt.s32.totalorder %v4073_v6, 14 }
  0x34   : > { %3185 = vrot.lane.b32.xlu1 %v4047_v2, %s3895_s29  ;;  %3175 = vrot.lane.b32.xlu0 %v4047_v2, %s3896_s16  ;;  %s3909_s16 = smov 124  }
  0x38   : > { %3190 = vrot.lane.b32.xlu1 %v4047_v2, %s3897_s17  ;;  %3180 = vrot.lane.b32.xlu0 %v4047_v2, %s3898_s18  ;;  %s3910_s17 = smov 4   ;;  %s3911_s18 = smov 116  }
  0x3c   : > { %3200 = vrot.lane.b32.xlu1 %v4047_v2, %s3899_s19  ;;  %3195 = vrot.lane.b32.xlu0 %v4047_v2, %s3900_s20 }
  0x40   : > { %563 = vrot.lane.b32.xlu1 %v4043_v1, %s3901_s21  ;;  %561 = vrot.lane.b32.xlu0 %v4039_v0, %s3901_s21 }
  0x44   : > { %570 = vrot.lane.b32.xlu1 %v4043_v1, %s3902_s22  ;;  %568 = vrot.lane.b32.xlu0 %v4039_v0, %s3902_s22 }
  0x48   : > { %3205 = vrot.lane.b32.xlu1 %v4047_v2, %s3903_s23 }
  0x4c   : > { %3210 = vrot.lane.b32.xlu1 %v4047_v2, %s3904_s24 }
  0xa6   : > { %v3186_v7 = vpop.permute.xlu1 %3185  ;;  %v3176_v8 = vpop.permute.xlu0 %3175 }
  0xa7   : > { %v3188_v10 = vunpack.i.h.bf16 %v3186_v7  ;;  %v3187_v11 = vunpack.i.l.bf16 %v3186_v7  ;;  %v3178_v12 = vunpack.i.h.bf16 %v3176_v8  ;;  %v3177_v13 = vunpack.i.l.bf16 %v3176_v8 }
  0xa9   : > { %v546_v20 = vsel %vm545_vm0, %v3187_v11, %v3188_v10  ;;  %v547_v21 = vsel %vm545_vm0, %v3188_v10, %v3187_v11  ;;  %v526_v22 = vsel %vm525_vm1, %v3177_v13, %v3178_v12  ;;  %v527_v23 = vsel %vm525_vm1, %v3178_v12, %v3177_v13 }
  0xaa   : > { %v3191_v14 = vpop.permute.xlu1 %3190  ;;  %v3181_v15 = vpop.permute.xlu0 %3180  ;;  %vm5603_vm0 = vcmp.lt.s32.totalorder %v4075_v9, 14  ;;  %vm585_vm1 = vcmp.lt.s32.totalorder %v4069_v4, 32 }
  0xab   : > { %v3193_v16 = vunpack.i.h.bf16 %v3191_v14  ;;  %v3192_v17 = vunpack.i.l.bf16 %v3191_v14  ;;  %v3183_v18 = vunpack.i.h.bf16 %v3181_v15  ;;  %v3182_v19 = vunpack.i.l.bf16 %v3181_v15 }
  0xad   : > { %v553_v24 = vsel %vm552_vm2, %v3192_v17, %v3193_v16  ;;  %v554_v25 = vsel %vm552_vm2, %v3193_v16, %v3192_v17  ;;  %v533_v26 = vsel %vm532_vm3, %v3182_v19, %v3183_v18  ;;  %v534_v27 = vsel %vm532_vm3, %v3183_v18, %v3182_v19 }
  0xae   : > { %v3201_v28 = vpop.permute.xlu1 %3200  ;;  %v3196_v29 = vpop.permute.xlu0 %3195  ;;  %v4107_v30 = vsel %vm487_vm6, %v546_v20, %v554_v25  ;;  %v4111_v31 = vsel %vm488_vm8, %v547_v21, %v553_v24  ;;  %v539_v32 = vsel %vm485_vm7, %v526_v22, %v534_v27  ;;  %v540_v33 = vsel %vm486_vm9, %v527_v23, %v533_v26 }
  0xaf   : > { %v3203_v34 = vunpack.i.h.bf16 %v3201_v28  ;;  %v3202_v35 = vunpack.i.l.bf16 %v3201_v28  ;;  %v3198_v36 = vunpack.i.h.bf16 %v3196_v29  ;;  %v3197_v37 = vunpack.i.l.bf16 %v3196_v29 }
  0xb0   : > { %v3219_v38 = vpack.i.bf16 %v4111_v31, %v4107_v30  ;;  %v3214_v39 = vpack.i.bf16 %v540_v33, %v539_v32  ;;  %v738_v49 = vrot.slane %v540_v33, 4  ;;  %v737_v51 = vrot.slane %v539_v32, 4 }
  0xb1   : > { %v513_v40 = vsel %vm512_vm4, %v3202_v35, %v3203_v34  ;;  %v514_v41 = vsel %vm512_vm4, %v3203_v34, %v3202_v35  ;;  %v506_v42 = vsel %vm505_vm5, %v3197_v37, %v3198_v36  ;;  %v507_v43 = vsel %vm505_vm5, %v3198_v36, %v3197_v37 }
  0xb2   : > { %3220 = vrot.lane.b32.xlu1 %v3219_v38, %s3903_s23  ;;  %3215 = vrot.lane.b32.xlu0 %v3214_v39, %s3903_s23  ;;  %v564_v44 = vpop.permute.xlu1 %563  ;;  %v562_v45 = vpop.permute.xlu0 %561  ;;  %v519_v46 = vsel %vm483_vm10, %v506_v42, %v514_v41  ;;  %v520_v47 = vsel %vm484_vm11, %v507_v43, %v513_v40  ;;  %vm616_vm2 = vcmp.lt.s32.totalorder %v4069_v4, 16  ;;  %vm647_vm3 = vcmp.lt.s32.totalorder %v4069_v4, 112 }
  0xb3   : > { %v3229_v48 = vpack.i.bf16 %v520_v47, %v519_v46  ;;  %v4136_v50 = vsel %vm753_vm13, %v520_v47, %v738_v49  ;;  %v4147_v56 = vsel %vm753_vm13, %v519_v46, %v737_v51  ;;  %v566_v57 = vsel %vm5605_vm14, %v562_v45, %v564_v44 }
  0xb4   : > { %v567_v58 = vsel %vm5605_vm14, %v564_v44, %v562_v45  ;;  %vm678_vm6 = vcmp.lt.s32.totalorder %v4069_v4, 96  ;;  %vm809_vm7 = vcmask 818176   ;;  %vm905_vm8 = vcmp.lt.s32.totalorder %v4069_v4, 4 }
  0xb5   : > { %vm898_vm9 = vcmp.lt.s32.totalorder %v4069_v4, 116 }
  0xb6   : > { %3225 = vrot.lane.b32.xlu1 %v4047_v2, %s3905_s27  ;;  %3230 = vrot.lane.b32.xlu0 %v3229_v48, %s3903_s23  ;;  %v571_v52 = vpop.permute.xlu1 %570  ;;  %v569_v53 = vpop.permute.xlu0 %568 }
  0xb7   : > { %v573_v54 = vsel %vm5604_vm12, %v569_v53, %v571_v52  ;;  %v574_v55 = vsel %vm5604_vm12, %v571_v52, %v569_v53 }
  0xb8   : > { %v4155_v59 = vsel %vm5602_vm15, %v566_v57, %v574_v55  ;;  %v4159_v60 = vsel %vm5603_vm0, %v567_v58, %v573_v54 }
  0xb9   : > { %v3239_v61 = vpack.i.bf16 %v4159_v60, %v4155_v59 }
  0xba   : > { %3245 = vrot.lane.b32.xlu1 %v3214_v39, %s3904_s24  ;;  %3235 = vrot.lane.b32.xlu0 %v3229_v48, %s3904_s24  ;;  %v3206_v5 = vpop.permute.xlu1 %3205 }
  0xbb   : > { %v3208_v15 = vunpack.i.h.bf16 %v3206_v5  ;;  %v3207_v16 = vunpack.i.l.bf16 %v3206_v5 }
  0xbd   : > { %v598_v28 = vsel %vm585_vm1, %v3207_v16, %v3208_v15  ;;  %v599_v32 = vsel %vm585_vm1, %v3208_v15, %v3207_v16 }
  0xbe   : > { %3255 = vrot.lane.b32.xlu1 %v3219_v38, %s3904_s24  ;;  %3240 = vrot.lane.b32.xlu0 %v3239_v61, %s3903_s23  ;;  %v3211_v7 = vpop.permute.xlu1 %3210 }
  0xbf   : > { %v3213_v20 = vunpack.i.h.bf16 %v3211_v7  ;;  %v3212_v21 = vunpack.i.l.bf16 %v3211_v7 }
  0xc1   : > { %v629_v36 = vsel %vm616_vm2, %v3212_v21, %v3213_v20  ;;  %v630_v37 = vsel %vm616_vm2, %v3213_v20, %v3212_v21 }
  0xc2   : > { %3270 = vrot.lane.b32.xlu1 %v3214_v39, %s3905_s27  ;;  %3250 = vrot.lane.b32.xlu0 %v3239_v61, %s3904_s24  ;;  %v725_v55 = vrot.slane %v630_v37, 4  ;;  %v726_v57 = vrot.slane %v629_v36, 4  ;;  %s3912_s24 = smov 12  }
  0xc6   : > { %3280 = vrot.lane.b32.xlu1 %v3214_v39, %s3906_s30  ;;  %3260 = vrot.lane.b32.xlu0 %v3229_v48, %s3905_s27 }
  0xca   : > { %3290 = vrot.lane.b32.xlu1 %v3229_v48, %s3906_s30  ;;  %3265 = vrot.lane.b32.xlu0 %v3239_v61, %s3905_s27 }
  0xce   : > { %699 = vrot.lane.b32.xlu1 %v4155_v59, %s3906_s30  ;;  %3275 = vrot.lane.b32.xlu0 %v3219_v38, %s3905_s27  ;;  %s3913_s27 = smov 64  }
  0xd2   : > { %3285 = vrot.lane.b32.xlu0 %v3219_v38, %s3906_s30  ;;  %806 = vperm.xlu1 %3299, %v803_v63  }
  0xd6   : > { %3295 = vrot.lane.b32.xlu0 %v4047_v2, %s3906_s30 }
  0xda   : > { %701 = vrot.lane.b32.xlu0 %v4159_v60, %s3906_s30 }
 0x124   : > { %v3221_v8 = vpop.permute.xlu1 %3220  ;;  %v3216_v10 = vpop.permute.xlu0 %3215 }
 0x125   : > { %v3223_v11 = vunpack.i.h.bf16 %v3221_v8  ;;  %v3222_v12 = vunpack.i.l.bf16 %v3221_v8  ;;  %v3218_v13 = vunpack.i.h.bf16 %v3216_v10  ;;  %v3217_v14 = vunpack.i.l.bf16 %v3216_v10 }
 0x127   : > { %v592_v2 = vsel %vm585_vm1, %v3217_v14, %v3218_v13  ;;  %v604_v17 = vsel %vm585_vm1, %v3222_v12, %v3223_v11  ;;  %v593_v18 = vsel %vm585_vm1, %v3218_v13, %v3217_v14  ;;  %v605_v19 = vsel %vm585_vm1, %v3223_v11, %v3222_v12 }
 0x128   : > { %v4192_v22 = vpop.permute.xlu1 %3225  ;;  %v3231_v23 = vpop.permute.xlu0 %3230  ;;  %v714_v26 = vrot.slane %v604_v17, 4  ;;  %v713_v27 = vrot.slane %v605_v19, 4  ;;  %v708_v29 = vrot.slane %v592_v2, 4  ;;  %v707_v33 = vrot.slane %v593_v18, 4 }
 0x129   : > { %v3233_v24 = vunpack.i.h.bf16 %v3231_v23  ;;  %v3232_v25 = vunpack.i.l.bf16 %v3231_v23  ;;  %v3228_v11 = vunpack.i.h.bf16 %v4192_v22  ;;  %v3227_v12 = vunpack.i.l.bf16 %v4192_v22 }
 0x12a   : > { %v757_v44 = vsel %vm753_vm13, %v598_v28, %v714_v26  ;;  %v756_v45 = vsel %vm753_vm13, %v599_v32, %v713_v27  ;;  %v744_v32 = vrot.slane %v4111_v31, 4 }
 0x12b   : > { %v586_v34 = vsel %vm585_vm1, %v3232_v25, %v3233_v24  ;;  %v587_v35 = vsel %vm585_vm1, %v3233_v24, %v3232_v25  ;;  %v660_v26 = vsel %vm647_vm3, %v3227_v12, %v3228_v11  ;;  %v661_v37 = vsel %vm647_vm3, %v3228_v11, %v3227_v12 }
 0x12c   : > { %v3246_v38 = vpop.permute.xlu1 %3245  ;;  %v3236_v39 = vpop.permute.xlu0 %3235  ;;  %v755_v40 = vsel %vm753_vm13, %v586_v34, %v708_v29  ;;  %v754_v41 = vsel %vm753_vm13, %v587_v35, %v707_v33 }
 0x12d   : > { %v3238_v42 = vunpack.i.h.bf16 %v3236_v39  ;;  %v3237_v43 = vunpack.i.l.bf16 %v3236_v39  ;;  %v3248_v46 = vunpack.i.h.bf16 %v3246_v38  ;;  %v3247_v47 = vunpack.i.l.bf16 %v3246_v38 }
 0x12e   : > { %v2656_v48 = vpack.c.bf16 %v757_v44, %v755_v40  ;;  %v2658_v49 = vpack.c.bf16 %v756_v45, %v754_v41  ;;  %v743_v40 = vrot.slane %v4107_v30, 4  ;;  %v772_v45 = vrot.slane %v660_v26, 4 }
 0x12f   : > { %v617_v51 = vsel %vm616_vm2, %v3237_v43, %v3238_v42  ;;  %v618_v52 = vsel %vm616_vm2, %v3238_v42, %v3237_v43  ;;  %v623_v5 = vsel %vm616_vm2, %v3247_v47, %v3248_v46  ;;  %v624_v7 = vsel %vm616_vm2, %v3248_v46, %v3247_v47 }
 0x130   : > { %2657 = vmatprep.subr.bf16.mxu0 %v2656_v48  ;;  %v3256_v53 = vpop.permute.xlu1 %3255  ;;  %v3241_v54 = vpop.permute.xlu0 %3240  ;;  %v719_v63 = vrot.slane %v618_v52, 4  ;;  %v720_v3 = vrot.slane %v617_v51, 4  ;;  %v761_v18 = vsel %vm753_vm13, %v623_v5, %v726_v57  ;;  %v760_v19 = vsel %vm753_vm13, %v624_v7, %v725_v55 }
 0x131   : > { %v3243_v58 = vunpack.i.h.bf16 %v3241_v54  ;;  %v3242_v61 = vunpack.i.l.bf16 %v3241_v54  ;;  %2659 = vmatpush1.bf16.msra.mxu0 %v2658_v49  ;;  %v3258_v20 = vunpack.i.h.bf16 %v3256_v53  ;;  %v3257_v21 = vunpack.i.l.bf16 %v3256_v53 }
 0x132   : > { %v767_v49 = vsel %vm753_vm13, %v4043_v1, %v744_v32  ;;  %v773_v51 = vrot.slane %v661_v37, 4 }
 0x133   : > { %v610_v8 = vsel %vm585_vm1, %v3242_v61, %v3243_v58  ;;  %v611_v10 = vsel %vm585_vm1, %v3243_v58, %v3242_v61  ;;  %v635_v38 = vsel %vm616_vm2, %v3257_v21, %v3258_v20  ;;  %v636_v39 = vsel %vm616_vm2, %v3258_v20, %v3257_v21 }
 0x134   : > { %v3251_v13 = vpop.permute.xlu0 %3250  ;;  %v759_v14 = vsel %vm753_vm13, %v610_v8, %v720_v3  ;;  %v758_v15 = vsel %vm753_vm13, %v611_v10, %v719_v63  ;;  %v3271_v16 = vpop.permute.xlu1 %3270 }
 0x135   : > { %v3253_v2 = vunpack.i.h.bf16 %v3251_v13  ;;  %v3252_v17 = vunpack.i.l.bf16 %v3251_v13  ;;  %v2660_v23 = vpack.c.bf16 %v761_v18, %v759_v14  ;;  %v2662_v24 = vpack.c.bf16 %v760_v19, %v758_v15 }
 0x136   : > { %v3273_v33 = vunpack.i.h.bf16 %v3271_v16  ;;  %v3272_v34 = vunpack.i.l.bf16 %v3271_v16 }
 0x137   : > { %v641_v25 = vsel %vm616_vm2, %v3252_v17, %v3253_v2  ;;  %v642_v22 = vsel %vm616_vm2, %v3253_v2, %v3252_v17  ;;  %2661 = vmatprep.subr.bf16.mxu0 %v2660_v23  ;;  %vm491_vm2 = vcmp.lt.s32.totalorder %v4073_v6, 4 }
 0x138   : > { %v731_v27 = vrot.slane %v642_v22, 4  ;;  %v732_v28 = vrot.slane %v641_v25, 4  ;;  %v3261_v29 = vpop.permute.xlu0 %3260  ;;  %2663 = vmatpush1.bf16.msra.mxu0 %v2662_v24  ;;  %v3281_v41 = vpop.permute.xlu1 %3280  ;;  %v655_v53 = vsel %vm647_vm3, %v3273_v33, %v3272_v34  ;;  %v654_v3 = vsel %vm647_vm3, %v3272_v34, %v3273_v33 }
 0x139   : > { %v3263_v35 = vunpack.i.h.bf16 %v3261_v29  ;;  %v3262_v36 = vunpack.i.l.bf16 %v3261_v29  ;;  %v795_v11 = vsel %vm753_vm13, %v655_v53, %v773_v51  ;;  %v794_v12 = vsel %vm753_vm13, %v654_v3, %v772_v45 }
 0x13a   : > { %v763_v43 = vsel %vm753_vm13, %v635_v38, %v732_v28  ;;  %v762_v44 = vsel %vm753_vm13, %v636_v39, %v731_v27  ;;  %v3283_v13 = vunpack.i.h.bf16 %v3281_v41  ;;  %v3282_v14 = vunpack.i.l.bf16 %v3281_v41 }
 0x13b   : > { %v648_v31 = vsel %vm647_vm3, %v3262_v36, %v3263_v35  ;;  %v649_v42 = vsel %vm647_vm3, %v3263_v35, %v3262_v36  ;;  %v2664_v54 = vpack.c.bf16 %v4136_v50, %v763_v43  ;;  %v2666_v55 = vpack.c.bf16 %v4147_v56, %v762_v44 }
 0x13c   : > { %v749_v46 = vrot.slane %v648_v31, 4  ;;  %v750_v47 = vrot.slane %v649_v42, 4  ;;  %v3266_v48 = vpop.permute.xlu0 %3265  ;;  %v766_v56 = vsel %vm753_vm13, %v4039_v0, %v743_v40  ;;  %v685_v25 = vsel %vm678_vm6, %v3282_v14, %v3283_v13 }
 0x13d   : > { %v3268_v30 = vunpack.i.h.bf16 %v3266_v48  ;;  %v3267_v52 = vunpack.i.l.bf16 %v3266_v48  ;;  %2665 = vmatprep.subr.bf16.mxu0 %v2664_v54  ;;  %v686_v22 = vsel %vm678_vm6, %v3283_v13, %v3282_v14  ;;  %v784_v35 = vrot.slane %v685_v25, 4 }
 0x13e   : > { %v769_v57 = vsel %vm753_vm13, %v4159_v60, %v750_v47  ;;  %v768_v58 = vsel %vm753_vm13, %v4155_v59, %v749_v46  ;;  %v3291_v60 = vpop.permute.xlu1 %3290  ;;  %2667 = vmatpush1.bf16.msra.mxu0 %v2666_v55  ;;  %v785_v36 = vrot.slane %v686_v22, 4 }
 0x13f   : > { %v672_v61 = vsel %vm647_vm3, %v3267_v52, %v3268_v30  ;;  %v673_v1 = vsel %vm647_vm3, %v3268_v30, %v3267_v52  ;;  %v2668_v63 = vpack.c.bf16 %v769_v57, %v767_v49  ;;  %v2670_v7 = vpack.c.bf16 %v768_v58, %v766_v56  ;;  %v802_v49 = vld [vmem:[%s5587_s1] sm:$0xf] }
 0x140   : > { %v3276_v50 = vpop.permute.xlu0 %3275  ;;  %v778_v8 = vrot.slane %v672_v61, 4  ;;  %v779_v10 = vrot.slane %v673_v1, 4  ;;  %v3293_v16 = vunpack.i.h.bf16 %v3291_v60  ;;  %v3292_v2 = vunpack.i.l.bf16 %v3291_v60 }
 0x141   : > { %v3278_v59 = vunpack.i.h.bf16 %v3276_v50  ;;  %v3277_v5 = vunpack.i.l.bf16 %v3276_v50  ;;  %2669 = vmatprep.subr.bf16.mxu0 %v2668_v63 }
 0x142   : > { %2671 = vmatpush1.bf16.msra.mxu0 %v2670_v7  ;;  %v680_v33 = vsel %vm678_vm6, %v3293_v16, %v3292_v2  ;;  %v679_v34 = vsel %vm678_vm6, %v3292_v2, %v3293_v16  ;;  %v700_v47 = vpop.permute.xlu1 %699 }
 0x143   : > { %v667_v15 = vsel %vm647_vm3, %v3278_v59, %v3277_v5  ;;  %v666_v0 = vsel %vm647_vm3, %v3277_v5, %v3278_v59  ;;  %v799_v41 = vsel %vm753_vm13, %v680_v33, %v785_v36  ;;  %v798_v42 = vsel %vm753_vm13, %v679_v34, %v784_v35 }
 0x144   : > { %v3286_v17 = vpop.permute.xlu0 %3285  ;;  %v797_v18 = vsel %vm753_vm13, %v667_v15, %v779_v10  ;;  %v796_v19 = vsel %vm753_vm13, %v666_v0, %v778_v8  ;;  %vm492_vm3 = vcmp.lt.s32.totalorder %v4075_v9, 4 }
 0x145   : > { %v3288_v20 = vunpack.i.h.bf16 %v3286_v17  ;;  %v3287_v21 = vunpack.i.l.bf16 %v3286_v17  ;;  %v2672_v23 = vpack.c.bf16 %v797_v18, %v795_v11  ;;  %v2674_v24 = vpack.c.bf16 %v796_v19, %v794_v12 }
 0x147   : > { %v697_v26 = vsel %vm678_vm6, %v3287_v21, %v3288_v20  ;;  %v698_v27 = vsel %vm678_vm6, %v3288_v20, %v3287_v21  ;;  %2673 = vmatprep.subr.bf16.mxu0 %v2672_v23 }
 0x148   : > { %v3296_v28 = vpop.permute.xlu0 %3295  ;;  %2675 = vmatpush1.bf16.msra.mxu0 %v2674_v24  ;;  %v790_v37 = vrot.slane %v697_v26, 4  ;;  %v791_v38 = vrot.slane %v698_v27, 4 }
 0x149   : > { %v3298_v29 = vunpack.i.h.bf16 %v3296_v28  ;;  %v3297_v32 = vunpack.i.l.bf16 %v3296_v28 }
 0x14b   : > { %v692_v39 = vsel %vm678_vm6, %v3298_v29, %v3297_v32  ;;  %v691_v40 = vsel %vm678_vm6, %v3297_v32, %v3298_v29 }
 0x14c   : > { %v801_v31 = vsel %vm753_vm13, %v692_v39, %v791_v38  ;;  %v800_v43 = vsel %vm753_vm13, %v691_v40, %v790_v37  ;;  %v702_v44 = vpop.permute.xlu0 %701 }
 0x14d   : > { %v2676_v45 = vpack.c.bf16 %v801_v31, %v799_v41  ;;  %v2678_v46 = vpack.c.bf16 %v800_v43, %v798_v42  ;;  %v704_v48 = vsel %vm678_vm6, %v702_v44, %v700_v47  ;;  %v703_v51 = vsel %vm678_vm6, %v700_v47, %v702_v44 }
 0x14f   : > { %2677 = vmatprep.subr.bf16.mxu0 %v2676_v45 }
 0x150   : > { %2679 = vmatpush1.bf16.msra.mxu0 %v2678_v46 }
 0x151   : > { %2638 = vmatprep.subr.msk.mxu0 %vm753_vm13, %v704_v48  ;;  %v807_v30 = vpop.permute.xlu1 %806 }
 0x154   : > { %2639 = vmatpush1.msk.msra.mxu0 %vm753_vm13, %v703_v51 }
 0x155   : > { %2640 = vmatmul.mubr.msk.f32.vlgmr.msra.gmra.mrb[0].mxu0 %vm809_vm7, %v802_v49 }
 0x228   : > { %v885_v52 = vpop.f32.mrb[0].mxu0 }
 0x229   : > { %v886_v53 = vadd.f32 %v885_v52, %v807_v30  ;;  %v887_v54 = vpop.f32.mrb[1].mxu0 }
 0x22a   : > { %v888_v55 = vadd.f32 %v887_v54, %v807_v30 }
 0x22b   : > { %v890_v57 = vmul.f32 0.01, %v886_v53 }
 0x22c   : > { %v891_v58 = vmul.f32 0.01, %v888_v55 }
 0x22d   : > { %v4306_v61 = vmax.f32 %v886_v53, %v890_v57  ;;  %v1135_v57 = vld [vmem:[%s5590_s4] sm:$0xff] }
 0x22e   : > { %v4308_v1 = vmax.f32 %v888_v55, %v891_v58  ;;  %v1136_v55 = vld [vmem:[%s5590_s4 + $0x8] sm:$0xff] }
 0x22f   : > { %942 = vrot.lane.b32.xlu0 %v4306_v61, %s3909_s16 }
 0x230   : > { %v4314_v63 = vpack.i.bf16 %v4308_v1, %v4306_v61 }
 0x232   : > { %3306 = vrot.lane.b32.xlu1 %v4314_v63, %s3899_s19 }
 0x233   : > { %3301 = vrot.lane.b32.xlu0 %v4314_v63, %s3900_s20 }
 0x236   : > { %3316 = vrot.lane.b32.xlu1 %v4314_v63, %s3902_s22 }
 0x237   : > { %3311 = vrot.lane.b32.xlu0 %v4314_v63, %s3901_s21 }
 0x23a   : > { %3326 = vrot.lane.b32.xlu1 %v4314_v63, %s3910_s17 }
 0x23b   : > { %3321 = vrot.lane.b32.xlu0 %v4314_v63, %s3911_s18 }
 0x23e   : > { %944 = vrot.lane.b32.xlu1 %v4308_v1, %s3909_s16 }
 0x23f   : > { %949 = vrot.lane.b32.xlu0 %v4306_v61, %s3912_s24 }
 0x242   : > { %951 = vrot.lane.b32.xlu1 %v4308_v1, %s3912_s24 }
 0x246   : > { %3331 = vrot.lane.b32.xlu1 %v4314_v63, %s3913_s27 }
 0x24a   : > { %3336 = vrot.lane.b32.xlu1 %v4314_v63, %s3903_s23 }
 0x2a1   : > { %v943_v3 = vpop.permute.xlu0 %942 }
 0x2a4   : > { %v3307_v50 = vpop.permute.xlu1 %3306 }
 0x2a5   : > { %v3309_v56 = vunpack.i.h.bf16 %v3307_v50  ;;  %v3308_v60 = vunpack.i.l.bf16 %v3307_v50  ;;  %v3302_v59 = vpop.permute.xlu0 %3301 }
 0x2a6   : > { %v3304_v5 = vunpack.i.h.bf16 %v3302_v59  ;;  %v3303_v7 = vunpack.i.l.bf16 %v3302_v59 }
 0x2a7   : > { %v924_v8 = vsel %vm512_vm4, %v3308_v60, %v3309_v56  ;;  %v925_v10 = vsel %vm512_vm4, %v3309_v56, %v3308_v60 }
 0x2a8   : > { %v918_v11 = vsel %vm505_vm5, %v3303_v7, %v3304_v5  ;;  %v919_v12 = vsel %vm505_vm5, %v3304_v5, %v3303_v7  ;;  %v3317_v13 = vpop.permute.xlu1 %3316 }
 0x2a9   : > { %v3319_v14 = vunpack.i.h.bf16 %v3317_v13  ;;  %v3318_v15 = vunpack.i.l.bf16 %v3317_v13  ;;  %v3312_v0 = vpop.permute.xlu0 %3311  ;;  %v926_v16 = vsel %vm483_vm10, %v918_v11, %v925_v10  ;;  %v927_v2 = vsel %vm484_vm11, %v919_v12, %v924_v8 }
 0x2aa   : > { %v3314_v17 = vunpack.i.h.bf16 %v3312_v0  ;;  %v3313_v18 = vunpack.i.l.bf16 %v3312_v0  ;;  %v3340_v19 = vpack.i.bf16 %v927_v2, %v926_v16  ;;  %v1086_v40 = vrot.slane %v927_v2, 4 }
 0x2ab   : > { %v938_v20 = vsel %vm5604_vm12, %v3318_v15, %v3319_v14  ;;  %v939_v21 = vsel %vm5604_vm12, %v3319_v14, %v3318_v15  ;;  %v1085_v42 = vrot.slane %v926_v16, 4  ;;  %vm5606_vm12 = vcmp.lt.s32.totalorder %v4073_v6, 12 }
 0x2ac   : > { %v932_v23 = vsel %vm5605_vm14, %v3313_v18, %v3314_v17  ;;  %v933_v24 = vsel %vm5605_vm14, %v3314_v17, %v3313_v18  ;;  %v3327_v25 = vpop.permute.xlu1 %3326  ;;  %3341 = vrot.lane.b32.xlu0 %v3340_v19, %s3913_s27  ;;  %vm494_vm14 = vcmp.lt.s32.totalorder %v4075_v9, 12 }
 0x2ad   : > { %v3329_v22 = vunpack.i.h.bf16 %v3327_v25  ;;  %v3328_v26 = vunpack.i.l.bf16 %v3327_v25  ;;  %v3322_v27 = vpop.permute.xlu0 %3321  ;;  %v4364_v28 = vsel %vm5602_vm15, %v932_v23, %v939_v21  ;;  %v4368_v29 = vsel %vm5603_vm0, %v933_v24, %v938_v20 }
 0x2ae   : > { %v3324_v32 = vunpack.i.h.bf16 %v3322_v27  ;;  %v3323_v33 = vunpack.i.l.bf16 %v3322_v27  ;;  %v3345_v34 = vpack.i.bf16 %v4368_v29, %v4364_v28  ;;  %vm946_vm15 = vcmp.lt.s32.totalorder %v4069_v4, 124 }
 0x2af   : > { %v906_v35 = vsel %vm905_vm8, %v3328_v26, %v3329_v22  ;;  %v907_v36 = vsel %vm905_vm8, %v3329_v22, %v3328_v26  ;;  %vm953_vm0 = vcmp.lt.s32.totalorder %v4069_v4, 12 }
 0x2b0   : > { %v899_v37 = vsel %vm898_vm9, %v3323_v33, %v3324_v32  ;;  %v900_v38 = vsel %vm898_vm9, %v3324_v32, %v3323_v33  ;;  %v945_v39 = vpop.permute.xlu1 %944  ;;  %3346 = vrot.lane.b32.xlu1 %v3345_v34, %s3913_s27 }
 0x2b1   : > { %v912_v41 = vsel %vm491_vm2, %v899_v37, %v907_v36  ;;  %v913_v31 = vsel %vm492_vm3, %v900_v38, %v906_v35  ;;  %v950_v46 = vpop.permute.xlu0 %949  ;;  %v947_v48 = vsel %vm946_vm15, %v943_v3, %v945_v39  ;;  %v948_v49 = vsel %vm946_vm15, %v945_v39, %v943_v3 }
 0x2b2   : > { %v3350_v43 = vpack.i.bf16 %v913_v31, %v912_v41  ;;  %v4389_v44 = vsel %vm753_vm13, %v913_v31, %v1086_v40  ;;  %v4394_v45 = vsel %vm753_vm13, %v912_v41, %v1085_v42 }
 0x2b4   : > { %v952_v47 = vpop.permute.xlu1 %951  ;;  %3351 = vrot.lane.b32.xlu0 %v3350_v43, %s3913_s27 }
 0x2b5   : > { %v954_v51 = vsel %vm953_vm0, %v950_v46, %v952_v47  ;;  %v955_v30 = vsel %vm953_vm0, %v952_v47, %v950_v46 }
 0x2b6   : > { %v4407_v52 = vsel %vm5606_vm12, %v947_v48, %v955_v30  ;;  %v4411_v53 = vsel %vm494_vm14, %v948_v49, %v954_v51  ;;  %vm966_vm12 = vcmp.lt.s32.totalorder %v4069_v4, 64 }
 0x2b7   : > { %989 = vrot.lane.b32.xlu1 %v4411_v53, %s3913_s27  ;;  %v3365_v54 = vpack.i.bf16 %v4411_v53, %v4407_v52 }
 0x2b8   : > { %3356 = vrot.lane.b32.xlu0 %v3350_v43, %s3903_s23  ;;  %v3332_v58 = vpop.permute.xlu1 %3331 }
 0x2b9   : > { %v3334_v7 = vunpack.i.h.bf16 %v3332_v58  ;;  %v3333_v8 = vunpack.i.l.bf16 %v3332_v58 }
 0x2bb   : > { %3366 = vrot.lane.b32.xlu1 %v3365_v54, %s3903_s23  ;;  %v979_v17 = vsel %vm966_vm12, %v3333_v8, %v3334_v7 }
 0x2bc   : > { %987 = vrot.lane.b32.xlu0 %v4407_v52, %s3913_s27  ;;  %v3337_v3 = vpop.permute.xlu1 %3336 }
 0x2bd   : > { %v3339_v21 = vunpack.i.h.bf16 %v3337_v3  ;;  %v3338_v23 = vunpack.i.l.bf16 %v3337_v3 }
 0x2bf   : > { %3381 = vrot.lane.b32.xlu1 %v3350_v43, %s3906_s30  ;;  %v1010_v42 = vsel %vm585_vm1, %v3339_v21, %v3338_v23  ;;  %v1009_v47 = vsel %vm585_vm1, %v3338_v23, %v3339_v21 }
 0x2c0   : > { %3361 = vrot.lane.b32.xlu0 %v3340_v19, %s3903_s23 }
 0x2c3   : > { %3386 = vrot.lane.b32.xlu1 %v3365_v54, %s3906_s30 }
 0x2c4   : > { %3371 = vrot.lane.b32.xlu0 %v3345_v34, %s3903_s23 }
 0x2c7   : > { %3396 = vrot.lane.b32.xlu1 %v3345_v34, %s3906_s30 }
 0x2c8   : > { %3376 = vrot.lane.b32.xlu0 %v4314_v63, %s3906_s30 }
 0x2cb   : > { %1144 = vperm.xlu1 %3299, %v1136_v55   ;;  %v1073_v55 = vrot.slane %v1010_v42, 4 }
 0x2cc   : > { %3391 = vrot.lane.b32.xlu0 %v3340_v19, %s3906_s30  ;;  %v980_v19 = vsel %vm966_vm12, %v3334_v7, %v3333_v8 }
 0x2d0   : > { %1139 = vperm.xlu0 %3400, %v1135_v57  }
 0x31e   : > { %v3342_v50 = vpop.permute.xlu0 %3341 }
 0x31f   : > { %v3344_v56 = vunpack.i.h.bf16 %v3342_v50  ;;  %v3343_v60 = vunpack.i.l.bf16 %v3342_v50  ;;  %v1092_v50 = vrot.slane %v4368_v29, 4 }
 0x321   : > { %v973_v10 = vsel %vm966_vm12, %v3343_v60, %v3344_v56  ;;  %v974_v12 = vsel %vm966_vm12, %v3344_v56, %v3343_v60  ;;  %v1074_v56 = vrot.slane %v1009_v47, 4 }
 0x322   : > { %v3347_v59 = vpop.permute.xlu1 %3346  ;;  %v1056_v18 = vrot.slane %v973_v10, 4  ;;  %v1055_v20 = vrot.slane %v974_v12, 4 }
 0x323   : > { %v3349_v5 = vunpack.i.h.bf16 %v3347_v59  ;;  %v3348_v63 = vunpack.i.l.bf16 %v3347_v59 }
 0x325   : > { %v985_v11 = vsel %vm966_vm12, %v3348_v63, %v3349_v5  ;;  %v986_v13 = vsel %vm966_vm12, %v3349_v5, %v3348_v63 }
 0x326   : > { %v3352_v14 = vpop.permute.xlu0 %3351  ;;  %v1062_v15 = vrot.slane %v985_v11, 4  ;;  %v1061_v0 = vrot.slane %v986_v13, 4 }
 0x327   : > { %v3354_v16 = vunpack.i.h.bf16 %v3352_v14  ;;  %v3353_v2 = vunpack.i.l.bf16 %v3352_v14 }
 0x328   : > { %v1104_v32 = vsel %vm753_vm13, %v979_v17, %v1062_v15  ;;  %v1103_v34 = vsel %vm753_vm13, %v980_v19, %v1061_v0 }
 0x329   : > { %v990_v24 = vpop.permute.xlu1 %989  ;;  %v967_v25 = vsel %vm966_vm12, %v3353_v2, %v3354_v16  ;;  %v968_v22 = vsel %vm966_vm12, %v3354_v16, %v3353_v2 }
 0x32a   : > { %v3357_v26 = vpop.permute.xlu0 %3356  ;;  %v1102_v27 = vsel %vm753_vm13, %v967_v25, %v1056_v18  ;;  %v1101_v33 = vsel %vm753_vm13, %v968_v22, %v1055_v20  ;;  %v1091_v22 = vrot.slane %v4364_v28, 4 }
 0x32b   : > { %v3359_v35 = vunpack.i.h.bf16 %v3357_v26  ;;  %v3358_v36 = vunpack.i.l.bf16 %v3357_v26  ;;  %v4456_v37 = vpack.c.bf16 %v1104_v32, %v1102_v27  ;;  %v4458_v38 = vpack.c.bf16 %v1103_v34, %v1101_v33 }
 0x32d   : > { %v997_v39 = vsel %vm585_vm1, %v3358_v36, %v3359_v35  ;;  %v998_v40 = vsel %vm585_vm1, %v3359_v35, %v3358_v36  ;;  %v3367_v41 = vpop.permute.xlu1 %3366  ;;  %2681 = vmatprep.subr.bf16.mxu1 %v4456_v37 }
 0x32e   : > { %v988_v31 = vpop.permute.xlu0 %987  ;;  %2683 = vmatpush1.bf16.msra.mxu1 %v4458_v38  ;;  %v3369_v43 = vunpack.i.h.bf16 %v3367_v41  ;;  %v3368_v46 = vunpack.i.l.bf16 %v3367_v41  ;;  %v1067_v48 = vrot.slane %v998_v40, 4  ;;  %v1068_v49 = vrot.slane %v997_v39, 4 }
 0x32f   : > { %v4472_v51 = vsel %vm966_vm12, %v988_v31, %v990_v24  ;;  %v4476_v30 = vsel %vm966_vm12, %v990_v24, %v988_v31 }
 0x330   : > { %v1021_v60 = vsel %vm585_vm1, %v3368_v46, %v3369_v43  ;;  %v1022_v63 = vsel %vm585_vm1, %v3369_v43, %v3368_v46  ;;  %v1106_v8 = vsel %vm753_vm13, %v4472_v51, %v1068_v49  ;;  %v1105_v10 = vsel %vm753_vm13, %v4476_v30, %v1067_v48 }
 0x331   : > { %v3382_v54 = vpop.permute.xlu1 %3381  ;;  %v1079_v23 = vrot.slane %v1022_v63, 4  ;;  %v1080_v24 = vrot.slane %v1021_v60, 4 }
 0x332   : > { %v3384_v57 = vunpack.i.h.bf16 %v3382_v54  ;;  %v3383_v58 = vunpack.i.l.bf16 %v3382_v54  ;;  %v3362_v3 = vpop.permute.xlu0 %3361 }
 0x333   : > { %v3364_v59 = vunpack.i.h.bf16 %v3362_v3  ;;  %v3363_v5 = vunpack.i.l.bf16 %v3362_v3 }
 0x334   : > { %v1028_v7 = vsel %vm678_vm6, %v3384_v57, %v3383_v58  ;;  %v1027_v29 = vsel %vm678_vm6, %v3383_v58, %v3384_v57 }
 0x335   : > { %v1098_v11 = vrot.slane %v1028_v7, 4  ;;  %v3387_v12 = vpop.permute.xlu1 %3386  ;;  %v1003_v13 = vsel %vm585_vm1, %v3363_v5, %v3364_v59  ;;  %v1004_v14 = vsel %vm585_vm1, %v3364_v59, %v3363_v5  ;;  %v1097_v25 = vrot.slane %v1027_v29, 4 }
 0x336   : > { %v3389_v15 = vunpack.i.h.bf16 %v3387_v12  ;;  %v3388_v0 = vunpack.i.l.bf16 %v3387_v12  ;;  %v3372_v16 = vpop.permute.xlu0 %3371  ;;  %v1108_v2 = vsel %vm753_vm13, %v1003_v13, %v1074_v56  ;;  %v1107_v17 = vsel %vm753_vm13, %v1004_v14, %v1073_v55  ;;  %v1134_v12 = vld [vmem:[#allocation2 + $0x8] sm:$0xff] }
 0x337   : > { %v3374_v18 = vunpack.i.h.bf16 %v3372_v16  ;;  %v3373_v19 = vunpack.i.l.bf16 %v3372_v16  ;;  %v2684_v20 = vpack.c.bf16 %v1108_v2, %v1106_v8  ;;  %v2686_v21 = vpack.c.bf16 %v1107_v17, %v1105_v10 }
 0x338   : > { %v1051_v26 = vsel %vm678_vm6, %v3388_v0, %v3389_v15  ;;  %v1116_v34 = vsel %vm753_vm13, %v4411_v53, %v1098_v11  ;;  %v1052_v46 = vsel %vm678_vm6, %v3389_v15, %v3388_v0  ;;  %v1114_v53 = vsel %vm753_vm13, %v4308_v1, %v1092_v50  ;;  %v1133_v11 = vld [vmem:[#allocation2] sm:$0xff] }
 0x339   : > { %v3397_v27 = vpop.permute.xlu1 %3396  ;;  %2685 = vmatprep.subr.bf16.mxu1 %v2684_v20  ;;  %v1015_v32 = vsel %vm585_vm1, %v3373_v19, %v3374_v18  ;;  %v1016_v33 = vsel %vm585_vm1, %v3374_v18, %v3373_v19  ;;  %v2692_v49 = vpack.c.bf16 %v1116_v34, %v1114_v53  ;;  %v1115_v54 = vsel %vm753_vm13, %v4407_v52, %v1097_v25 }
 0x33a   : > { %v3399_v35 = vunpack.i.h.bf16 %v3397_v27  ;;  %v3398_v36 = vunpack.i.l.bf16 %v3397_v27  ;;  %v3377_v39 = vpop.permute.xlu0 %3376  ;;  %2687 = vmatpush1.bf16.msra.mxu1 %v2686_v21  ;;  %v1110_v28 = vsel %vm753_vm13, %v1015_v32, %v1080_v24  ;;  %v1109_v40 = vsel %vm753_vm13, %v1016_v33, %v1079_v23 }
 0x33b   : > { %v3379_v41 = vunpack.i.h.bf16 %v3377_v39  ;;  %v3378_v31 = vunpack.i.l.bf16 %v3377_v39  ;;  %v2688_v42 = vpack.c.bf16 %v4389_v44, %v1110_v28  ;;  %v2690_v43 = vpack.c.bf16 %v4394_v45, %v1109_v40 }
 0x33c   : > { %v1125_v44 = vrot.slane %v1051_v26, 4  ;;  %v1113_v45 = vsel %vm753_vm13, %v4306_v61, %v1091_v22  ;;  %v1046_v1 = vsel %vm678_vm6, %v3399_v35, %v3398_v36  ;;  %v1045_v3 = vsel %vm678_vm6, %v3398_v36, %v3399_v35 }
 0x33d   : > { %v1039_v47 = vsel %vm678_vm6, %v3378_v31, %v3379_v41  ;;  %v1040_v48 = vsel %vm678_vm6, %v3379_v41, %v3378_v31  ;;  %2689 = vmatprep.subr.bf16.mxu1 %v2688_v42  ;;  %v1126_v50 = vrot.slane %v1052_v46, 4  ;;  %v2694_v59 = vpack.c.bf16 %v1115_v54, %v1113_v45 }
 0x33e   : > { %v3392_v55 = vpop.permute.xlu0 %3391  ;;  %2691 = vmatpush1.bf16.msra.mxu1 %v2690_v43  ;;  %v1119_v56 = vrot.slane %v1039_v47, 4  ;;  %v1120_v60 = vrot.slane %v1040_v48, 4  ;;  %v1131_v8 = vsel %vm753_vm13, %v1045_v3, %v1125_v44 }
 0x33f   : > { %v3394_v57 = vunpack.i.h.bf16 %v3392_v55  ;;  %v3393_v58 = vunpack.i.l.bf16 %v3392_v55  ;;  %2693 = vmatprep.subr.bf16.mxu1 %v2692_v49  ;;  %v1132_v63 = vsel %vm753_vm13, %v1046_v1, %v1126_v50 }
 0x341   : > { %v1034_v52 = vsel %vm678_vm6, %v3394_v57, %v3393_v58  ;;  %v1033_v5 = vsel %vm678_vm6, %v3393_v58, %v3394_v57 }
 0x342   : > { %2695 = vmatpush1.bf16.msra.mxu1 %v2694_v59  ;;  %v1130_v61 = vsel %vm753_vm13, %v1034_v52, %v1120_v60  ;;  %v1129_v7 = vsel %vm753_vm13, %v1033_v5, %v1119_v56 }
 0x343   : > { %v2696_v10 = vpack.c.bf16 %v1132_v63, %v1130_v61  ;;  %v2698_v29 = vpack.c.bf16 %v1131_v8, %v1129_v7 }
 0x345   : > { %2697 = vmatprep.subr.bf16.mxu1 %v2696_v10 }
 0x346   : > { %2699 = vmatpush1.bf16.msra.mxu1 %v2698_v29 }
 0x347   : > { %2701 = vmatprep.subr.bf16.mxu1 %v4458_v38 }
 0x34a   : > { %2703 = vmatpush1.bf16.msra.mxu1 %v4456_v37  ;;  %v1145_v37 = vpop.permute.xlu1 %1144 }
 0x34b   : > { %2641 = vmatprep.subr.msk.mxu1 %vm753_vm13, %v4476_v30 }
 0x34e   : > { %2642 = vmatpush1.msk.msra.mxu1 %vm753_vm13, %v4472_v51 }
 0x34f   : > { %2643 = vmatmul.mubr.msk.f32.vlgmr.msra.gmra.mrb[0].mxu1 %vm809_vm7, %v1133_v11  ;;  %v1140_v13 = vpop.permute.xlu0 %1139 }
 0x350   : > { %1229 = vmatprep.mubr.f32.mxu1 %v3907_v62 }
 0x353   : > { %2644 = vmatmul.mubr.msk.f32.gmra.mrb[2].mxu1 %vm809_vm7, %v1134_v12 }
 0x422   : > { %v1225_v14 = vpop.f32.mrb[0].mxu1 }
 0x423   : > { %v1226_v15 = vadd.f32 %v1225_v14, %v1140_v13  ;;  %v1227_v38 = vpop.f32.mrb[1].mxu1 }
 0x424   : > { %v1228_v0 = vadd.f32 %v1227_v38, %v1140_v13 }
 0x425   : > { %v1236_v2 = vmul.f32 0.01, %v1226_v15 }
 0x426   : > { %v1231_v16 = vpop.f32.mrb[2].mxu1  ;;  %v1237_v18 = vmul.f32 0.01, %v1228_v0 }
 0x427   : > { %v1232_v30 = vadd.f32 %v1231_v16, %v1145_v37  ;;  %v1233_v17 = vpop.f32.mrb[3].mxu1  ;;  %v4543_v21 = vmax.f32 %v1226_v15, %v1236_v2 }
 0x428   : > { %v1234_v19 = vadd.f32 %v1233_v17, %v1145_v37  ;;  %v4547_v23 = vmax.f32 %v1228_v0, %v1237_v18 }
 0x429   : > { %v1238_v51 = vmul.f32 0.01, %v1232_v30 }
 0x42a   : > { %v1239_v20 = vmul.f32 0.01, %v1234_v19 }
 0x42b   : > { %v4545_v62 = vmax.f32 %v1232_v30, %v1238_v51 }
 0x42c   : > { %v4549_v24 = vmax.f32 %v1234_v19, %v1239_v20 }
 0x42d   : > { %v4553_v25 = vpack.i.bf16 %v4545_v62, %v4543_v21  ;;  %v2754_v27 = vpack.c.bf16 %v4545_v62, %v4543_v21 }
 0x42e   : > { %v4557_v22 = vpack.i.bf16 %v4549_v24, %v4547_v23  ;;  %v2752_v26 = vpack.c.bf16 %v4549_v24, %v4547_v23 }
 0x42f   : > { %3402 = vrot.lane.b32.xlu1 %v4553_v25, %s3911_s18 }
 0x430   : > { %3442 = vrot.lane.b32.xlu0 %v4557_v22, %s3911_s18 }
 0x433   : > { %3407 = vrot.lane.b32.xlu1 %v4553_v25, %s3910_s17 }
 0x434   : > { %3447 = vrot.lane.b32.xlu0 %v4557_v22, %s3910_s17 }
 0x437   : > { %3412 = vrot.lane.b32.xlu1 %v4553_v25, %s3900_s20 }
 0x438   : > { %3452 = vrot.lane.b32.xlu0 %v4557_v22, %s3900_s20  ;;  %s3915_s20 = smov 8  }
 0x43b   : > { %3417 = vrot.lane.b32.xlu1 %v4553_v25, %s3899_s19 }
 0x43c   : > { %3457 = vrot.lane.b32.xlu0 %v4557_v22, %s3899_s19  ;;  %s3914_s19 = smov 120  }
 0x43f   : > { %3422 = vrot.lane.b32.xlu1 %v4553_v25, %s3901_s21 }
 0x440   : > { %3462 = vrot.lane.b32.xlu0 %v4557_v22, %s3901_s21 }
 0x443   : > { %3427 = vrot.lane.b32.xlu1 %v4553_v25, %s3902_s22 }
 0x444   : > { %3467 = vrot.lane.b32.xlu0 %v4557_v22, %s3902_s22 }
 0x447   : > { %3432 = vrot.lane.b32.xlu1 %v4553_v25, %s3909_s16 }
 0x448   : > { %3472 = vrot.lane.b32.xlu0 %v4557_v22, %s3909_s16 }
 0x44b   : > { %3437 = vrot.lane.b32.xlu1 %v4553_v25, %s3912_s24 }
 0x44c   : > { %3477 = vrot.lane.b32.xlu0 %v4557_v22, %s3912_s24 }
 0x4a1   : > { %v3403_v32 = vpop.permute.xlu1 %3402 }
 0x4a2   : > { %v3443_v33 = vpop.permute.xlu0 %3442  ;;  %v3405_v34 = vunpack.i.h.bf16 %v3403_v32  ;;  %v3404_v35 = vunpack.i.l.bf16 %v3403_v32 }
 0x4a3   : > { %v3445_v36 = vunpack.i.h.bf16 %v3443_v33  ;;  %v3444_v39 = vunpack.i.l.bf16 %v3443_v33 }
 0x4a5   : > { %v3408_v28 = vpop.permute.xlu1 %3407  ;;  %v1254_v46 = vsel %vm898_vm9, %v3444_v39, %v3404_v35  ;;  %v1255_v53 = vsel %vm898_vm9, %v3445_v36, %v3405_v34  ;;  %v1252_v55 = vsel %vm898_vm9, %v3404_v35, %v3444_v39  ;;  %v1253_v45 = vsel %vm898_vm9, %v3405_v34, %v3445_v36 }
 0x4a6   : > { %v3410_v40 = vunpack.i.h.bf16 %v3408_v28  ;;  %v3409_v41 = vunpack.i.l.bf16 %v3408_v28  ;;  %v3448_v31 = vpop.permute.xlu0 %3447 }
 0x4a7   : > { %v3450_v42 = vunpack.i.h.bf16 %v3448_v31  ;;  %v3449_v43 = vunpack.i.l.bf16 %v3448_v31 }
 0x4a9   : > { %v1264_v47 = vsel %vm905_vm8, %v3409_v41, %v3449_v43  ;;  %v1265_v48 = vsel %vm905_vm8, %v3410_v40, %v3450_v42  ;;  %v1266_v49 = vsel %vm905_vm8, %v3449_v43, %v3409_v41  ;;  %v1267_v54 = vsel %vm905_vm8, %v3450_v42, %v3410_v40  ;;  %v3413_v44 = vpop.permute.xlu1 %3412 }
 0x4aa   : > { %v3453_v57 = vpop.permute.xlu0 %3452  ;;  %v4613_v58 = vsel %vm492_vm3, %v1254_v46, %v1264_v47  ;;  %v4617_v1 = vsel %vm492_vm3, %v1255_v53, %v1265_v48  ;;  %v3415_v3 = vunpack.i.h.bf16 %v3413_v44  ;;  %v3414_v50 = vunpack.i.l.bf16 %v3413_v44 }
 0x4ab   : > { %v4621_v56 = vpack.i.bf16 %v4617_v1, %v4613_v58  ;;  %v4625_v60 = vsel %vm491_vm2, %v1252_v55, %v1266_v49  ;;  %v3455_v59 = vunpack.i.h.bf16 %v3453_v57  ;;  %v3454_v52 = vunpack.i.l.bf16 %v3453_v57 }
 0x4ac   : > { %v4629_v5 = vsel %vm491_vm2, %v1253_v45, %v1267_v54  ;;  %v2744_v61 = vpack.c.bf16 %v4617_v1, %v4613_v58 }
 0x4ad   : > { %v3418_v63 = vpop.permute.xlu1 %3417  ;;  %3487 = vrot.lane.b32.xlu0 %v4621_v56, %s3913_s27  ;;  %v4637_v10 = vpack.i.bf16 %v4629_v5, %v4625_v60  ;;  %v2746_v13 = vpack.c.bf16 %v4629_v5, %v4625_v60  ;;  %v1282_v14 = vsel %vm505_vm5, %v3454_v52, %v3414_v50  ;;  %v1283_v15 = vsel %vm505_vm5, %v3455_v59, %v3415_v3 }
 0x4ae   : > { %v3420_v7 = vunpack.i.h.bf16 %v3418_v63  ;;  %v3419_v8 = vunpack.i.l.bf16 %v3418_v63  ;;  %v3458_v29 = vpop.permute.xlu0 %3457  ;;  %v1280_v30 = vsel %vm505_vm5, %v3414_v50, %v3454_v52  ;;  %v1281_v17 = vsel %vm505_vm5, %v3415_v3, %v3455_v59 }
 0x4af   : > { %v3460_v11 = vunpack.i.h.bf16 %v3458_v29  ;;  %v3459_v12 = vunpack.i.l.bf16 %v3458_v29  ;;  %3482 = vrot.lane.b32.xlu1 %v4637_v10, %s3913_s27 }
 0x4b1   : > { %v1292_v38 = vsel %vm512_vm4, %v3419_v8, %v3459_v12  ;;  %v1293_v0 = vsel %vm512_vm4, %v3420_v7, %v3460_v11  ;;  %v1294_v37 = vsel %vm512_vm4, %v3459_v12, %v3419_v8  ;;  %v1295_v16 = vsel %vm512_vm4, %v3460_v11, %v3420_v7  ;;  %v3423_v2 = vpop.permute.xlu1 %3422 }
 0x4b2   : > { %v3463_v18 = vpop.permute.xlu0 %3462  ;;  %v4661_v19 = vsel %vm484_vm11, %v1282_v14, %v1292_v38  ;;  %v4665_v51 = vsel %vm484_vm11, %v1283_v15, %v1293_v0  ;;  %v3425_v20 = vunpack.i.h.bf16 %v3423_v2  ;;  %v3424_v32 = vunpack.i.l.bf16 %v3423_v2 }
 0x4b3   : > { %v4669_v33 = vpack.i.bf16 %v4665_v51, %v4661_v19  ;;  %v4673_v34 = vsel %vm483_vm10, %v1280_v30, %v1294_v37  ;;  %v3465_v35 = vunpack.i.h.bf16 %v3463_v18  ;;  %v3464_v36 = vunpack.i.l.bf16 %v3463_v18 }
 0x4b4   : > { %v4677_v39 = vsel %vm483_vm10, %v1281_v17, %v1295_v16  ;;  %v2748_v28 = vpack.c.bf16 %v4665_v51, %v4661_v19  ;;  %vm5612_vm4 = vcmp.lt.s32.totalorder %v4069_v4, 126  ;;  %vm5614_vm10 = vcmp.lt.s32.totalorder %v4069_v4, 14 }
 0x4b5   : > { %v3428_v40 = vpop.permute.xlu1 %3427  ;;  %3502 = vrot.lane.b32.xlu0 %v4669_v33, %s3913_s27  ;;  %v4685_v42 = vpack.i.bf16 %v4677_v39, %v4673_v34  ;;  %v2750_v47 = vpack.c.bf16 %v4677_v39, %v4673_v34  ;;  %v1310_v48 = vsel %vm5612_vm4, %v3464_v36, %v3424_v32  ;;  %vm5613_vm5 = vmmov %vm5612_vm4  ;;  %v1308_v3 = vsel %vm5612_vm4, %v3424_v32, %v3464_v36 }
 0x4b6   : > { %v3430_v41 = vunpack.i.h.bf16 %v3428_v40  ;;  %v3429_v31 = vunpack.i.l.bf16 %v3428_v40  ;;  %v3468_v43 = vpop.permute.xlu0 %3467  ;;  %v1311_v49 = vsel %vm5613_vm5, %v3465_v35, %v3425_v20  ;;  %vm5615_vm11 = vmmov %vm5614_vm10 }
 0x4b7   : > { %v3470_v46 = vunpack.i.h.bf16 %v3468_v43  ;;  %v3469_v53 = vunpack.i.l.bf16 %v3468_v43  ;;  %3492 = vrot.lane.b32.xlu1 %v4685_v42, %s3913_s27  ;;  %vm5616_vm13 = vmmov %vm5614_vm10 }
 0x4b8   : > { %vm5617_vm7 = vmmov %vm5614_vm10 }
 0x4b9   : > { %v1320_v54 = vsel %vm5614_vm10, %v3429_v31, %v3469_v53  ;;  %v1321_v44 = vsel %vm5615_vm11, %v3430_v41, %v3470_v46  ;;  %v1322_v55 = vsel %vm5616_vm13, %v3469_v53, %v3429_v31  ;;  %v1323_v45 = vsel %vm5617_vm7, %v3470_v46, %v3430_v41  ;;  %v3433_v57 = vpop.permute.xlu1 %3432  ;;  %3507 = vrot.lane.b32.xlu0 %v4557_v22, %s3913_s27  ;;  %vm5618_vm5 = vmmov %vm5612_vm4 }
 0x4ba   : > { %v1309_v50 = vsel %vm5618_vm5, %v3425_v20, %v3465_v35  ;;  %v3473_v59 = vpop.permute.xlu0 %3472  ;;  %vm5619_vm10 = vcmp.lt.s32.totalorder %v4075_v9, 14  ;;  %v3435_v7 = vunpack.i.h.bf16 %v3433_v57  ;;  %v3434_v8 = vunpack.i.l.bf16 %v3433_v57 }
 0x4bb   : > { %v4711_v52 = vsel %vm5619_vm10, %v1310_v48, %v1320_v54  ;;  %vm5620_vm11 = vmmov %vm5619_vm10  ;;  %vm5621_vm13 = vcmp.lt.s32.totalorder %v4073_v6, 14  ;;  %3497 = vrot.lane.b32.xlu1 %v4553_v25, %s3913_s27  ;;  %v3475_v12 = vunpack.i.h.bf16 %v3473_v59  ;;  %v3474_v14 = vunpack.i.l.bf16 %v3473_v59 }
 0x4bc   : > { %v4715_v63 = vsel %vm5620_vm11, %v1311_v49, %v1321_v44  ;;  %v4721_v11 = vsel %vm5621_vm13, %v1308_v3, %v1322_v55  ;;  %vm5622_vm7 = vmmov %vm5621_vm13  ;;  %vm5623_vm4 = vcmp.lt.s32.totalorder %v4073_v6, 12  ;;  %vm1746_vm10 = vcmp.lt.s32.totalorder %v4069_v4, 8 }
 0x4bd   : > { %v3516_v29 = vpack.i.bf16 %v4715_v63, %v4711_v52  ;;  %v4727_v15 = vsel %vm5622_vm7, %v1309_v50, %v1323_v45  ;;  %v2756_v38 = vpack.c.bf16 %v4715_v63, %v4711_v52  ;;  %v3438_v0 = vpop.permute.xlu1 %3437  ;;  %v1336_v32 = vsel %vm946_vm15, %v3434_v8, %v3474_v14  ;;  %vm5624_vm5 = vmmov %vm5623_vm4 }
 0x4be   : > { %v3440_v37 = vunpack.i.h.bf16 %v3438_v0  ;;  %v3439_v16 = vunpack.i.l.bf16 %v3438_v0  ;;  %v3511_v2 = vpack.i.bf16 %v4727_v15, %v4721_v11  ;;  %v3478_v30 = vpop.permute.xlu0 %3477  ;;  %v2758_v20 = vpack.c.bf16 %v4727_v15, %v4721_v11  ;;  %vm5625_vm7 = vmmov %vm5623_vm4 }
 0x4bf   : > { %3517 = vrot.lane.b32.xlu0 %v3516_v29, %s3913_s27  ;;  %v3480_v17 = vunpack.i.h.bf16 %v3478_v30  ;;  %v3479_v18 = vunpack.i.l.bf16 %v3478_v30  ;;  %v1337_v35 = vsel %vm946_vm15, %v3435_v7, %v3475_v12  ;;  %v1338_v36 = vsel %vm946_vm15, %v3474_v14, %v3434_v8 }
 0x4c0   : > { %v1339_v40 = vsel %vm946_vm15, %v3475_v12, %v3435_v7  ;;  %3512 = vrot.lane.b32.xlu1 %v3511_v2, %s3913_s27  ;;  %vm496_vm11 = vcmp.lt.s32.totalorder %v4075_v9, 8  ;;  %vm495_vm13 = vcmp.lt.s32.totalorder %v4073_v6, 8  ;;  %v2402_v6 = vld [vmem:[%s5597_s11 + $0x18] sm:$0xff]  ;;  %v2401_v9 = vld [vmem:[%s5597_s11 + $0x10] sm:$0xff] }
 0x4c1   : > { %v1348_v41 = vsel %vm953_vm0, %v3439_v16, %v3479_v18  ;;  %v1349_v31 = vsel %vm953_vm0, %v3440_v37, %v3480_v17  ;;  %v1350_v43 = vsel %vm953_vm0, %v3479_v18, %v3439_v16  ;;  %v1351_v46 = vsel %vm953_vm0, %v3480_v17, %v3440_v37 }
 0x4c2   : > { %v4755_v53 = vsel %vm494_vm14, %v1338_v36, %v1348_v41  ;;  %v4759_v48 = vsel %vm494_vm14, %v1339_v40, %v1349_v31  ;;  %v4763_v49 = vsel %vm5623_vm4, %v1336_v32, %v1350_v43  ;;  %v4767_v54 = vsel %vm5624_vm5, %v1337_v35, %v1351_v46 }
 0x4c3   : > { %v3526_v44 = vpack.i.bf16 %v4759_v48, %v4755_v53  ;;  %v3521_v55 = vpack.i.bf16 %v4767_v54, %v4763_v49  ;;  %v2760_v45 = vpack.c.bf16 %v4759_v48, %v4755_v53  ;;  %v2762_v57 = vpack.c.bf16 %v4767_v54, %v4763_v49 }
 0x4c5   : > { %3527 = vrot.lane.b32.xlu0 %v3526_v44, %s3913_s27  ;;  %3522 = vrot.lane.b32.xlu1 %v3521_v55, %s3913_s27 }
 0x4c9   : > { %3537 = vrot.lane.b32.xlu0 %v4621_v56, %s3903_s23  ;;  %3532 = vrot.lane.b32.xlu1 %v4637_v10, %s3903_s23 }
 0x4cd   : > { %3552 = vrot.lane.b32.xlu0 %v4669_v33, %s3903_s23  ;;  %3542 = vrot.lane.b32.xlu1 %v4685_v42, %s3903_s23 }
 0x4d1   : > { %3557 = vrot.lane.b32.xlu0 %v4557_v22, %s3903_s23  ;;  %3547 = vrot.lane.b32.xlu1 %v4553_v25, %s3903_s23 }
 0x4d5   : > { %3567 = vrot.lane.b32.xlu0 %v3516_v29, %s3903_s23  ;;  %3562 = vrot.lane.b32.xlu1 %v3511_v2, %s3903_s23 }
 0x4d9   : > { %3577 = vrot.lane.b32.xlu0 %v3526_v44, %s3903_s23  ;;  %3572 = vrot.lane.b32.xlu1 %v3521_v55, %s3903_s23 }
 0x4dd   : > { %3587 = vrot.lane.b32.xlu0 %v4621_v56, %s3906_s30  ;;  %3582 = vrot.lane.b32.xlu1 %v4637_v10, %s3906_s30  ;;  %v1537_v56 = vld [vmem:[%s5591_s5 + $0x8] sm:$0xff] }
 0x4de   : > { %1627 = vmatprep.mubr.f32.mxu0 %v1537_v56 }
 0x4e1   : > { %3602 = vrot.lane.b32.xlu0 %v4669_v33, %s3906_s30  ;;  %3592 = vrot.lane.b32.xlu1 %v4685_v42, %s3906_s30 }
 0x4e5   : > { %3607 = vrot.lane.b32.xlu0 %v4557_v22, %s3906_s30  ;;  %3597 = vrot.lane.b32.xlu1 %v4553_v25, %s3906_s30  ;;  %v1545_v22 = vld [vmem:[%s5592_s6 + $0x8] sm:$0xff]  ;;  %v1544_v25 = vld [vmem:[%s5592_s6] sm:$0xff] }
 0x4e9   : > { %3617 = vrot.lane.b32.xlu0 %v3516_v29, %s3906_s30  ;;  %3612 = vrot.lane.b32.xlu1 %v3511_v2, %s3906_s30 }
 0x4ed   : > { %3627 = vrot.lane.b32.xlu0 %v3526_v44, %s3906_s30  ;;  %3622 = vrot.lane.b32.xlu1 %v3521_v55, %s3906_s30 }
 0x4f1   : > { %1553 = vperm.xlu0 %3400, %v1545_v22   ;;  %1548 = vperm.xlu1 %3299, %v1544_v25  }
 0x51f   : > { %v3488_v10 = vpop.permute.xlu0 %3487 }
 0x520   : > { %v3490_v33 = vunpack.i.h.bf16 %v3488_v10  ;;  %v3489_v42 = vunpack.i.l.bf16 %v3488_v10 }
 0x521   : > { %v3483_v3 = vpop.permute.xlu1 %3482 }
 0x522   : > { %v3485_v50 = vunpack.i.h.bf16 %v3483_v3  ;;  %v3484_v59 = vunpack.i.l.bf16 %v3483_v3 }
 0x524   : > { %v1367_v7 = vsel %vm966_vm12, %v3490_v33, %v3485_v50  ;;  %v1366_v8 = vsel %vm966_vm12, %v3489_v42, %v3484_v59  ;;  %v1364_v29 = vsel %vm966_vm12, %v3484_v59, %v3489_v42  ;;  %v1365_v12 = vsel %vm966_vm12, %v3485_v50, %v3490_v33 }
 0x525   : > { %v4828_v14 = vpack.c.bf16 %v1367_v7, %v1366_v8  ;;  %v4830_v0 = vpack.c.bf16 %v1365_v12, %v1364_v29 }
 0x527   : > { %v3503_v37 = vpop.permute.xlu0 %3502  ;;  %2705 = vmatprep.subr.bf16.mxu0 %v4830_v0 }
 0x528   : > { %2707 = vmatpush1.bf16.msra.mxu0 %v4828_v14  ;;  %v3505_v16 = vunpack.i.h.bf16 %v3503_v37  ;;  %v3504_v2 = vunpack.i.l.bf16 %v3503_v37 }
 0x529   : > { %v3493_v30 = vpop.permute.xlu1 %3492 }
 0x52a   : > { %v3495_v17 = vunpack.i.h.bf16 %v3493_v30  ;;  %v3494_v18 = vunpack.i.l.bf16 %v3493_v30 }
 0x52b   : > { %v3508_v32 = vpop.permute.xlu0 %3507 }
 0x52c   : > { %v3510_v35 = vunpack.i.h.bf16 %v3508_v32  ;;  %v3509_v36 = vunpack.i.l.bf16 %v3508_v32  ;;  %v1379_v40 = vsel %vm966_vm12, %v3505_v16, %v3495_v17  ;;  %v1378_v41 = vsel %vm966_vm12, %v3504_v2, %v3494_v18 }
 0x52d   : > { %v1376_v31 = vsel %vm966_vm12, %v3494_v18, %v3504_v2  ;;  %v1377_v43 = vsel %vm966_vm12, %v3495_v17, %v3505_v16  ;;  %v4842_v46 = vpack.c.bf16 %v1379_v40, %v1378_v41  ;;  %v3498_v44 = vpop.permute.xlu1 %3497 }
 0x52e   : > { %v4844_v55 = vpack.c.bf16 %v1377_v43, %v1376_v31  ;;  %v3500_v56 = vunpack.i.h.bf16 %v3498_v44  ;;  %v3499_v22 = vunpack.i.l.bf16 %v3498_v44 }
 0x530   : > { %2709 = vmatprep.subr.bf16.mxu0 %v4844_v55  ;;  %v1391_v42 = vsel %vm966_vm12, %v3510_v35, %v3500_v56  ;;  %v1390_v3 = vsel %vm966_vm12, %v3509_v36, %v3499_v22  ;;  %v1388_v50 = vsel %vm966_vm12, %v3499_v22, %v3509_v36  ;;  %v1389_v59 = vsel %vm966_vm12, %v3500_v56, %v3510_v35 }
 0x531   : > { %v3518_v25 = vpop.permute.xlu0 %3517  ;;  %2711 = vmatpush1.bf16.msra.mxu0 %v4842_v46  ;;  %v4856_v7 = vpack.c.bf16 %v1391_v42, %v1390_v3  ;;  %v4858_v29 = vpack.c.bf16 %v1389_v59, %v1388_v50 }
 0x532   : > { %v3520_v10 = vunpack.i.h.bf16 %v3518_v25  ;;  %v3519_v33 = vunpack.i.l.bf16 %v3518_v25  ;;  %v3513_v8 = vpop.permute.xlu1 %3512 }
 0x533   : > { %v3515_v12 = vunpack.i.h.bf16 %v3513_v8  ;;  %v3514_v37 = vunpack.i.l.bf16 %v3513_v8  ;;  %2713 = vmatprep.subr.bf16.mxu0 %v4858_v29 }
 0x535   : > { %v1403_v16 = vsel %vm966_vm12, %v3520_v10, %v3515_v12  ;;  %v1402_v2 = vsel %vm966_vm12, %v3519_v33, %v3514_v37  ;;  %2715 = vmatpush1.bf16.msra.mxu0 %v4856_v7  ;;  %v1400_v30 = vsel %vm966_vm12, %v3514_v37, %v3519_v33  ;;  %v1401_v17 = vsel %vm966_vm12, %v3515_v12, %v3520_v10 }
 0x536   : > { %v4870_v18 = vpack.c.bf16 %v1403_v16, %v1402_v2  ;;  %v4872_v32 = vpack.c.bf16 %v1401_v17, %v1400_v30 }
 0x537   : > { %v3528_v35 = vpop.permute.xlu0 %3527  ;;  %v3523_v36 = vpop.permute.xlu1 %3522 }
 0x538   : > { %2717 = vmatprep.subr.bf16.mxu0 %v4872_v32  ;;  %v3530_v40 = vunpack.i.h.bf16 %v3528_v35  ;;  %v3529_v41 = vunpack.i.l.bf16 %v3528_v35  ;;  %v3525_v31 = vunpack.i.h.bf16 %v3523_v36  ;;  %v3524_v43 = vunpack.i.l.bf16 %v3523_v36 }
 0x539   : > { %2719 = vmatpush1.bf16.msra.mxu0 %v4870_v18 }
 0x53a   : > { %v1415_v44 = vsel %vm966_vm12, %v3530_v40, %v3525_v31  ;;  %v1414_v56 = vsel %vm966_vm12, %v3529_v41, %v3524_v43  ;;  %v1412_v22 = vsel %vm966_vm12, %v3524_v43, %v3529_v41  ;;  %v1413_v25 = vsel %vm966_vm12, %v3525_v31, %v3530_v40 }
 0x53b   : > { %v4884_v10 = vpack.c.bf16 %v1415_v44, %v1414_v56  ;;  %v3538_v33 = vpop.permute.xlu0 %3537  ;;  %v3533_v42 = vpop.permute.xlu1 %3532  ;;  %v4886_v3 = vpack.c.bf16 %v1413_v25, %v1412_v22 }
 0x53c   : > { %v3540_v50 = vunpack.i.h.bf16 %v3538_v33  ;;  %v3539_v59 = vunpack.i.l.bf16 %v3538_v33  ;;  %v3535_v8 = vunpack.i.h.bf16 %v3533_v42  ;;  %v3534_v12 = vunpack.i.l.bf16 %v3533_v42 }
 0x53d   : > { %2721 = vmatprep.subr.bf16.mxu0 %v4886_v3 }
 0x53e   : > { %v1427_v37 = vsel %vm585_vm1, %v3540_v50, %v3535_v8  ;;  %v1426_v16 = vsel %vm585_vm1, %v3539_v59, %v3534_v12  ;;  %2723 = vmatpush1.bf16.msra.mxu0 %v4884_v10  ;;  %v1424_v2 = vsel %vm585_vm1, %v3534_v12, %v3539_v59  ;;  %v1425_v30 = vsel %vm585_vm1, %v3535_v8, %v3540_v50 }
 0x53f   : > { %v2726_v17 = vpack.c.bf16 %v1427_v37, %v1426_v16  ;;  %v3553_v35 = vpop.permute.xlu0 %3552  ;;  %v3543_v36 = vpop.permute.xlu1 %3542  ;;  %v2724_v40 = vpack.c.bf16 %v1425_v30, %v1424_v2 }
 0x540   : > { %v3555_v41 = vunpack.i.h.bf16 %v3553_v35  ;;  %v3554_v31 = vunpack.i.l.bf16 %v3553_v35  ;;  %v3545_v43 = vunpack.i.h.bf16 %v3543_v36  ;;  %v3544_v44 = vunpack.i.l.bf16 %v3543_v36 }
 0x541   : > { %2725 = vmatprep.subr.bf16.mxu0 %v2724_v40 }
 0x542   : > { %v1439_v56 = vsel %vm585_vm1, %v3555_v41, %v3545_v43  ;;  %v1438_v22 = vsel %vm585_vm1, %v3554_v31, %v3544_v44  ;;  %2727 = vmatpush1.bf16.msra.mxu0 %v2726_v17  ;;  %v1436_v25 = vsel %vm585_vm1, %v3544_v44, %v3554_v31  ;;  %v1437_v33 = vsel %vm585_vm1, %v3545_v43, %v3555_v41 }
 0x543   : > { %v2730_v42 = vpack.c.bf16 %v1439_v56, %v1438_v22  ;;  %v3558_v50 = vpop.permute.xlu0 %3557  ;;  %v3548_v59 = vpop.permute.xlu1 %3547  ;;  %v2728_v8 = vpack.c.bf16 %v1437_v33, %v1436_v25 }
 0x544   : > { %v3560_v12 = vunpack.i.h.bf16 %v3558_v50  ;;  %v3559_v37 = vunpack.i.l.bf16 %v3558_v50  ;;  %v3550_v16 = vunpack.i.h.bf16 %v3548_v59  ;;  %v3549_v2 = vunpack.i.l.bf16 %v3548_v59 }
 0x545   : > { %2729 = vmatprep.subr.bf16.mxu0 %v2728_v8 }
 0x546   : > { %v1451_v30 = vsel %vm585_vm1, %v3560_v12, %v3550_v16  ;;  %v1450_v17 = vsel %vm585_vm1, %v3559_v37, %v3549_v2  ;;  %2731 = vmatpush1.bf16.msra.mxu0 %v2730_v42  ;;  %v1448_v35 = vsel %vm585_vm1, %v3549_v2, %v3559_v37  ;;  %v1449_v36 = vsel %vm585_vm1, %v3550_v16, %v3560_v12 }
 0x547   : > { %v2734_v40 = vpack.c.bf16 %v1451_v30, %v1450_v17  ;;  %v3568_v41 = vpop.permute.xlu0 %3567  ;;  %v3563_v31 = vpop.permute.xlu1 %3562  ;;  %v2732_v43 = vpack.c.bf16 %v1449_v36, %v1448_v35 }
 0x548   : > { %v3570_v44 = vunpack.i.h.bf16 %v3568_v41  ;;  %v3569_v56 = vunpack.i.l.bf16 %v3568_v41  ;;  %v3565_v22 = vunpack.i.h.bf16 %v3563_v31  ;;  %v3564_v25 = vunpack.i.l.bf16 %v3563_v31 }
 0x549   : > { %2733 = vmatprep.subr.bf16.mxu0 %v2732_v43 }
 0x54a   : > { %v1463_v33 = vsel %vm585_vm1, %v3570_v44, %v3565_v22  ;;  %v1462_v42 = vsel %vm585_vm1, %v3569_v56, %v3564_v25  ;;  %2735 = vmatpush1.bf16.msra.mxu0 %v2734_v40  ;;  %v1460_v50 = vsel %vm585_vm1, %v3564_v25, %v3569_v56  ;;  %v1461_v59 = vsel %vm585_vm1, %v3565_v22, %v3570_v44 }
 0x54b   : > { %v2738_v8 = vpack.c.bf16 %v1463_v33, %v1462_v42  ;;  %v3578_v12 = vpop.permute.xlu0 %3577  ;;  %v3573_v37 = vpop.permute.xlu1 %3572  ;;  %v2736_v16 = vpack.c.bf16 %v1461_v59, %v1460_v50 }
 0x54c   : > { %v3580_v2 = vunpack.i.h.bf16 %v3578_v12  ;;  %v3579_v30 = vunpack.i.l.bf16 %v3578_v12  ;;  %v3575_v17 = vunpack.i.h.bf16 %v3573_v37  ;;  %v3574_v35 = vunpack.i.l.bf16 %v3573_v37  ;;  %v1536_v12 = vld [vmem:[%s5591_s5] sm:$0xff] }
 0x54d   : > { %2737 = vmatprep.subr.bf16.mxu0 %v2736_v16  ;;  %v1541_v16 = vld [vmem:[%s5591_s5 + $0x28] sm:$0xff] }
 0x54e   : > { %v1475_v36 = vsel %vm585_vm1, %v3580_v2, %v3575_v17  ;;  %v1474_v40 = vsel %vm585_vm1, %v3579_v30, %v3574_v35  ;;  %2739 = vmatpush1.bf16.msra.mxu0 %v2738_v8  ;;  %v1472_v41 = vsel %vm585_vm1, %v3574_v35, %v3579_v30  ;;  %v1473_v31 = vsel %vm585_vm1, %v3575_v17, %v3580_v2 }
 0x54f   : > { %v2742_v43 = vpack.c.bf16 %v1475_v36, %v1474_v40  ;;  %v2740_v44 = vpack.c.bf16 %v1473_v31, %v1472_v41  ;;  %v3588_v56 = vpop.permute.xlu0 %3587  ;;  %v3583_v22 = vpop.permute.xlu1 %3582  ;;  %vm1556_vm1 = vcmask 130048  }
 0x550   : > { %v3590_v58 = vunpack.i.h.bf16 %v3588_v56  ;;  %v3589_v1 = vunpack.i.l.bf16 %v3588_v56  ;;  %v3584_v42 = vunpack.i.l.bf16 %v3583_v22  ;;  %v1540_v56 = vld [vmem:[%s5591_s5 + $0x20] sm:$0xff] }
 0x551   : > { %2741 = vmatprep.subr.bf16.mxu0 %v2740_v44 }
 0x552   : > { %2743 = vmatpush1.bf16.msra.mxu0 %v2742_v43  ;;  %v1486_v23 = vsel %vm678_vm6, %v3589_v1, %v3584_v42  ;;  %v1484_v24 = vsel %vm678_vm6, %v3584_v42, %v3589_v1 }
 0x553   : > { %2745 = vmatprep.subr.bf16.mxu0 %v2744_v61  ;;  %v3603_v25 = vpop.permute.xlu0 %3602  ;;  %v3593_v33 = vpop.permute.xlu1 %3592  ;;  %v3585_v61 = vunpack.i.h.bf16 %v3583_v22  ;;  %v1539_v22 = vld [vmem:[%s5591_s5 + $0x18] sm:$0xff] }
 0x554   : > { %v3604_v19 = vunpack.i.l.bf16 %v3603_v25  ;;  %v3595_v51 = vunpack.i.h.bf16 %v3593_v33  ;;  %v3594_v34 = vunpack.i.l.bf16 %v3593_v33 }
 0x555   : > { %v1487_v21 = vsel %vm678_vm6, %v3590_v58, %v3585_v61  ;;  %v1485_v62 = vsel %vm678_vm6, %v3585_v61, %v3590_v58 }
 0x556   : > { %2747 = vmatpush1.bf16.msra.mxu0 %v2746_v13  ;;  %v3605_v13 = vunpack.i.h.bf16 %v3603_v25  ;;  %v2764_v39 = vpack.c.bf16 %v1487_v21, %v1486_v23  ;;  %v1496_v53 = vsel %vm678_vm6, %v3594_v34, %v3604_v19 }
 0x557   : > { %2749 = vmatprep.subr.bf16.mxu0 %v2748_v28  ;;  %v3608_v60 = vpop.permute.xlu0 %3607  ;;  %v3598_v5 = vpop.permute.xlu1 %3597  ;;  %v1498_v28 = vsel %vm678_vm6, %v3604_v19, %v3594_v34 }
 0x558   : > { %v3610_v52 = vunpack.i.h.bf16 %v3608_v60  ;;  %v3609_v63 = vunpack.i.l.bf16 %v3608_v60  ;;  %v3600_v11 = vunpack.i.h.bf16 %v3598_v5  ;;  %v3599_v15 = vunpack.i.l.bf16 %v3598_v5 }
 0x55a   : > { %2751 = vmatpush1.bf16.msra.mxu0 %v2750_v47  ;;  %v1499_v47 = vsel %vm678_vm6, %v3605_v13, %v3595_v51  ;;  %v1510_v49 = vsel %vm678_vm6, %v3609_v63, %v3599_v15  ;;  %v1511_v54 = vsel %vm678_vm6, %v3610_v52, %v3600_v11  ;;  %v1509_v30 = vsel %vm678_vm6, %v3600_v11, %v3610_v52 }
 0x55b   : > { %2753 = vmatprep.subr.bf16.mxu0 %v2752_v26  ;;  %v3618_v26 = vpop.permute.xlu0 %3617  ;;  %v2768_v48 = vpack.c.bf16 %v1499_v47, %v1498_v28  ;;  %v1508_v17 = vsel %vm678_vm6, %v3599_v15, %v3609_v63  ;;  %v2772_v35 = vpack.c.bf16 %v1511_v54, %v1510_v49 }
 0x55c   : > { %v3619_v50 = vunpack.i.l.bf16 %v3618_v26  ;;  %v2774_v25 = vpack.c.bf16 %v1509_v30, %v1508_v17 }
 0x55e   : > { %2755 = vmatpush1.bf16.msra.mxu0 %v2754_v27  ;;  %v3613_v27 = vpop.permute.xlu1 %3612 }
 0x55f   : > { %2757 = vmatprep.subr.bf16.mxu0 %v2756_v38  ;;  %v2766_v38 = vpack.c.bf16 %v1485_v62, %v1484_v24  ;;  %v3615_v59 = vunpack.i.h.bf16 %v3613_v27  ;;  %v3614_v8 = vunpack.i.l.bf16 %v3613_v27 }
 0x561   : > { %v1522_v36 = vsel %vm678_vm6, %v3619_v50, %v3614_v8  ;;  %v1520_v58 = vsel %vm678_vm6, %v3614_v8, %v3619_v50 }
 0x562   : > { %2759 = vmatpush1.bf16.msra.mxu0 %v2758_v20  ;;  %v1497_v20 = vsel %vm678_vm6, %v3595_v51, %v3605_v13  ;;  %v3623_v37 = vpop.permute.xlu1 %3622 }
 0x563   : > { %2761 = vmatprep.subr.bf16.mxu0 %v2760_v45  ;;  %v3620_v45 = vunpack.i.h.bf16 %v3618_v26  ;;  %v2770_v2 = vpack.c.bf16 %v1497_v20, %v1496_v53  ;;  %v3625_v43 = vunpack.i.h.bf16 %v3623_v37  ;;  %v3624_v44 = vunpack.i.l.bf16 %v3623_v37 }
 0x565   : > { %v1523_v40 = vsel %vm678_vm6, %v3620_v45, %v3615_v59  ;;  %v1521_v33 = vsel %vm678_vm6, %v3615_v59, %v3620_v45 }
 0x566   : > { %2763 = vmatpush1.bf16.msra.mxu0 %v2762_v57  ;;  %v3628_v57 = vpop.permute.xlu0 %3627  ;;  %v2776_v1 = vpack.c.bf16 %v1523_v40, %v1522_v36  ;;  %v2778_v60 = vpack.c.bf16 %v1521_v33, %v1520_v58 }
 0x567   : > { %2765 = vmatprep.subr.bf16.mxu0 %v2764_v39  ;;  %v3630_v41 = vunpack.i.h.bf16 %v3628_v57  ;;  %v3629_v31 = vunpack.i.l.bf16 %v3628_v57 }
 0x569   : > { %v1534_v61 = vsel %vm678_vm6, %v3629_v31, %v3624_v44  ;;  %v1535_v42 = vsel %vm678_vm6, %v3630_v41, %v3625_v43  ;;  %v1533_v5 = vsel %vm678_vm6, %v3625_v43, %v3630_v41  ;;  %v1532_v13 = vsel %vm678_vm6, %v3624_v44, %v3629_v31 }
 0x56a   : > { %2767 = vmatpush1.bf16.msra.mxu0 %v2766_v38  ;;  %v2780_v19 = vpack.c.bf16 %v1535_v42, %v1534_v61  ;;  %v2782_v51 = vpack.c.bf16 %v1533_v5, %v1532_v13  ;;  %vm1733_vm6 = vcmp.lt.s32.totalorder %v4069_v4, 120  ;;  %v2399_v4 = vld [vmem:[%s5597_s11] sm:$0xff] }
 0x56b   : > { %2769 = vmatprep.subr.bf16.mxu0 %v2768_v48 }
 0x56d   : > { %1628 = vmatmul.mubr.f32.vlgmr.msra.gmra.mrb[2].mxu0 %v1536_v12 }
 0x56e   : > { %2771 = vmatpush1.bf16.msra.mxu0 %v2770_v2  ;;  %1633 = vmatprep.mubr.f32.mxu0 %v1541_v16 }
 0x56f   : > { %2773 = vmatprep.subr.bf16.mxu0 %v2772_v35 }
 0x571   : > { %1634 = vmatmul.mubr.f32.gmra.mrb[4].mxu0 %v1540_v56 }
 0x572   : > { %2775 = vmatpush1.bf16.msra.mxu0 %v2774_v25  ;;  %2645 = vmatprep.mubr.msk.f32.mxu0 %vm1556_vm1, %v1539_v22 }
 0x573   : > { %2777 = vmatprep.subr.bf16.mxu0 %v2776_v1 }
 0x576   : > { %2779 = vmatpush1.bf16.msra.mxu0 %v2778_v60 }
 0x577   : > { %2781 = vmatprep.subr.bf16.mxu0 %v2780_v19 }
 0x57a   : > { %2783 = vmatpush1.bf16.msra.mxu0 %v2782_v51 }
 0x57b   : > { %2785 = vmatprep.subr.bf16.mxu0 %v4828_v14  ;;  %v1538_v14 = vld [vmem:[%s5591_s5 + $0x10] sm:$0xff] }
 0x57e   : > { %2787 = vmatpush1.bf16.msra.mxu0 %v4830_v0  ;;  %v1543_v0 = vld [vmem:[%s5591_s5 + $0x38] sm:$0xff] }
 0x57f   : > { %2789 = vmatprep.subr.bf16.mxu0 %v4842_v46  ;;  %v1542_v46 = vld [vmem:[%s5591_s5 + $0x30] sm:$0xff] }
 0x582   : > { %2791 = vmatpush1.bf16.msra.mxu0 %v4844_v55  ;;  %v1549_v55 = vpop.permute.xlu1 %1548 }
 0x583   : > { %2793 = vmatprep.subr.bf16.mxu0 %v4856_v7 }
 0x586   : > { %2795 = vmatpush1.bf16.msra.mxu0 %v4858_v29 }
 0x587   : > { %2797 = vmatprep.subr.bf16.mxu0 %v4870_v18 }
 0x58a   : > { %2799 = vmatpush1.bf16.msra.mxu0 %v4872_v32 }
 0x58b   : > { %2801 = vmatprep.subr.bf16.mxu0 %v4884_v10  ;;  %v1554_v10 = vpop.permute.xlu0 %1553 }
 0x58e   : > { %2803 = vmatpush1.bf16.msra.mxu0 %v4886_v3 }
 0x591   : > { %1705 = vmatmul.mubr.f32.vlgmr.msra.gmra.mrb[2].mxu0 %v1538_v14 }
 0x592   : > { %2646 = vmatprep.mubr.msk.f32.mxu0 %vm1556_vm1, %v1543_v0 }
 0x595   : > { %1711 = vmatmul.mubr.f32.gmra.mrb[4].mxu0 %v1542_v46 }
 0x664   : > { %v1706_v7 = vpop.f32.mrb[2].mxu0 }
 0x665   : > { %v3104_v29 = vadd.f32 %v1706_v7, %v1549_v55  ;;  %v1708_v18 = vpop.f32.mrb[3].mxu0 }
 0x666   : > { %v3105_v32 = vadd.f32 %v1708_v18, %v1549_v55 }
 0x667   : > { %v1717_v34 = vmul.f32 0.01, %v3104_v29 }
 0x668   : > { %v1712_v3 = vpop.f32.mrb[4].mxu0  ;;  %v1718_v62 = vmul.f32 0.01, %v3105_v32 }
 0x669   : > { %v3106_v23 = vadd.f32 %v1712_v3, %v1554_v10  ;;  %v1714_v21 = vpop.f32.mrb[5].mxu0  ;;  %v1721_v39 = vmax.f32 %v3104_v29, %v1717_v34 }
 0x66a   : > { %v3107_v24 = vadd.f32 %v1714_v21, %v1554_v10  ;;  %v1722_v47 = vmax.f32 %v3105_v32, %v1718_v62 }
 0x66b   : > { %v1719_v26 = vmul.f32 0.01, %v3106_v23 }
 0x66c   : > { %v1720_v27 = vmul.f32 0.01, %v3107_v24 }
 0x66d   : > { %v1723_v28 = vmax.f32 %v3106_v23, %v1719_v26 }
 0x66e   : > { %v1724_v52 = vmax.f32 %v3107_v24, %v1720_v27 }
 0x66f   : > { %v5033_v63 = vpack.i.bf16 %v1723_v28, %v1721_v39  ;;  %v5041_v15 = vpack.c.bf16 %v1723_v28, %v1721_v39 }
 0x670   : > { %v5035_v11 = vpack.i.bf16 %v1724_v52, %v1722_v47  ;;  %v5043_v38 = vpack.c.bf16 %v1724_v52, %v1722_v47 }
 0x671   : > { %3632 = vrot.lane.b32.xlu1 %v5033_v63, %s3914_s19 }
 0x672   : > { %3662 = vrot.lane.b32.xlu0 %v5035_v11, %s3914_s19 }
 0x675   : > { %3637 = vrot.lane.b32.xlu1 %v5033_v63, %s3915_s20 }
 0x676   : > { %3667 = vrot.lane.b32.xlu0 %v5035_v11, %s3915_s20 }
 0x679   : > { %3642 = vrot.lane.b32.xlu1 %v5033_v63, %s3911_s18 }
 0x67a   : > { %3672 = vrot.lane.b32.xlu0 %v5035_v11, %s3911_s18 }
 0x67d   : > { %3647 = vrot.lane.b32.xlu1 %v5033_v63, %s3910_s17 }
 0x67e   : > { %3677 = vrot.lane.b32.xlu0 %v5035_v11, %s3910_s17 }
 0x681   : > { %3652 = vrot.lane.b32.xlu1 %v5033_v63, %s3909_s16 }
 0x682   : > { %3682 = vrot.lane.b32.xlu0 %v5035_v11, %s3909_s16 }
 0x685   : > { %3657 = vrot.lane.b32.xlu1 %v5033_v63, %s3912_s24 }
 0x686   : > { %3687 = vrot.lane.b32.xlu0 %v5035_v11, %s3912_s24 }
 0x6e3   : > { %v3633_v20 = vpop.permute.xlu1 %3632 }
 0x6e4   : > { %v3663_v53 = vpop.permute.xlu0 %3662  ;;  %v3635_v48 = vunpack.i.h.bf16 %v3633_v20  ;;  %v3634_v45 = vunpack.i.l.bf16 %v3633_v20 }
 0x6e5   : > { %v3665_v50 = vunpack.i.h.bf16 %v3663_v53  ;;  %v3664_v59 = vunpack.i.l.bf16 %v3663_v53 }
 0x6e7   : > { %v3638_v8 = vpop.permute.xlu1 %3637  ;;  %v1736_v16 = vsel %vm1733_vm6, %v3664_v59, %v3634_v45  ;;  %v1737_v2 = vsel %vm1733_vm6, %v3665_v50, %v3635_v48  ;;  %v1734_v41 = vsel %vm1733_vm6, %v3634_v45, %v3664_v59  ;;  %v1735_v56 = vsel %vm1733_vm6, %v3635_v48, %v3665_v50 }
 0x6e8   : > { %v3640_v12 = vunpack.i.h.bf16 %v3638_v8  ;;  %v3639_v49 = vunpack.i.l.bf16 %v3638_v8  ;;  %v3668_v54 = vpop.permute.xlu0 %3667 }
 0x6e9   : > { %v3670_v57 = vunpack.i.h.bf16 %v3668_v54  ;;  %v3669_v37 = vunpack.i.l.bf16 %v3668_v54 }
 0x6eb   : > { %v1747_v30 = vsel %vm1746_vm10, %v3639_v49, %v3669_v37  ;;  %v1748_v17 = vsel %vm1746_vm10, %v3640_v12, %v3670_v57  ;;  %v1749_v35 = vsel %vm1746_vm10, %v3669_v37, %v3639_v49  ;;  %v1750_v36 = vsel %vm1746_vm10, %v3670_v57, %v3640_v12  ;;  %v3643_v40 = vpop.permute.xlu1 %3642 }
 0x6ec   : > { %v3673_v31 = vpop.permute.xlu0 %3672  ;;  %v1756_v43 = vsel %vm496_vm11, %v1736_v16, %v1747_v30  ;;  %v1758_v44 = vsel %vm496_vm11, %v1737_v2, %v1748_v17  ;;  %v3645_v22 = vunpack.i.h.bf16 %v3643_v40  ;;  %v3644_v25 = vunpack.i.l.bf16 %v3643_v40 }
 0x6ed   : > { %v3696_v33 = vpack.i.bf16 %v1758_v44, %v1756_v43  ;;  %v3675_v58 = vunpack.i.h.bf16 %v3673_v31  ;;  %v3674_v1 = vunpack.i.l.bf16 %v3673_v31  ;;  %v1755_v61 = vsel %vm495_vm13, %v1734_v41, %v1749_v35 }
 0x6ee   : > { %v1757_v42 = vsel %vm495_vm13, %v1735_v56, %v1750_v36  ;;  %v5094_v5 = vpack.c.bf16 %v1758_v44, %v1756_v43 }
 0x6ef   : > { %v3648_v60 = vpop.permute.xlu1 %3647  ;;  %3697 = vrot.lane.b32.xlu0 %v3696_v33, %s3913_s27  ;;  %v3691_v51 = vpack.i.bf16 %v1757_v42, %v1755_v61  ;;  %v5096_v14 = vpack.c.bf16 %v1757_v42, %v1755_v61  ;;  %v1769_v7 = vsel %vm898_vm9, %v3674_v1, %v3644_v25  ;;  %v1770_v29 = vsel %vm898_vm9, %v3675_v58, %v3645_v22  ;;  %v1872_v33 = vld [vmem:[%s5594_s8 + $0x8] sm:$0xff] }
 0x6f0   : > { %v3650_v13 = vunpack.i.h.bf16 %v3648_v60  ;;  %v3649_v19 = vunpack.i.l.bf16 %v3648_v60  ;;  %v3678_v0 = vpop.permute.xlu0 %3677  ;;  %v1767_v23 = vsel %vm898_vm9, %v3644_v25, %v3674_v1  ;;  %v1768_v21 = vsel %vm898_vm9, %v3645_v22, %v3675_v58  ;;  %v1864_v58 = vld [vmem:[%s5593_s7 + $0x8] sm:$0xff] }
 0x6f1   : > { %v3680_v46 = vunpack.i.h.bf16 %v3678_v0  ;;  %v3679_v55 = vunpack.i.l.bf16 %v3678_v0  ;;  %3692 = vrot.lane.b32.xlu1 %v3691_v51, %s3913_s27  ;;  %2805 = vmatprep.subr.bf16.mxu1 %v5096_v14 }
 0x6f2   : > { %2807 = vmatpush1.bf16.msra.mxu1 %v5094_v5  ;;  %1953 = vmatprep.mubr.f32.mxu1 %v1864_v58  ;;  %v1865_v58 = vld [vmem:[%s5593_s7 + $0x10] sm:$0xff] }
 0x6f3   : > { %v1779_v18 = vsel %vm905_vm8, %v3649_v19, %v3679_v55  ;;  %v1780_v32 = vsel %vm905_vm8, %v3650_v13, %v3680_v46  ;;  %v1781_v10 = vsel %vm905_vm8, %v3679_v55, %v3649_v19  ;;  %v1782_v3 = vsel %vm905_vm8, %v3680_v46, %v3650_v13  ;;  %v3653_v34 = vpop.permute.xlu1 %3652 }
 0x6f4   : > { %v3683_v62 = vpop.permute.xlu0 %3682  ;;  %v1784_v24 = vsel %vm492_vm3, %v1769_v7, %v1779_v18  ;;  %v1786_v26 = vsel %vm492_vm3, %v1770_v29, %v1780_v32  ;;  %v3654_v27 = vunpack.i.l.bf16 %v3653_v34  ;;  %v1783_v47 = vsel %vm491_vm2, %v1767_v23, %v1781_v10 }
 0x6f5   : > { %v3684_v39 = vunpack.i.l.bf16 %v3683_v62  ;;  %v3711_v28 = vpack.i.bf16 %v1786_v26, %v1784_v24  ;;  %v3655_v52 = vunpack.i.h.bf16 %v3653_v34  ;;  %v3685_v20 = vunpack.i.h.bf16 %v3683_v62 }
 0x6f6   : > { %v1785_v53 = vsel %vm491_vm2, %v1768_v21, %v1782_v3  ;;  %v5126_v45 = vpack.c.bf16 %v1786_v26, %v1784_v24 }
 0x6f7   : > { %v3658_v48 = vpop.permute.xlu1 %3657  ;;  %3712 = vrot.lane.b32.xlu0 %v3711_v28, %s3913_s27  ;;  %v3701_v8 = vpack.i.bf16 %v1785_v53, %v1783_v47  ;;  %v5128_v12 = vpack.c.bf16 %v1785_v53, %v1783_v47  ;;  %v1795_v54 = vsel %vm946_vm15, %v3654_v27, %v3684_v39  ;;  %v1796_v16 = vsel %vm946_vm15, %v3655_v52, %v3685_v20 }
 0x6f8   : > { %v3660_v50 = vunpack.i.h.bf16 %v3658_v48  ;;  %v3659_v59 = vunpack.i.l.bf16 %v3658_v48  ;;  %v3688_v49 = vpop.permute.xlu0 %3687  ;;  %v1797_v2 = vsel %vm946_vm15, %v3684_v39, %v3654_v27  ;;  %v1798_v30 = vsel %vm946_vm15, %v3685_v20, %v3655_v52 }
 0x6f9   : > { %v3690_v57 = vunpack.i.h.bf16 %v3688_v49  ;;  %v3689_v37 = vunpack.i.l.bf16 %v3688_v49  ;;  %3702 = vrot.lane.b32.xlu1 %v3701_v8, %s3913_s27  ;;  %2809 = vmatprep.subr.bf16.mxu1 %v5128_v12 }
 0x6fa   : > { %2811 = vmatpush1.bf16.msra.mxu1 %v5126_v45 }
 0x6fb   : > { %v1807_v17 = vsel %vm953_vm0, %v3659_v59, %v3689_v37  ;;  %v1808_v35 = vsel %vm953_vm0, %v3660_v50, %v3690_v57  ;;  %v1809_v36 = vsel %vm953_vm0, %v3689_v37, %v3659_v59  ;;  %v1810_v40 = vsel %vm953_vm0, %v3690_v57, %v3660_v50  ;;  %2813 = vmatprep.subr.bf16.mxu1 %v5041_v15 }
 0x6fc   : > { %3717 = vrot.lane.b32.xlu0 %v5035_v11, %s3913_s27  ;;  %v1812_v41 = vsel %vm494_vm14, %v1797_v2, %v1807_v17  ;;  %v1814_v31 = vsel %vm494_vm14, %v1798_v30, %v1808_v35  ;;  %v1811_v43 = vsel %vm5625_vm7, %v1795_v54, %v1809_v36  ;;  %v1813_v56 = vsel %vm5623_vm4, %v1796_v16, %v1810_v40 }
 0x6fd   : > { %v3726_v44 = vpack.i.bf16 %v1814_v31, %v1812_v41  ;;  %3707 = vrot.lane.b32.xlu1 %v5033_v63, %s3913_s27  ;;  %v3721_v22 = vpack.i.bf16 %v1813_v56, %v1811_v43  ;;  %v5162_v25 = vpack.c.bf16 %v1813_v56, %v1811_v43  ;;  %v5165_v11 = vpack.c.bf16 %v1814_v31, %v1812_v41  ;;  %v1871_v63 = vld [vmem:[%s5594_s8] sm:$0xff] }
 0x6fe   : > { %2815 = vmatpush1.bf16.msra.mxu1 %v5043_v38  ;;  %v1863_v56 = vld [vmem:[%s5593_s7] sm:$0xff] }
 0x6ff   : > { %2817 = vmatprep.subr.bf16.mxu1 %v5162_v25 }
 0x700   : > { %3727 = vrot.lane.b32.xlu0 %v3726_v44, %s3913_s27 }
 0x701   : > { %3722 = vrot.lane.b32.xlu1 %v3721_v22, %s3913_s27  ;;  %v1868_v22 = vld [vmem:[%s5593_s7 + $0x28] sm:$0xff] }
 0x702   : > { %2819 = vmatpush1.bf16.msra.mxu1 %v5165_v11 }
 0x703   : > { %2821 = vmatprep.subr.bf16.mxu1 %v5096_v14 }
 0x704   : > { %1880 = vperm.xlu0 %3400, %v1872_v33   ;;  %v1867_v33 = vld [vmem:[%s5593_s7 + $0x20] sm:$0xff] }
 0x705   : > { %1875 = vperm.xlu1 %3299, %v1871_v63   ;;  %v1866_v63 = vld [vmem:[%s5593_s7 + $0x18] sm:$0xff] }
 0x706   : > { %2823 = vmatpush1.bf16.msra.mxu1 %v5094_v5 }
 0x761   : > { %v3698_v1 = vpop.permute.xlu0 %3697 }
 0x762   : > { %v3700_v61 = vunpack.i.h.bf16 %v3698_v1  ;;  %v3699_v42 = vunpack.i.l.bf16 %v3698_v1 }
 0x763   : > { %v3693_v60 = vpop.permute.xlu1 %3692 }
 0x764   : > { %v3695_v13 = vunpack.i.h.bf16 %v3693_v60  ;;  %v3694_v19 = vunpack.i.l.bf16 %v3693_v60 }
 0x766   : > { %v1824_v51 = vsel %vm966_vm12, %v3695_v13, %v3700_v61  ;;  %v1826_v0 = vsel %vm966_vm12, %v3700_v61, %v3695_v13  ;;  %v1823_v46 = vsel %vm966_vm12, %v3694_v19, %v3699_v42  ;;  %v1825_v55 = vsel %vm966_vm12, %v3699_v42, %v3694_v19 }
 0x767   : > { %v5190_v7 = vpack.c.bf16 %v1824_v51, %v1823_v46  ;;  %v5192_v29 = vpack.c.bf16 %v1826_v0, %v1825_v55 }
 0x769   : > { %v3713_v18 = vpop.permute.xlu0 %3712  ;;  %2825 = vmatprep.subr.bf16.mxu1 %v5190_v7 }
 0x76a   : > { %2827 = vmatpush1.bf16.msra.mxu1 %v5192_v29  ;;  %v3715_v32 = vunpack.i.h.bf16 %v3713_v18  ;;  %v3714_v10 = vunpack.i.l.bf16 %v3713_v18 }
 0x76b   : > { %v3703_v3 = vpop.permute.xlu1 %3702 }
 0x76c   : > { %v3705_v34 = vunpack.i.h.bf16 %v3703_v3  ;;  %v3704_v23 = vunpack.i.l.bf16 %v3703_v3 }
 0x76e   : > { %v3718_v21 = vpop.permute.xlu0 %3717  ;;  %v1838_v62 = vsel %vm966_vm12, %v3715_v32, %v3705_v34  ;;  %v1837_v24 = vsel %vm966_vm12, %v3714_v10, %v3704_v23  ;;  %v1835_v47 = vsel %vm966_vm12, %v3704_v23, %v3714_v10  ;;  %v1836_v52 = vsel %vm966_vm12, %v3705_v34, %v3715_v32 }
 0x76f   : > { %v3720_v26 = vunpack.i.h.bf16 %v3718_v21  ;;  %v3719_v27 = vunpack.i.l.bf16 %v3718_v21  ;;  %v2830_v39 = vpack.c.bf16 %v1838_v62, %v1837_v24  ;;  %v3708_v28 = vpop.permute.xlu1 %3707  ;;  %v2828_v48 = vpack.c.bf16 %v1836_v52, %v1835_v47 }
 0x770   : > { %v3710_v20 = vunpack.i.h.bf16 %v3708_v28  ;;  %v3709_v53 = vunpack.i.l.bf16 %v3708_v28 }
 0x771   : > { %2829 = vmatprep.subr.bf16.mxu1 %v2828_v48 }
 0x772   : > { %v3728_v50 = vpop.permute.xlu0 %3727  ;;  %v1850_v59 = vsel %vm966_vm12, %v3720_v26, %v3710_v20  ;;  %v1849_v8 = vsel %vm966_vm12, %v3719_v27, %v3709_v53  ;;  %2831 = vmatpush1.bf16.msra.mxu1 %v2830_v39  ;;  %v1847_v16 = vsel %vm966_vm12, %v3709_v53, %v3719_v27  ;;  %v1848_v2 = vsel %vm966_vm12, %v3710_v20, %v3720_v26 }
 0x773   : > { %v3730_v49 = vunpack.i.h.bf16 %v3728_v50  ;;  %v3729_v54 = vunpack.i.l.bf16 %v3728_v50  ;;  %v2834_v57 = vpack.c.bf16 %v1850_v59, %v1849_v8  ;;  %v3723_v37 = vpop.permute.xlu1 %3722  ;;  %v2832_v35 = vpack.c.bf16 %v1848_v2, %v1847_v16 }
 0x774   : > { %v3725_v30 = vunpack.i.h.bf16 %v3723_v37  ;;  %v3724_v17 = vunpack.i.l.bf16 %v3723_v37 }
 0x775   : > { %2833 = vmatprep.subr.bf16.mxu1 %v2832_v35 }
 0x776   : > { %v1862_v36 = vsel %vm966_vm12, %v3730_v49, %v3725_v30  ;;  %v1861_v40 = vsel %vm966_vm12, %v3729_v54, %v3724_v17  ;;  %v1859_v41 = vsel %vm966_vm12, %v3724_v17, %v3729_v54  ;;  %v1860_v31 = vsel %vm966_vm12, %v3725_v30, %v3730_v49  ;;  %2835 = vmatpush1.bf16.msra.mxu1 %v2834_v57 }
 0x777   : > { %v2838_v43 = vpack.c.bf16 %v1862_v36, %v1861_v40  ;;  %v2836_v44 = vpack.c.bf16 %v1860_v31, %v1859_v41 }
 0x779   : > { %2837 = vmatprep.subr.bf16.mxu1 %v2836_v44 }
 0x77a   : > { %2839 = vmatpush1.bf16.msra.mxu1 %v2838_v43 }
 0x77b   : > { %2841 = vmatprep.subr.bf16.mxu1 %v5190_v7 }
 0x77e   : > { %2843 = vmatpush1.bf16.msra.mxu1 %v5192_v29 }
 0x77f   : > { %2845 = vmatprep.subr.bf16.mxu1 %v5094_v5 }
 0x782   : > { %2847 = vmatpush1.bf16.msra.mxu1 %v5096_v14 }
 0x783   : > { %2849 = vmatprep.subr.bf16.mxu1 %v5126_v45 }
 0x786   : > { %2851 = vmatpush1.bf16.msra.mxu1 %v5128_v12 }
 0x787   : > { %2853 = vmatprep.subr.bf16.mxu1 %v5043_v38 }
 0x78a   : > { %2855 = vmatpush1.bf16.msra.mxu1 %v5041_v15 }
 0x78b   : > { %2857 = vmatprep.subr.bf16.mxu1 %v5165_v11 }
 0x78e   : > { %2859 = vmatpush1.bf16.msra.mxu1 %v5162_v25 }
 0x78f   : > { %2861 = vmatprep.subr.bf16.mxu1 %v5094_v5 }
 0x792   : > { %2863 = vmatpush1.bf16.msra.mxu1 %v5096_v14 }
 0x793   : > { %2865 = vmatprep.subr.bf16.mxu1 %v5192_v29 }
 0x796   : > { %2867 = vmatpush1.bf16.msra.mxu1 %v5190_v7 }
 0x797   : > { %2869 = vmatprep.subr.bf16.mxu1 %v2830_v39 }
 0x799   : > { %1954 = vmatmul.mubr.f32.vlgmr.msra.gmra.mrb[4].mxu1 %v1863_v56 }
 0x79a   : > { %2871 = vmatpush1.bf16.msra.mxu1 %v2828_v48  ;;  %1959 = vmatprep.mubr.f32.mxu1 %v1868_v22 }
 0x79b   : > { %2873 = vmatprep.subr.bf16.mxu1 %v2834_v57 }
 0x79d   : > { %1960 = vmatmul.mubr.f32.gmra.mrb[6].mxu1 %v1867_v33 }
 0x79e   : > { %2875 = vmatpush1.bf16.msra.mxu1 %v2832_v35  ;;  %2647 = vmatprep.mubr.msk.f32.mxu1 %vm1556_vm1, %v1866_v63 }
 0x79f   : > { %2877 = vmatprep.subr.bf16.mxu1 %v2838_v43 }
 0x7a2   : > { %2879 = vmatpush1.bf16.msra.mxu1 %v2836_v44 }
 0x7a3   : > { %2881 = vmatprep.subr.bf16.mxu1 %v5192_v29 }
 0x7a6   : > { %2883 = vmatpush1.bf16.msra.mxu1 %v5190_v7 }
 0x7a7   : > { %2885 = vmatprep.subr.bf16.mxu1 %v5096_v14 }
 0x7aa   : > { %2887 = vmatpush1.bf16.msra.mxu1 %v5094_v5 }
 0x7ab   : > { %2889 = vmatprep.subr.bf16.mxu1 %v5128_v12 }
 0x7ae   : > { %2891 = vmatpush1.bf16.msra.mxu1 %v5126_v45  ;;  %v1870_v45 = vld [vmem:[%s5593_s7 + $0x38] sm:$0xff] }
 0x7af   : > { %2893 = vmatprep.subr.bf16.mxu1 %v5041_v15  ;;  %v1869_v15 = vld [vmem:[%s5593_s7 + $0x30] sm:$0xff] }
 0x7b2   : > { %2895 = vmatpush1.bf16.msra.mxu1 %v5043_v38  ;;  %v1876_v38 = vpop.permute.xlu1 %1875 }
 0x7b3   : > { %2897 = vmatprep.subr.bf16.mxu1 %v5162_v25 }
 0x7b6   : > { %2899 = vmatpush1.bf16.msra.mxu1 %v5165_v11  ;;  %v1881_v11 = vpop.permute.xlu0 %1880 }
 0x7b7   : > { %2901 = vmatprep.subr.bf16.mxu1 %v5096_v14 }
 0x7ba   : > { %2903 = vmatpush1.bf16.msra.mxu1 %v5094_v5 }
 0x7bd   : > { %2031 = vmatmul.mubr.f32.vlgmr.msra.gmra.mrb[4].mxu1 %v1865_v58 }
 0x7be   : > { %2648 = vmatprep.mubr.msk.f32.mxu1 %vm1556_vm1, %v1870_v45 }
 0x7c1   : > { %2037 = vmatmul.mubr.f32.gmra.mrb[6].mxu1 %v1869_v15 }
 0x890   : > { %v2032_v14 = vpop.f32.mrb[4].mxu1 }
 0x891   : > { %v3108_v12 = vadd.f32 %v2032_v14, %v1876_v38  ;;  %v2034_v5 = vpop.f32.mrb[5].mxu1 }
 0x892   : > { %v3109_v25 = vadd.f32 %v2034_v5, %v1876_v38 }
 0x893   : > { %v2043_v61 = vmul.f32 0.01, %v3108_v12 }
 0x894   : > { %v2038_v1 = vpop.f32.mrb[6].mxu1  ;;  %v2044_v13 = vmul.f32 0.01, %v3109_v25 }
 0x895   : > { %v3110_v42 = vadd.f32 %v2038_v1, %v1881_v11  ;;  %v2040_v60 = vpop.f32.mrb[7].mxu1  ;;  %v2047_v46 = vmax.f32 %v3108_v12, %v2043_v61 }
 0x896   : > { %v3111_v19 = vadd.f32 %v2040_v60, %v1881_v11  ;;  %v2048_v7 = vmax.f32 %v3109_v25, %v2044_v13 }
 0x897   : > { %v2045_v51 = vmul.f32 0.01, %v3110_v42 }
 0x898   : > { %v2046_v0 = vmul.f32 0.01, %v3111_v19 }
 0x899   : > { %v2049_v55 = vmax.f32 %v3110_v42, %v2045_v51 }
 0x89a   : > { %v2050_v29 = vmax.f32 %v3111_v19, %v2046_v0 }
 0x89b   : > { %v5269_v18 = vpack.i.bf16 %v2049_v55, %v2047_v46  ;;  %v5277_v10 = vpack.c.bf16 %v2049_v55, %v2047_v46 }
 0x89c   : > { %v5271_v32 = vpack.i.bf16 %v2050_v29, %v2048_v7  ;;  %v5279_v3 = vpack.c.bf16 %v2050_v29, %v2048_v7 }
 0x89d   : > { %3732 = vrot.lane.b32.xlu1 %v5269_v18, %s3914_s19 }
 0x89e   : > { %3762 = vrot.lane.b32.xlu0 %v5271_v32, %s3914_s19 }
 0x8a1   : > { %3737 = vrot.lane.b32.xlu1 %v5269_v18, %s3915_s20 }
 0x8a2   : > { %3767 = vrot.lane.b32.xlu0 %v5271_v32, %s3915_s20 }
 0x8a5   : > { %3742 = vrot.lane.b32.xlu1 %v5269_v18, %s3911_s18 }
 0x8a6   : > { %3772 = vrot.lane.b32.xlu0 %v5271_v32, %s3911_s18  ;;  %s2655_s18 = sshll.u32 %s5629_s26, 4 }
 0x8a7   : > { %s455_s15 = scalar_lea.vmem %s5599_s13, %s2655_s18 }
 0x8a9   : > { %3747 = vrot.lane.b32.xlu1 %v5269_v18, %s3910_s17 }
 0x8aa   : > { %3777 = vrot.lane.b32.xlu0 %v5271_v32, %s3910_s17 }
 0x8ad   : > { %3752 = vrot.lane.b32.xlu1 %v5269_v18, %s3909_s16 }
 0x8ae   : > { %3782 = vrot.lane.b32.xlu0 %v5271_v32, %s3909_s16 }
 0x8b1   : > { %3757 = vrot.lane.b32.xlu1 %v5269_v18, %s3912_s24 }
 0x8b2   : > { %3787 = vrot.lane.b32.xlu0 %v5271_v32, %s3912_s24 }
 0x90f   : > { %v3733_v34 = vpop.permute.xlu1 %3732 }
 0x910   : > { %v3763_v23 = vpop.permute.xlu0 %3762  ;;  %v3735_v21 = vunpack.i.h.bf16 %v3733_v34  ;;  %v3734_v62 = vunpack.i.l.bf16 %v3733_v34 }
 0x911   : > { %v3765_v24 = vunpack.i.h.bf16 %v3763_v23  ;;  %v3764_v26 = vunpack.i.l.bf16 %v3763_v23 }
 0x913   : > { %v3738_v27 = vpop.permute.xlu1 %3737  ;;  %v2061_v53 = vsel %vm1733_vm6, %v3764_v26, %v3734_v62  ;;  %v2062_v48 = vsel %vm1733_vm6, %v3765_v24, %v3735_v21  ;;  %v2059_v57 = vsel %vm1733_vm6, %v3734_v62, %v3764_v26  ;;  %v2060_v30 = vsel %vm1733_vm6, %v3735_v21, %v3765_v24 }
 0x914   : > { %v3740_v39 = vunpack.i.h.bf16 %v3738_v27  ;;  %v3739_v28 = vunpack.i.l.bf16 %v3738_v27  ;;  %v3768_v47 = vpop.permute.xlu0 %3767 }
 0x915   : > { %v3770_v52 = vunpack.i.h.bf16 %v3768_v47  ;;  %v3769_v20 = vunpack.i.l.bf16 %v3768_v47 }
 0x917   : > { %v2071_v50 = vsel %vm1746_vm10, %v3739_v28, %v3769_v20  ;;  %v2072_v59 = vsel %vm1746_vm10, %v3740_v39, %v3770_v52  ;;  %v2073_v8 = vsel %vm1746_vm10, %v3769_v20, %v3739_v28  ;;  %v2074_v49 = vsel %vm1746_vm10, %v3770_v52, %v3740_v39  ;;  %v3743_v54 = vpop.permute.xlu1 %3742 }
 0x918   : > { %v3773_v37 = vpop.permute.xlu0 %3772  ;;  %v2076_v16 = vsel %vm496_vm11, %v2061_v53, %v2071_v50  ;;  %v2078_v2 = vsel %vm496_vm11, %v2062_v48, %v2072_v59  ;;  %v3745_v17 = vunpack.i.h.bf16 %v3743_v54  ;;  %v3744_v35 = vunpack.i.l.bf16 %v3743_v54 }
 0x919   : > { %v3796_v36 = vpack.i.bf16 %v2078_v2, %v2076_v16  ;;  %v3775_v40 = vunpack.i.h.bf16 %v3773_v37  ;;  %v3774_v41 = vunpack.i.l.bf16 %v3773_v37  ;;  %v2075_v31 = vsel %vm495_vm13, %v2059_v57, %v2073_v8 }
 0x91a   : > { %v2077_v43 = vsel %vm495_vm13, %v2060_v30, %v2074_v49  ;;  %v5326_v56 = vpack.c.bf16 %v2078_v2, %v2076_v16 }
 0x91b   : > { %v3748_v44 = vpop.permute.xlu1 %3747  ;;  %3797 = vrot.lane.b32.xlu0 %v3796_v36, %s3913_s27  ;;  %v3791_v63 = vpack.i.bf16 %v2077_v43, %v2075_v31  ;;  %v5328_v58 = vpack.c.bf16 %v2077_v43, %v2075_v31  ;;  %v2089_v14 = vsel %vm898_vm9, %v3774_v41, %v3744_v35  ;;  %v2090_v12 = vsel %vm898_vm9, %v3775_v40, %v3745_v17  ;;  %v2192_v36 = vld [vmem:[%s5596_s10 + $0x8] sm:$0xff] }
 0x91c   : > { %v3750_v22 = vunpack.i.h.bf16 %v3748_v44  ;;  %v3749_v33 = vunpack.i.l.bf16 %v3748_v44  ;;  %v3778_v45 = vpop.permute.xlu0 %3777  ;;  %v2087_v42 = vsel %vm898_vm9, %v3744_v35, %v3774_v41  ;;  %v2088_v60 = vsel %vm898_vm9, %v3745_v17, %v3775_v40  ;;  %v2184_v40 = vld [vmem:[%s5595_s9 + $0x8] sm:$0xff] }
 0x91d   : > { %v3780_v15 = vunpack.i.h.bf16 %v3778_v45  ;;  %v3779_v38 = vunpack.i.l.bf16 %v3778_v45  ;;  %3792 = vrot.lane.b32.xlu1 %v3791_v63, %s3913_s27  ;;  %2905 = vmatprep.subr.bf16.mxu0 %v5328_v58 }
 0x91e   : > { %2907 = vmatpush1.bf16.msra.mxu0 %v5326_v56  ;;  %2273 = vmatprep.mubr.f32.mxu0 %v2184_v40  ;;  %v2185_v40 = vld [vmem:[%s5595_s9 + $0x10] sm:$0xff] }
 0x91f   : > { %v2099_v5 = vsel %vm905_vm8, %v3749_v33, %v3779_v38  ;;  %v2100_v25 = vsel %vm905_vm8, %v3750_v22, %v3780_v15  ;;  %v2101_v11 = vsel %vm905_vm8, %v3779_v38, %v3749_v33  ;;  %v2102_v1 = vsel %vm905_vm8, %v3780_v15, %v3750_v22  ;;  %v3753_v61 = vpop.permute.xlu1 %3752  ;;  %vm5627_vm8 = vmmov %vm5623_vm4 }
 0x920   : > { %v3783_v13 = vpop.permute.xlu0 %3782  ;;  %v2104_v19 = vsel %vm492_vm3, %v2089_v14, %v2099_v5  ;;  %v2106_v51 = vsel %vm492_vm3, %v2090_v12, %v2100_v25  ;;  %v3754_v0 = vunpack.i.l.bf16 %v3753_v61  ;;  %v2103_v7 = vsel %vm491_vm2, %v2087_v42, %v2101_v11 }
 0x921   : > { %v3784_v46 = vunpack.i.l.bf16 %v3783_v13  ;;  %v3811_v55 = vpack.i.bf16 %v2106_v51, %v2104_v19  ;;  %v3755_v29 = vunpack.i.h.bf16 %v3753_v61  ;;  %v3785_v34 = vunpack.i.h.bf16 %v3783_v13 }
 0x922   : > { %v2105_v23 = vsel %vm491_vm2, %v2088_v60, %v2102_v1  ;;  %v5358_v62 = vpack.c.bf16 %v2106_v51, %v2104_v19 }
 0x923   : > { %v3758_v21 = vpop.permute.xlu1 %3757  ;;  %3812 = vrot.lane.b32.xlu0 %v3811_v55, %s3913_s27  ;;  %v3801_v27 = vpack.i.bf16 %v2105_v23, %v2103_v7  ;;  %v5360_v39 = vpack.c.bf16 %v2105_v23, %v2103_v7  ;;  %v2115_v47 = vsel %vm946_vm15, %v3754_v0, %v3784_v46  ;;  %v2116_v53 = vsel %vm946_vm15, %v3755_v29, %v3785_v34 }
 0x924   : > { %v3760_v24 = vunpack.i.h.bf16 %v3758_v21  ;;  %v3759_v26 = vunpack.i.l.bf16 %v3758_v21  ;;  %v3788_v28 = vpop.permute.xlu0 %3787  ;;  %v2117_v48 = vsel %vm946_vm15, %v3784_v46, %v3754_v0  ;;  %v2118_v50 = vsel %vm946_vm15, %v3785_v34, %v3755_v29  ;;  %vm5626_vm15 = vmmov %vm5623_vm4 }
 0x925   : > { %v3790_v52 = vunpack.i.h.bf16 %v3788_v28  ;;  %v3789_v20 = vunpack.i.l.bf16 %v3788_v28  ;;  %3802 = vrot.lane.b32.xlu1 %v3801_v27, %s3913_s27  ;;  %2909 = vmatprep.subr.bf16.mxu0 %v5360_v39 }
 0x926   : > { %2911 = vmatpush1.bf16.msra.mxu0 %v5358_v62 }
 0x927   : > { %v2127_v59 = vsel %vm953_vm0, %v3759_v26, %v3789_v20  ;;  %v2128_v8 = vsel %vm953_vm0, %v3760_v24, %v3790_v52  ;;  %v2129_v49 = vsel %vm953_vm0, %v3789_v20, %v3759_v26  ;;  %v2130_v54 = vsel %vm953_vm0, %v3790_v52, %v3760_v24  ;;  %2913 = vmatprep.subr.bf16.mxu0 %v5277_v10 }
 0x928   : > { %3817 = vrot.lane.b32.xlu0 %v5271_v32, %s3913_s27  ;;  %v2132_v57 = vsel %vm494_vm14, %v2117_v48, %v2127_v59  ;;  %v2134_v37 = vsel %vm494_vm14, %v2118_v50, %v2128_v8  ;;  %v2131_v16 = vsel %vm5626_vm15, %v2115_v47, %v2129_v49  ;;  %v2133_v30 = vsel %vm5627_vm8, %v2116_v53, %v2130_v54 }
 0x929   : > { %v3826_v2 = vpack.i.bf16 %v2134_v37, %v2132_v57  ;;  %3807 = vrot.lane.b32.xlu1 %v5269_v18, %s3913_s27  ;;  %v3821_v17 = vpack.i.bf16 %v2133_v30, %v2131_v16  ;;  %v5394_v35 = vpack.c.bf16 %v2133_v30, %v2131_v16  ;;  %v5397_v32 = vpack.c.bf16 %v2134_v37, %v2132_v57  ;;  %v2191_v18 = vld [vmem:[%s5596_s10] sm:$0xff] }
 0x92a   : > { %2915 = vmatpush1.bf16.msra.mxu0 %v5279_v3  ;;  %v2183_v30 = vld [vmem:[%s5595_s9] sm:$0xff] }
 0x92b   : > { %2917 = vmatprep.subr.bf16.mxu0 %v5394_v35 }
 0x92c   : > { %3827 = vrot.lane.b32.xlu0 %v3826_v2, %s3913_s27 }
 0x92d   : > { %3822 = vrot.lane.b32.xlu1 %v3821_v17, %s3913_s27  ;;  %v2188_v17 = vld [vmem:[%s5595_s9 + $0x28] sm:$0xff] }
 0x92e   : > { %2919 = vmatpush1.bf16.msra.mxu0 %v5397_v32 }
 0x92f   : > { %2921 = vmatprep.subr.bf16.mxu0 %v5328_v58 }
 0x930   : > { %2200 = vperm.xlu0 %3400, %v2192_v36   ;;  %v2187_v36 = vld [vmem:[%s5595_s9 + $0x20] sm:$0xff] }
 0x931   : > { %2195 = vperm.xlu1 %3299, %v2191_v18   ;;  %v2186_v18 = vld [vmem:[%s5595_s9 + $0x18] sm:$0xff] }
 0x932   : > { %2923 = vmatpush1.bf16.msra.mxu0 %v5326_v56 }
 0x98d   : > { %v3798_v41 = vpop.permute.xlu0 %3797 }
 0x98e   : > { %v3800_v31 = vunpack.i.h.bf16 %v3798_v41  ;;  %v3799_v43 = vunpack.i.l.bf16 %v3798_v41 }
 0x98f   : > { %v3793_v44 = vpop.permute.xlu1 %3792 }
 0x990   : > { %v3795_v22 = vunpack.i.h.bf16 %v3793_v44  ;;  %v3794_v33 = vunpack.i.l.bf16 %v3793_v44 }
 0x992   : > { %v2144_v63 = vsel %vm966_vm12, %v3795_v22, %v3800_v31  ;;  %v2146_v45 = vsel %vm966_vm12, %v3800_v31, %v3795_v22  ;;  %v2143_v15 = vsel %vm966_vm12, %v3794_v33, %v3799_v43  ;;  %v2145_v38 = vsel %vm966_vm12, %v3799_v43, %v3794_v33 }
 0x993   : > { %v5422_v14 = vpack.c.bf16 %v2144_v63, %v2143_v15  ;;  %v5424_v12 = vpack.c.bf16 %v2146_v45, %v2145_v38 }
 0x995   : > { %v3813_v5 = vpop.permute.xlu0 %3812  ;;  %2925 = vmatprep.subr.bf16.mxu0 %v5422_v14 }
 0x996   : > { %2927 = vmatpush1.bf16.msra.mxu0 %v5424_v12  ;;  %v3815_v25 = vunpack.i.h.bf16 %v3813_v5  ;;  %v3814_v11 = vunpack.i.l.bf16 %v3813_v5 }
 0x997   : > { %v3803_v1 = vpop.permute.xlu1 %3802 }
 0x998   : > { %v3805_v61 = vunpack.i.h.bf16 %v3803_v1  ;;  %v3804_v42 = vunpack.i.l.bf16 %v3803_v1 }
 0x99a   : > { %v3818_v60 = vpop.permute.xlu0 %3817  ;;  %v2158_v13 = vsel %vm966_vm12, %v3815_v25, %v3805_v61  ;;  %v2157_v19 = vsel %vm966_vm12, %v3814_v11, %v3804_v42  ;;  %v2155_v7 = vsel %vm966_vm12, %v3804_v42, %v3814_v11  ;;  %v2156_v29 = vsel %vm966_vm12, %v3805_v61, %v3815_v25  ;;  %v2403_v61 = vld [vmem:[%s5598_s12] sm:$0xff]  ;;  %v2400_v42 = vld [vmem:[%s5597_s11 + $0x8] sm:$0xff] }
 0x99b   : > { %v3820_v51 = vunpack.i.h.bf16 %v3818_v60  ;;  %v3819_v0 = vunpack.i.l.bf16 %v3818_v60  ;;  %v2930_v46 = vpack.c.bf16 %v2158_v13, %v2157_v19  ;;  %v3808_v55 = vpop.permute.xlu1 %3807  ;;  %v2928_v21 = vpack.c.bf16 %v2156_v29, %v2155_v7  ;;  %2476 = vmatprep.mubr.f32.mxu1 %v2400_v42 }
 0x99c   : > { %v3810_v34 = vunpack.i.h.bf16 %v3808_v55  ;;  %v3809_v23 = vunpack.i.l.bf16 %v3808_v55 }
 0x99d   : > { %2929 = vmatprep.subr.bf16.mxu0 %v2928_v21 }
 0x99e   : > { %v3828_v24 = vpop.permute.xlu0 %3827  ;;  %v2170_v26 = vsel %vm966_vm12, %v3820_v51, %v3810_v34  ;;  %v2169_v27 = vsel %vm966_vm12, %v3819_v0, %v3809_v23  ;;  %2931 = vmatpush1.bf16.msra.mxu0 %v2930_v46  ;;  %v2167_v53 = vsel %vm966_vm12, %v3809_v23, %v3819_v0  ;;  %v2168_v48 = vsel %vm966_vm12, %v3810_v34, %v3820_v51 }
 0x99f   : > { %v3830_v28 = vunpack.i.h.bf16 %v3828_v24  ;;  %v3829_v47 = vunpack.i.l.bf16 %v3828_v24  ;;  %v2934_v52 = vpack.c.bf16 %v2170_v26, %v2169_v27  ;;  %v3823_v20 = vpop.permute.xlu1 %3822  ;;  %v2932_v8 = vpack.c.bf16 %v2168_v48, %v2167_v53 }
 0x9a0   : > { %v3825_v50 = vunpack.i.h.bf16 %v3823_v20  ;;  %v3824_v59 = vunpack.i.l.bf16 %v3823_v20 }
 0x9a1   : > { %2933 = vmatprep.subr.bf16.mxu0 %v2932_v8 }
 0x9a2   : > { %v2182_v49 = vsel %vm966_vm12, %v3830_v28, %v3825_v50  ;;  %v2181_v54 = vsel %vm966_vm12, %v3829_v47, %v3824_v59  ;;  %v2179_v57 = vsel %vm966_vm12, %v3824_v59, %v3829_v47  ;;  %v2180_v37 = vsel %vm966_vm12, %v3825_v50, %v3830_v28  ;;  %2935 = vmatpush1.bf16.msra.mxu0 %v2934_v52 }
 0x9a3   : > { %v2938_v16 = vpack.c.bf16 %v2182_v49, %v2181_v54  ;;  %v2936_v2 = vpack.c.bf16 %v2180_v37, %v2179_v57 }
 0x9a5   : > { %2937 = vmatprep.subr.bf16.mxu0 %v2936_v2 }
 0x9a6   : > { %2939 = vmatpush1.bf16.msra.mxu0 %v2938_v16 }
 0x9a7   : > { %2941 = vmatprep.subr.bf16.mxu0 %v5422_v14 }
 0x9aa   : > { %2943 = vmatpush1.bf16.msra.mxu0 %v5424_v12 }
 0x9ab   : > { %2945 = vmatprep.subr.bf16.mxu0 %v5326_v56 }
 0x9ae   : > { %2947 = vmatpush1.bf16.msra.mxu0 %v5328_v58 }
 0x9af   : > { %2949 = vmatprep.subr.bf16.mxu0 %v5358_v62 }
 0x9b2   : > { %2951 = vmatpush1.bf16.msra.mxu0 %v5360_v39 }
 0x9b3   : > { %2953 = vmatprep.subr.bf16.mxu0 %v5279_v3 }
 0x9b6   : > { %2955 = vmatpush1.bf16.msra.mxu0 %v5277_v10 }
 0x9b7   : > { %2957 = vmatprep.subr.bf16.mxu0 %v5397_v32 }
 0x9ba   : > { %2959 = vmatpush1.bf16.msra.mxu0 %v5394_v35 }
 0x9bb   : > { %2961 = vmatprep.subr.bf16.mxu0 %v5326_v56 }
 0x9be   : > { %2963 = vmatpush1.bf16.msra.mxu0 %v5328_v58 }
 0x9bf   : > { %2965 = vmatprep.subr.bf16.mxu0 %v5424_v12 }
 0x9c2   : > { %2967 = vmatpush1.bf16.msra.mxu0 %v5422_v14 }
 0x9c3   : > { %2969 = vmatprep.subr.bf16.mxu0 %v2930_v46 }
 0x9c5   : > { %2274 = vmatmul.mubr.f32.vlgmr.msra.gmra.mrb[6].mxu0 %v2183_v30 }
 0x9c6   : > { %2971 = vmatpush1.bf16.msra.mxu0 %v2928_v21  ;;  %2279 = vmatprep.mubr.f32.mxu0 %v2188_v17 }
 0x9c7   : > { %2973 = vmatprep.subr.bf16.mxu0 %v2934_v52 }
 0x9c9   : > { %2280 = vmatmul.mubr.f32.gmra.mrb[8].mxu0 %v2187_v36 }
 0x9ca   : > { %2975 = vmatpush1.bf16.msra.mxu0 %v2932_v8  ;;  %2649 = vmatprep.mubr.msk.f32.mxu0 %vm1556_vm1, %v2186_v18 }
 0x9cb   : > { %2977 = vmatprep.subr.bf16.mxu0 %v2938_v16 }
 0x9ce   : > { %2979 = vmatpush1.bf16.msra.mxu0 %v2936_v2 }
 0x9cf   : > { %2981 = vmatprep.subr.bf16.mxu0 %v5424_v12 }
 0x9d2   : > { %2983 = vmatpush1.bf16.msra.mxu0 %v5422_v14 }
 0x9d3   : > { %2985 = vmatprep.subr.bf16.mxu0 %v5328_v58 }
 0x9d6   : > { %2987 = vmatpush1.bf16.msra.mxu0 %v5326_v56 }
 0x9d7   : > { %2989 = vmatprep.subr.bf16.mxu0 %v5360_v39 }
 0x9da   : > { %2991 = vmatpush1.bf16.msra.mxu0 %v5358_v62  ;;  %v2190_v62 = vld [vmem:[%s5595_s9 + $0x38] sm:$0xff] }
 0x9db   : > { %2993 = vmatprep.subr.bf16.mxu0 %v5277_v10  ;;  %v2189_v10 = vld [vmem:[%s5595_s9 + $0x30] sm:$0xff] }
 0x9de   : > { %2995 = vmatpush1.bf16.msra.mxu0 %v5279_v3  ;;  %v2196_v3 = vpop.permute.xlu1 %2195 }
 0x9df   : > { %2997 = vmatprep.subr.bf16.mxu0 %v5394_v35 }
 0x9e2   : > { %2999 = vmatpush1.bf16.msra.mxu0 %v5397_v32  ;;  %v2201_v32 = vpop.permute.xlu0 %2200 }
 0x9e3   : > { %3001 = vmatprep.subr.bf16.mxu0 %v5328_v58 }
 0x9e6   : > { %3003 = vmatpush1.bf16.msra.mxu0 %v5326_v56 }
 0x9e9   : > { %2351 = vmatmul.mubr.f32.vlgmr.msra.gmra.mrb[6].mxu0 %v2185_v40 }
 0x9ea   : > { %2650 = vmatprep.mubr.msk.f32.mxu0 %vm1556_vm1, %v2190_v62 }
 0x9ed   : > { %2357 = vmatmul.mubr.f32.gmra.mrb[8].mxu0 %v2189_v10 }
 0xabc   : > { %v2352_v58 = vpop.f32.mrb[6].mxu0 }
 0xabd   : > { %v3112_v39 = vadd.f32 %v2352_v58, %v2196_v3  ;;  %v2354_v56 = vpop.f32.mrb[7].mxu0 }
 0xabe   : > { %v3113_v35 = vadd.f32 %v2354_v56, %v2196_v3 }
 0xabf   : > { %v2363_v31 = vmul.f32 0.01, %v3112_v39 }
 0xac0   : > { %v2358_v41 = vpop.f32.mrb[8].mxu0  ;;  %v2364_v22 = vmul.f32 0.01, %v3113_v35 }
 0xac1   : > { %v3114_v43 = vadd.f32 %v2358_v41, %v2201_v32  ;;  %v2360_v44 = vpop.f32.mrb[9].mxu0  ;;  %v2367_v15 = vmax.f32 %v3112_v39, %v2363_v31 }
 0xac2   : > { %v3115_v33 = vadd.f32 %v2360_v44, %v2201_v32  ;;  %v2368_v14 = vmax.f32 %v3113_v35, %v2364_v22 }
 0xac3   : > { %v2365_v63 = vmul.f32 0.01, %v3114_v43 }
 0xac4   : > { %v2366_v45 = vmul.f32 0.01, %v3115_v33 }
 0xac5   : > { %v2369_v38 = vmax.f32 %v3114_v43, %v2365_v63 }
 0xac6   : > { %v2370_v12 = vmax.f32 %v3115_v33, %v2366_v45 }
 0xac7   : > { %v3836_v5 = vpack.i.bf16 %v2369_v38, %v2367_v15  ;;  %v5501_v25 = vpack.c.bf16 %v2369_v38, %v2367_v15 }
 0xac8   : > { %v3846_v11 = vpack.i.bf16 %v2370_v12, %v2368_v14  ;;  %v5503_v1 = vpack.c.bf16 %v2370_v12, %v2368_v14 }
 0xac9   : > { %3832 = vrot.lane.b32.xlu1 %v3836_v5, %s3914_s19 }
 0xaca   : > { %3842 = vrot.lane.b32.xlu0 %v3846_v11, %s3914_s19  ;;  %3005 = vmatprep.subr.bf16.mxu1 %v5503_v1 }
 0xacb   : > { %3007 = vmatpush1.bf16.msra.mxu1 %v5501_v25 }
 0xacd   : > { %3837 = vrot.lane.b32.xlu1 %v3836_v5, %s3915_s20 }
 0xace   : > { %3847 = vrot.lane.b32.xlu0 %v3846_v11, %s3915_s20 }
 0xad1   : > { %2406 = vperm.xlu1 %3299, %v2403_v61  }
 0xb3b   : > { %v3833_v60 = vpop.permute.xlu1 %3832 }
 0xb3c   : > { %v3843_v13 = vpop.permute.xlu0 %3842  ;;  %v3835_v19 = vunpack.i.h.bf16 %v3833_v60  ;;  %v3834_v51 = vunpack.i.l.bf16 %v3833_v60 }
 0xb3d   : > { %v3845_v0 = vunpack.i.h.bf16 %v3843_v13  ;;  %v3844_v46 = vunpack.i.l.bf16 %v3843_v13 }
 0xb3f   : > { %v3838_v55 = vpop.permute.xlu1 %3837  ;;  %v2379_v24 = vsel %vm1733_vm6, %v3834_v51, %v3844_v46  ;;  %v2380_v26 = vsel %vm1733_vm6, %v3835_v19, %v3845_v0  ;;  %v2381_v27 = vsel %vm1733_vm6, %v3844_v46, %v3834_v51  ;;  %v2382_v28 = vsel %vm1733_vm6, %v3845_v0, %v3835_v19 }
 0xb40   : > { %v3840_v7 = vunpack.i.h.bf16 %v3838_v55  ;;  %v3839_v29 = vunpack.i.l.bf16 %v3838_v55  ;;  %v3848_v34 = vpop.permute.xlu0 %3847 }
 0xb41   : > { %v3850_v23 = vunpack.i.h.bf16 %v3848_v34  ;;  %v3849_v21 = vunpack.i.l.bf16 %v3848_v34 }
 0xb43   : > { %v2391_v47 = vsel %vm1746_vm10, %v3839_v29, %v3849_v21  ;;  %v2392_v52 = vsel %vm1746_vm10, %v3840_v7, %v3850_v23  ;;  %v2393_v20 = vsel %vm1746_vm10, %v3849_v21, %v3839_v29  ;;  %v2394_v53 = vsel %vm1746_vm10, %v3850_v23, %v3840_v7 }
 0xb44   : > { %v2395_v48 = vsel %vm495_vm13, %v2379_v24, %v2393_v20  ;;  %v2396_v50 = vsel %vm496_vm11, %v2381_v27, %v2391_v47  ;;  %v2397_v59 = vsel %vm495_vm13, %v2380_v26, %v2394_v53  ;;  %v2398_v8 = vsel %vm496_vm11, %v2382_v28, %v2392_v52 }
 0xb45   : > { %v3008_v49 = vpack.c.bf16 %v2398_v8, %v2396_v50  ;;  %v3010_v54 = vpack.c.bf16 %v2397_v59, %v2395_v48 }
 0xb47   : > { %3009 = vmatprep.subr.bf16.mxu1 %v3008_v49 }
 0xb48   : > { %3011 = vmatpush1.bf16.msra.mxu1 %v3010_v54 }
 0xb49   : > { %3013 = vmatprep.subr.bf16.mxu1 %v5503_v1 }
 0xb4c   : > { %3015 = vmatpush1.bf16.msra.mxu1 %v5501_v25 }
 0xb4d   : > { %3017 = vmatprep.subr.bf16.mxu1 %v3008_v49 }
 0xb50   : > { %3019 = vmatpush1.bf16.msra.mxu1 %v3010_v54  ;;  %v2407_v57 = vpop.permute.xlu1 %2406 }
 0xb51   : > { %3021 = vmatprep.subr.bf16.mxu1 %v5503_v1 }
 0xb54   : > { %3023 = vmatpush1.bf16.msra.mxu1 %v5501_v25 }
 0xb55   : > { %3025 = vmatprep.subr.bf16.mxu1 %v5501_v25 }
 0xb58   : > { %3027 = vmatpush1.bf16.msra.mxu1 %v5503_v1 }
 0xb59   : > { %3029 = vmatprep.subr.bf16.mxu1 %v3010_v54 }
 0xb5c   : > { %3031 = vmatpush1.bf16.msra.mxu1 %v3008_v49 }
 0xb5d   : > { %3033 = vmatprep.subr.bf16.mxu1 %v5501_v25 }
 0xb60   : > { %3035 = vmatpush1.bf16.msra.mxu1 %v5503_v1 }
 0xb61   : > { %3037 = vmatprep.subr.bf16.mxu1 %v3010_v54 }
 0xb64   : > { %3039 = vmatpush1.bf16.msra.mxu1 %v3008_v49 }
 0xb65   : > { %3041 = vmatprep.subr.bf16.mxu1 %v5501_v25 }
 0xb68   : > { %3043 = vmatpush1.bf16.msra.mxu1 %v5503_v1 }
 0xb69   : > { %3045 = vmatprep.subr.bf16.mxu1 %v5503_v1 }
 0xb6c   : > { %3047 = vmatpush1.bf16.msra.mxu1 %v5501_v25 }
 0xb6d   : > { %3049 = vmatprep.subr.bf16.mxu1 %v3008_v49 }
 0xb70   : > { %3051 = vmatpush1.bf16.msra.mxu1 %v3010_v54 }
 0xb71   : > { %3053 = vmatprep.subr.bf16.mxu1 %v5503_v1 }
 0xb74   : > { %3055 = vmatpush1.bf16.msra.mxu1 %v5501_v25 }
 0xb75   : > { %3057 = vmatprep.subr.bf16.mxu1 %v3008_v49 }
 0xb78   : > { %3059 = vmatpush1.bf16.msra.mxu1 %v3010_v54 }
 0xb79   : > { %3061 = vmatprep.subr.bf16.mxu1 %v5503_v1 }
 0xb7c   : > { %3063 = vmatpush1.bf16.msra.mxu1 %v5501_v25 }
 0xb7d   : > { %3065 = vmatprep.subr.bf16.mxu1 %v5501_v25 }
 0xb80   : > { %3067 = vmatpush1.bf16.msra.mxu1 %v5503_v1 }
 0xb81   : > { %3069 = vmatprep.subr.bf16.mxu1 %v3010_v54 }
 0xb83   : > { %2477 = vmatmul.mubr.f32.vlgmr.msra.gmra.mrb[8].mxu1 %v2399_v4 }
 0xb84   : > { %3071 = vmatpush1.bf16.msra.mxu1 %v3008_v49  ;;  %2651 = vmatprep.mubr.msk.f32.mxu1 %vm1556_vm1, %v2402_v6 }
 0xb85   : > { %3073 = vmatprep.subr.bf16.mxu1 %v5501_v25 }
 0xb88   : > { %3075 = vmatpush1.bf16.msra.mxu1 %v5503_v1 }
 0xb89   : > { %3077 = vmatprep.subr.bf16.mxu1 %v3010_v54 }
 0xb8c   : > { %3079 = vmatpush1.bf16.msra.mxu1 %v3008_v49 }
 0xb8d   : > { %3081 = vmatprep.subr.bf16.mxu1 %v5501_v25 }
 0xb90   : > { %3083 = vmatpush1.bf16.msra.mxu1 %v5503_v1 }
 0xb91   : > { %3085 = vmatprep.subr.bf16.mxu1 %v5503_v1 }
 0xb94   : > { %3087 = vmatpush1.bf16.msra.mxu1 %v5501_v25 }
 0xb95   : > { %3089 = vmatprep.subr.bf16.mxu1 %v3008_v49 }
 0xb98   : > { %3091 = vmatpush1.bf16.msra.mxu1 %v3010_v54 }
 0xb99   : > { %3093 = vmatprep.subr.bf16.mxu1 %v5503_v1 }
 0xb9c   : > { %3095 = vmatpush1.bf16.msra.mxu1 %v5501_v25 }
 0xb9d   : > { %3097 = vmatprep.subr.bf16.mxu1 %v3008_v49 }
 0xba0   : > { %3099 = vmatpush1.bf16.msra.mxu1 %v3010_v54 }
 0xba1   : > { %3101 = vmatprep.subr.bf16.mxu1 %v5503_v1 }
 0xba4   : > { %3103 = vmatpush1.bf16.msra.mxu1 %v5501_v25 }
 0xba7   : > { %2548 = vmatmul.mubr.f32.vlgmr.msra.gmra.mrb[8].mxu1 %v2401_v9 }
 0xc7a   : > { %v2549_v37 = vpop.f32.mrb[8].mxu1 }
 0xc7b   : > { %v3116_v16 = vadd.f32 %v2549_v37, %v2407_v57  ;;  %v2551_v2 = vpop.f32.mrb[9].mxu1 }
 0xc7c   : > { %v3117_v30 = vadd.f32 %v2551_v2, %v2407_v57 }
 0xc7d   : > { %v2554_v17 = vmul.f32 0.01, %v3116_v16 }
 0xc7e   : > { %v2555_v36 = vmul.f32 0.01, %v3117_v30 }
 0xc7f   : > { %v2556_v18 = vmax.f32 %v3116_v16, %v2554_v17 }
 0xc80   : > { %v2557_v40 = vmax.f32 %v3117_v30, %v2555_v36 }
 0xc81   : > { %2558 = vst [vmem:[%s455_s15] sm:$0xff] %v2556_v18 }
 0xc82   : > { %2559 = vst [vmem:[%s455_s15 + $0x8] sm:$0xff] %v2557_v40 }
 0xc83 PF: > { %s24_s25 = sadd.s32 1, %s3890_s25  }
 0xc84   : > { %p21_p3 = scmp.ge.s32.totalorder %s24_s25, 4  }
 0xc86   :  { %23 = sbr.rel (!%p21_p3) target bundleno = 1 (0x1), region = 107 }
 0xc8d   :  { %2581 = vsyncpa [#allocation3], 1 }
 0xc8e   :  { %2583 = vsyncpa [#allocation3 + $0x1], 1 }

</bundles_post_ra>
